<compile_context>
chip_gen: v7x
topology: tpu7x:2x2x1
jax: 0.10.0
libtpu: 0.0.40
codegen_flags: <defaults>
</compile_context>

<pallas_src>
import jax
import jax.numpy as jnp
from jax.experimental import pallas as pl
from jax.experimental.pallas import tpu as pltpu

S = 8             # sequence length of "<bos> context response <eos>"
D = 128           # hidden size (GPT-2 uses 768; scaled down, lane aligned)
NH = 4            # attention heads
HD = D // NH      # head dim
DFF = 4 * D       # MLP inner dim
NLAYER = 2
VOCAB = 64
EPS = 1e-5
CDT = jnp.bfloat16   # MXU operand dtype (accumulation stays f32)

# dot_general numbers for A @ B^T without materializing a transpose
_NT = (((1,), (1,)), ((), ()))


def _layernorm(x, g, b):
    mu = jnp.mean(x, axis=-1, keepdims=True)
    var = jnp.mean(jnp.square(x - mu), axis=-1, keepdims=True)
    return (x - mu) * jax.lax.rsqrt(var + EPS) * g + b


def _softmax_rows(s):
    s = s - jnp.max(s, axis=-1, keepdims=True)
    p = jnp.exp(s)
    return p * pl.reciprocal(jnp.sum(p, axis=-1, keepdims=True), approx=True)


# ----------------------------------------------------------------------------
# Single fused Pallas kernel: embedding gather -> 2 GPT-2 blocks -> ln_f -> head
# ----------------------------------------------------------------------------
def reward_forward_kernel(ids_ref, wte_ref, wpe_ref,
                          ln1g_ref, ln1b_ref, wqkv_ref, bqkv_ref, wo_ref, bo_ref,
                          ln2g_ref, ln2b_ref, wfc_ref, bfc_ref, wpr_ref, bpr_ref,
                          lnfg_ref, lnfb_ref, whead_ref, bhead_ref,
                          out_ref):
    # ---- fused embedding lookup: one-hot @ wte (exact row select) + wpe ----
    ids = ids_ref[...]                                              # [S, 1] i32
    vocab_iota = jax.lax.broadcasted_iota(jnp.int32, (S, VOCAB), 1)
    onehot = jnp.where(vocab_iota == ids, 1.0, 0.0)                 # [S, VOCAB] f32
    x = (jnp.dot(onehot, wte_ref[...], preferred_element_type=jnp.float32)
         + wpe_ref[...])                                            # [S, D] f32

    # Causal bias built once, shared by the non-last layers.  attention_mask is
    # all-ones at trace time (no padding), so the pad-bias path is omitted.
    row = jax.lax.broadcasted_iota(jnp.int32, (S, S), 0)
    col = jax.lax.broadcasted_iota(jnp.int32, (S, S), 1)
    causal_bias = jnp.where(col <= row, 0.0, -1e9).astype(jnp.float32)   # [S, S]

    scale = 1.0 / jnp.sqrt(jnp.float32(HD))

    for li in range(NLAYER):                                        # static unroll
        last = (li == NLAYER - 1)

        # ---------------- self-attention sub-block ----------------
        h = _layernorm(x, ln1g_ref[li], ln1b_ref[li])               # f32 [S, D]
        h_c = h.astype(CDT)
        hq_c = h_c[S - 1:S, :] if last else h_c                     # query rows
        sq = 1 if last else S

        attn = jnp.zeros((sq, D), jnp.float32)
        for hi in range(NH):                                        # static unroll
            # per-head projections; weights are torch-style [HD, D] -> A @ W^T
            q = (jax.lax.dot_general(hq_c, wqkv_ref[li, 0, hi], _NT,
                                     preferred_element_type=jnp.float32)
                 + bqkv_ref[li, 0, hi])                             # [sq, HD]
            k = (jax.lax.dot_general(h_c, wqkv_ref[li, 1, hi], _NT,
                                     preferred_element_type=jnp.float32)
                 + bqkv_ref[li, 1, hi])                             # [S, HD]
            v = (jax.lax.dot_general(h_c, wqkv_ref[li, 2, hi], _NT,
                                     preferred_element_type=jnp.float32)
                 + bqkv_ref[li, 2, hi])                             # [S, HD]

            s = jax.lax.dot_general(q.astype(CDT), k.astype(CDT), _NT,
                                    preferred_element_type=jnp.float32) * scale
            if not last:
                s = s + causal_bias     # last query row sees every position
            p = _softmax_rows(s)                                    # [sq, S]
            ctx = jnp.dot(p.astype(CDT), v.astype(CDT),
                          preferred_element_type=jnp.float32)       # [sq, HD]
            # head re-concat folded into the output projection (sum over heads)
            attn = attn + jnp.dot(ctx.astype(CDT), wo_ref[li, hi],
                                  preferred_element_type=jnp.float32)
        attn = attn + bo_ref[li]                                    # [sq, D]

        if not last:
            # ---------------- full-sequence MLP sub-block ----------------
            x = x + attn
            h2 = _layernorm(x, ln2g_ref[li], ln2b_ref[li])
            m = jnp.dot(h2.astype(CDT), wfc_ref[li],
                        preferred_element_type=jnp.float32) + bfc_ref[li]
            m = jax.nn.gelu(m, approximate=True)                    # GPT-2 gelu_new
            m = jnp.dot(m.astype(CDT), wpr_ref[li],
                        preferred_element_type=jnp.float32) + bpr_ref[li]
            x = x + m
        else:
            # ------- last layer: only the last token feeds the head -------
            xl = x[S - 1:S, :] + attn                               # [1, D]
            h2 = _layernorm(xl, ln2g_ref[li], ln2b_ref[li])
            m = jnp.dot(h2.astype(CDT), wfc_ref[li],
                        preferred_element_type=jnp.float32) + bfc_ref[li]
            m = jax.nn.gelu(m, approximate=True)
            m = jnp.dot(m.astype(CDT), wpr_ref[li],
                        preferred_element_type=jnp.float32) + bpr_ref[li]
            xl = xl + m                                             # [1, D]

            # final ln_f + regression head (torch Linear(D, 1), weight [1, D])
            hf = _layernorm(xl, lnfg_ref[...], lnfb_ref[...])
            out_ref[...] = (jnp.sum(hf * whead_ref[...], axis=-1, keepdims=True)
                            + bhead_ref[...])                       # [1, 1]


# ----------------------------------------------------------------------------
# parameters + forward (glue)
# ----------------------------------------------------------------------------
def init_params(key):
    def nrm(k, shape, scale=0.02):
        return scale * jax.random.normal(k, shape, jnp.float32)

    keys = jax.random.split(key, 3 + NLAYER)
    wqkv, wo, wfc, wpr = [], [], [], []
    for li in range(NLAYER):
        k = jax.random.split(keys[3 + li], 4)
        wqkv.append(nrm(k[0], (3, NH, HD, D)))   # per-head torch-style [out, in]
        wo.append(nrm(k[1], (NH, HD, D)))        # out-proj split per head [HD, D]
        wfc.append(nrm(k[2], (D, DFF)))
        wpr.append(nrm(k[3], (DFF, D)))

    return {
        "wte": nrm(keys[0], (VOCAB, D)),
        "wpe": nrm(keys[1], (S, D)),
        # per-layer weights stacked along a leading layer axis; per-head weight
        # slabs are lane-dense (last dim = D) and statically indexed in-kernel.
        # Matmul weights stored in bf16 (MXU-native, halves weight DMA bytes).
        "ln1_g": jnp.ones((NLAYER, 1, D), jnp.float32),
        "ln1_b": jnp.zeros((NLAYER, 1, D), jnp.float32),
        "w_qkv": jnp.stack(wqkv).astype(CDT),                     # [L,3,NH,HD,D]
        "b_qkv": jnp.zeros((NLAYER, 3, NH, 1, HD), jnp.float32),
        "w_o": jnp.stack(wo).astype(CDT),                         # [L,NH,HD,D]
        "b_o": jnp.zeros((NLAYER, 1, D), jnp.float32),
        "ln2_g": jnp.ones((NLAYER, 1, D), jnp.float32),
        "ln2_b": jnp.zeros((NLAYER, 1, D), jnp.float32),
        "w_fc": jnp.stack(wfc).astype(CDT),                       # [L,D,DFF]
        "b_fc": jnp.zeros((NLAYER, 1, DFF), jnp.float32),
        "w_proj": jnp.stack(wpr).astype(CDT),                     # [L,DFF,D]
        "b_proj": jnp.zeros((NLAYER, 1, D), jnp.float32),
        "lnf_g": jnp.ones((1, D), jnp.float32),
        "lnf_b": jnp.zeros((1, D), jnp.float32),
        "w_head": nrm(keys[2], (1, D)),          # torch Linear(D,1) weight [1, D]
        "b_head": jnp.zeros((1, 1), jnp.float32),
    }


@jax.jit
def reward_model_forward(context_ids, response_ids, params):
    """Returns reward of shape [1, 1] (Linear(D,1) on the last token's vector)."""
    # TODO(synk): GPT2Tokenizer (string -> token ids) has no Pallas equivalent;
    #             inputs are pre-tokenized id arrays for context / response.
    bos = jnp.array([VOCAB - 2], jnp.int32)   # '<|startoftext|>'
    eos = jnp.array([VOCAB - 1], jnp.int32)   # '<|endoftext|>'
    input_ids = jnp.concatenate([bos, context_ids, response_ids, eos])
    assert input_ids.shape[0] == S
    input_ids = input_ids.reshape(S, 1).astype(jnp.int32)
    # attention_mask would be all-ones (no padding) -> pad bias dropped in-kernel.

    args = (input_ids, params["wte"], params["wpe"],
            params["ln1_g"], params["ln1_b"], params["w_qkv"], params["b_qkv"],
            params["w_o"], params["b_o"],
            params["ln2_g"], params["ln2_b"], params["w_fc"], params["b_fc"],
            params["w_proj"], params["b_proj"],
            params["lnf_g"], params["lnf_b"], params["w_head"], params["b_head"])

    vmem = pl.BlockSpec(memory_space=pltpu.MemorySpace.VMEM)
    return pl.pallas_call(
        reward_forward_kernel,
        in_specs=[vmem] * len(args),
        out_specs=pl.BlockSpec(memory_space=pltpu.MemorySpace.VMEM),
        out_shape=jax.ShapeDtypeStruct((1, 1), jnp.float32),
    )(*args)


if __name__ == "__main__":
    key = jax.random.PRNGKey(0)
    pkey, ckey, rkey = jax.random.split(key, 3)
    params = init_params(pkey)

    # small deterministic "tokenized" context / response (3 tokens each,
    # total with BOS/EOS = S = 8)
    context_ids = jax.random.randint(ckey, (3,), 0, VOCAB - 2, jnp.int32)
    response_ids = jax.random.randint(rkey, (3,), 0, VOCAB - 2, jnp.int32)

    reward = reward_model_forward(context_ids, response_ids, params)
    reward = jax.block_until_ready(reward)
    assert reward.shape == (1, 1) and reward.dtype == jnp.float32
    assert bool(jnp.isfinite(reward).all())
    print("KERNEL_OK")
</pallas_src>

<mosaic_0001>
module attributes {stable_mosaic.version = 11 : i64} {
  func.func @reward_forward_kernel(%arg0: memref<8x1xi32, #tpu.memory_space<vmem>>, %arg1: memref<64x128xf32, #tpu.memory_space<vmem>>, %arg2: memref<8x128xf32, #tpu.memory_space<vmem>>, %arg3: memref<2x1x128xf32, #tpu.memory_space<vmem>>, %arg4: memref<2x1x128xf32, #tpu.memory_space<vmem>>, %arg5: memref<2x3x4x32x128xbf16, #tpu.memory_space<vmem>>, %arg6: memref<2x3x4x1x32xf32, #tpu.memory_space<vmem>>, %arg7: memref<2x4x32x128xbf16, #tpu.memory_space<vmem>>, %arg8: memref<2x1x128xf32, #tpu.memory_space<vmem>>, %arg9: memref<2x1x128xf32, #tpu.memory_space<vmem>>, %arg10: memref<2x1x128xf32, #tpu.memory_space<vmem>>, %arg11: memref<2x128x512xbf16, #tpu.memory_space<vmem>>, %arg12: memref<2x1x512xf32, #tpu.memory_space<vmem>>, %arg13: memref<2x512x128xbf16, #tpu.memory_space<vmem>>, %arg14: memref<2x1x128xf32, #tpu.memory_space<vmem>>, %arg15: memref<1x128xf32, #tpu.memory_space<vmem>>, %arg16: memref<1x128xf32, #tpu.memory_space<vmem>>, %arg17: memref<1x128xf32, #tpu.memory_space<vmem>>, %arg18: memref<1x1xf32, #tpu.memory_space<vmem>>, %arg19: memref<1x1xf32, #tpu.memory_space<vmem>>) attributes {dimension_semantics = [], scalar_prefetch = 0 : i64, scratch_operands = 0 : i64, tpu.core_type = #tpu.core_type<tc>} {
    %c0 = arith.constant 0 : index
    %c0_0 = arith.constant 0 : index
    %0 = vector.load %arg0[%c0, %c0_0] : memref<8x1xi32, #tpu.memory_space<vmem>>, vector<8x1xi32>
    %1 = tpu.iota {dimensions = array<i32: 1>} : vector<8x64xi32>
    %2 = vector.broadcast %0 : vector<8x1xi32> to vector<8x64xi32>
    %3 = arith.cmpi eq, %1, %2 : vector<8x64xi32>
    %cst = arith.constant 1.000000e+00 : f32
    %cst_1 = arith.constant 0.000000e+00 : f32
    %4 = vector.broadcast %cst : f32 to vector<8x64xf32>
    %5 = vector.broadcast %cst_1 : f32 to vector<8x64xf32>
    %6 = arith.select %3, %4, %5 : vector<8x64xi1>, vector<8x64xf32>
    %c0_2 = arith.constant 0 : index
    %c0_3 = arith.constant 0 : index
    %7 = vector.load %arg1[%c0_2, %c0_3] : memref<64x128xf32, #tpu.memory_space<vmem>>, vector<64x128xf32>
    %cst_4 = arith.constant dense<0.000000e+00> : vector<8x128xf32>
    %8 = tpu.matmul %6, %7, %cst_4 {dimension_numbers = #tpu.dot_dimension_numbers<[1], [0], [0], [1], [0, 0, 1, 1], [], []>} : vector<8x64xf32>, vector<64x128xf32>, vector<8x128xf32> -> vector<8x128xf32>
    %c0_5 = arith.constant 0 : index
    %c0_6 = arith.constant 0 : index
    %9 = vector.load %arg2[%c0_5, %c0_6] : memref<8x128xf32, #tpu.memory_space<vmem>>, vector<8x128xf32>
    %10 = arith.addf %8, %9 : vector<8x128xf32>
    %11 = tpu.iota {dimensions = array<i32: 0>} : vector<8x8xi32>
    %12 = tpu.iota {dimensions = array<i32: 1>} : vector<8x8xi32>
    %13 = arith.cmpi sle, %12, %11 : vector<8x8xi32>
    %cst_7 = arith.constant 0.000000e+00 : f32
    %cst_8 = arith.constant -1.000000e+09 : f32
    %14 = vector.broadcast %cst_7 : f32 to vector<8x8xf32>
    %15 = vector.broadcast %cst_8 : f32 to vector<8x8xf32>
    %16 = arith.select %13, %14, %15 : vector<8x8xi1>, vector<8x8xf32>
    %cst_9 = arith.constant 3.200000e+01 : f32
    %17 = math.sqrt %cst_9 : f32
    %cst_10 = arith.constant 1.000000e+00 : f32
    %18 = arith.divf %cst_10, %17 : f32
    %c0_11 = arith.constant 0 : index
    %c0_12 = arith.constant 0 : index
    %c0_13 = arith.constant 0 : index
    %19 = vector.load %arg3[%c0_11, %c0_12, %c0_13] : memref<2x1x128xf32, #tpu.memory_space<vmem>>, vector<1x1x128xf32>
    %20 = vector.shape_cast %19 : vector<1x1x128xf32> to vector<1x128xf32>
    %c0_14 = arith.constant 0 : index
    %c0_15 = arith.constant 0 : index
    %c0_16 = arith.constant 0 : index
    %21 = vector.load %arg4[%c0_14, %c0_15, %c0_16] : memref<2x1x128xf32, #tpu.memory_space<vmem>>, vector<1x1x128xf32>
    %22 = vector.shape_cast %21 : vector<1x1x128xf32> to vector<1x128xf32>
    %cst_17 = arith.constant dense<0.000000e+00> : vector<8xf32>
    %23 = vector.multi_reduction <add>, %10, %cst_17 [1] : vector<8x128xf32> to vector<8xf32>
    %24 = vector.shape_cast %23 : vector<8xf32> to vector<8x1xf32>
    %cst_18 = arith.constant 1.280000e+02 : f32
    %25 = vector.broadcast %cst_18 : f32 to vector<8x1xf32>
    %26 = arith.divf %24, %25 : vector<8x1xf32>
    %27 = vector.broadcast %26 : vector<8x1xf32> to vector<8x128xf32>
    %28 = arith.subf %10, %27 : vector<8x128xf32>
    %29 = arith.mulf %28, %28 : vector<8x128xf32>
    %cst_19 = arith.constant dense<0.000000e+00> : vector<8xf32>
    %30 = vector.multi_reduction <add>, %29, %cst_19 [1] : vector<8x128xf32> to vector<8xf32>
    %31 = vector.shape_cast %30 : vector<8xf32> to vector<8x1xf32>
    %cst_20 = arith.constant 1.280000e+02 : f32
    %32 = vector.broadcast %cst_20 : f32 to vector<8x1xf32>
    %33 = arith.divf %31, %32 : vector<8x1xf32>
    %34 = vector.broadcast %26 : vector<8x1xf32> to vector<8x128xf32>
    %35 = arith.subf %10, %34 : vector<8x128xf32>
    %cst_21 = arith.constant 9.99999974E-6 : f32
    %36 = vector.broadcast %cst_21 : f32 to vector<8x1xf32>
    %37 = arith.addf %33, %36 : vector<8x1xf32>
    %38 = math.rsqrt %37 : vector<8x1xf32>
    %39 = vector.broadcast %38 : vector<8x1xf32> to vector<8x128xf32>
    %40 = arith.mulf %35, %39 : vector<8x128xf32>
    %41 = vector.broadcast %20 : vector<1x128xf32> to vector<8x128xf32>
    %42 = arith.mulf %40, %41 : vector<8x128xf32>
    %43 = vector.broadcast %22 : vector<1x128xf32> to vector<8x128xf32>
    %44 = arith.addf %42, %43 : vector<8x128xf32>
    %45 = arith.truncf %44 : vector<8x128xf32> to vector<8x128xbf16>
    %cst_22 = arith.constant 0.000000e+00 : f32
    %46 = vector.broadcast %cst_22 : f32 to vector<8x128xf32>
    %c0_23 = arith.constant 0 : index
    %c0_24 = arith.constant 0 : index
    %c0_25 = arith.constant 0 : index
    %c0_26 = arith.constant 0 : index
    %c0_27 = arith.constant 0 : index
    %47 = vector.load %arg5[%c0_23, %c0_24, %c0_25, %c0_26, %c0_27] : memref<2x3x4x32x128xbf16, #tpu.memory_space<vmem>>, vector<1x1x1x32x128xbf16>
    %48 = vector.shape_cast %47 : vector<1x1x1x32x128xbf16> to vector<32x128xbf16>
    %cst_28 = arith.constant dense<0.000000e+00> : vector<8x32xf32>
    %49 = tpu.matmul %45, %48, %cst_28 {dimension_numbers = #tpu.dot_dimension_numbers<[1], [1], [0], [0], [0, 0, 1, 0], [], []>} : vector<8x128xbf16>, vector<32x128xbf16>, vector<8x32xf32> -> vector<8x32xf32>
    %c0_29 = arith.constant 0 : index
    %c0_30 = arith.constant 0 : index
    %c0_31 = arith.constant 0 : index
    %c0_32 = arith.constant 0 : index
    %c0_33 = arith.constant 0 : index
    %50 = vector.load %arg6[%c0_29, %c0_30, %c0_31, %c0_32, %c0_33] : memref<2x3x4x1x32xf32, #tpu.memory_space<vmem>>, vector<1x1x1x1x32xf32>
    %51 = vector.shape_cast %50 : vector<1x1x1x1x32xf32> to vector<1x32xf32>
    %52 = vector.broadcast %51 : vector<1x32xf32> to vector<8x32xf32>
    %53 = arith.addf %49, %52 : vector<8x32xf32>
    %c0_34 = arith.constant 0 : index
    %c1 = arith.constant 1 : index
    %c0_35 = arith.constant 0 : index
    %c0_36 = arith.constant 0 : index
    %c0_37 = arith.constant 0 : index
    %54 = vector.load %arg5[%c0_34, %c1, %c0_35, %c0_36, %c0_37] : memref<2x3x4x32x128xbf16, #tpu.memory_space<vmem>>, vector<1x1x1x32x128xbf16>
    %55 = vector.shape_cast %54 : vector<1x1x1x32x128xbf16> to vector<32x128xbf16>
    %cst_38 = arith.constant dense<0.000000e+00> : vector<8x32xf32>
    %56 = tpu.matmul %45, %55, %cst_38 {dimension_numbers = #tpu.dot_dimension_numbers<[1], [1], [0], [0], [0, 0, 1, 0], [], []>} : vector<8x128xbf16>, vector<32x128xbf16>, vector<8x32xf32> -> vector<8x32xf32>
    %c0_39 = arith.constant 0 : index
    %c1_40 = arith.constant 1 : index
    %c0_41 = arith.constant 0 : index
    %c0_42 = arith.constant 0 : index
    %c0_43 = arith.constant 0 : index
    %57 = vector.load %arg6[%c0_39, %c1_40, %c0_41, %c0_42, %c0_43] : memref<2x3x4x1x32xf32, #tpu.memory_space<vmem>>, vector<1x1x1x1x32xf32>
    %58 = vector.shape_cast %57 : vector<1x1x1x1x32xf32> to vector<1x32xf32>
    %59 = vector.broadcast %58 : vector<1x32xf32> to vector<8x32xf32>
    %60 = arith.addf %56, %59 : vector<8x32xf32>
    %c0_44 = arith.constant 0 : index
    %c2 = arith.constant 2 : index
    %c0_45 = arith.constant 0 : index
    %c0_46 = arith.constant 0 : index
    %c0_47 = arith.constant 0 : index
    %61 = vector.load %arg5[%c0_44, %c2, %c0_45, %c0_46, %c0_47] : memref<2x3x4x32x128xbf16, #tpu.memory_space<vmem>>, vector<1x1x1x32x128xbf16>
    %62 = vector.shape_cast %61 : vector<1x1x1x32x128xbf16> to vector<32x128xbf16>
    %cst_48 = arith.constant dense<0.000000e+00> : vector<8x32xf32>
    %63 = tpu.matmul %45, %62, %cst_48 {dimension_numbers = #tpu.dot_dimension_numbers<[1], [1], [0], [0], [0, 0, 1, 0], [], []>} : vector<8x128xbf16>, vector<32x128xbf16>, vector<8x32xf32> -> vector<8x32xf32>
    %c0_49 = arith.constant 0 : index
    %c2_50 = arith.constant 2 : index
    %c0_51 = arith.constant 0 : index
    %c0_52 = arith.constant 0 : index
    %c0_53 = arith.constant 0 : index
    %64 = vector.load %arg6[%c0_49, %c2_50, %c0_51, %c0_52, %c0_53] : memref<2x3x4x1x32xf32, #tpu.memory_space<vmem>>, vector<1x1x1x1x32xf32>
    %65 = vector.shape_cast %64 : vector<1x1x1x1x32xf32> to vector<1x32xf32>
    %66 = vector.broadcast %65 : vector<1x32xf32> to vector<8x32xf32>
    %67 = arith.addf %63, %66 : vector<8x32xf32>
    %68 = arith.truncf %53 : vector<8x32xf32> to vector<8x32xbf16>
    %69 = arith.truncf %60 : vector<8x32xf32> to vector<8x32xbf16>
    %cst_54 = arith.constant dense<0.000000e+00> : vector<8x8xf32>
    %70 = tpu.matmul %68, %69, %cst_54 {dimension_numbers = #tpu.dot_dimension_numbers<[1], [1], [0], [0], [0, 0, 1, 0], [], []>} : vector<8x32xbf16>, vector<8x32xbf16>, vector<8x8xf32> -> vector<8x8xf32>
    %71 = vector.broadcast %18 : f32 to vector<8x8xf32>
    %72 = arith.mulf %70, %71 : vector<8x8xf32>
    %73 = arith.addf %72, %16 : vector<8x8xf32>
    %cst_55 = arith.constant dense<0xFF800000> : vector<8xf32>
    %74 = vector.multi_reduction <maximumf>, %73, %cst_55 [1] : vector<8x8xf32> to vector<8xf32>
    %75 = vector.shape_cast %74 : vector<8xf32> to vector<8x1xf32>
    %76 = vector.broadcast %75 : vector<8x1xf32> to vector<8x8xf32>
    %77 = arith.subf %73, %76 : vector<8x8xf32>
    %78 = math.exp %77 : vector<8x8xf32>
    %cst_56 = arith.constant dense<0.000000e+00> : vector<8xf32>
    %79 = vector.multi_reduction <add>, %78, %cst_56 [1] : vector<8x8xf32> to vector<8xf32>
    %80 = vector.shape_cast %79 : vector<8xf32> to vector<8x1xf32>
    %81 = tpu.reciprocal %80 {approx = true} : vector<8x1xf32> -> vector<8x1xf32>
    %82 = vector.broadcast %81 : vector<8x1xf32> to vector<8x8xf32>
    %83 = arith.mulf %78, %82 : vector<8x8xf32>
    %84 = arith.truncf %83 : vector<8x8xf32> to vector<8x8xbf16>
    %85 = arith.truncf %67 : vector<8x32xf32> to vector<8x32xbf16>
    %cst_57 = arith.constant dense<0.000000e+00> : vector<8x32xf32>
    %86 = tpu.matmul %84, %85, %cst_57 {dimension_numbers = #tpu.dot_dimension_numbers<[1], [0], [0], [1], [0, 0, 1, 1], [], []>} : vector<8x8xbf16>, vector<8x32xbf16>, vector<8x32xf32> -> vector<8x32xf32>
    %87 = arith.truncf %86 : vector<8x32xf32> to vector<8x32xbf16>
    %c0_58 = arith.constant 0 : index
    %c0_59 = arith.constant 0 : index
    %c0_60 = arith.constant 0 : index
    %c0_61 = arith.constant 0 : index
    %88 = vector.load %arg7[%c0_58, %c0_59, %c0_60, %c0_61] : memref<2x4x32x128xbf16, #tpu.memory_space<vmem>>, vector<1x1x32x128xbf16>
    %89 = vector.shape_cast %88 : vector<1x1x32x128xbf16> to vector<32x128xbf16>
    %cst_62 = arith.constant dense<0.000000e+00> : vector<8x128xf32>
    %90 = tpu.matmul %87, %89, %cst_62 {dimension_numbers = #tpu.dot_dimension_numbers<[1], [0], [0], [1], [0, 0, 1, 1], [], []>} : vector<8x32xbf16>, vector<32x128xbf16>, vector<8x128xf32> -> vector<8x128xf32>
    %91 = arith.addf %46, %90 : vector<8x128xf32>
    %c0_63 = arith.constant 0 : index
    %c0_64 = arith.constant 0 : index
    %c1_65 = arith.constant 1 : index
    %c0_66 = arith.constant 0 : index
    %c0_67 = arith.constant 0 : index
    %92 = vector.load %arg5[%c0_63, %c0_64, %c1_65, %c0_66, %c0_67] : memref<2x3x4x32x128xbf16, #tpu.memory_space<vmem>>, vector<1x1x1x32x128xbf16>
    %93 = vector.shape_cast %92 : vector<1x1x1x32x128xbf16> to vector<32x128xbf16>
    %cst_68 = arith.constant dense<0.000000e+00> : vector<8x32xf32>
    %94 = tpu.matmul %45, %93, %cst_68 {dimension_numbers = #tpu.dot_dimension_numbers<[1], [1], [0], [0], [0, 0, 1, 0], [], []>} : vector<8x128xbf16>, vector<32x128xbf16>, vector<8x32xf32> -> vector<8x32xf32>
    %c0_69 = arith.constant 0 : index
    %c0_70 = arith.constant 0 : index
    %c1_71 = arith.constant 1 : index
    %c0_72 = arith.constant 0 : index
    %c0_73 = arith.constant 0 : index
    %95 = vector.load %arg6[%c0_69, %c0_70, %c1_71, %c0_72, %c0_73] : memref<2x3x4x1x32xf32, #tpu.memory_space<vmem>>, vector<1x1x1x1x32xf32>
    %96 = vector.shape_cast %95 : vector<1x1x1x1x32xf32> to vector<1x32xf32>
    %97 = vector.broadcast %96 : vector<1x32xf32> to vector<8x32xf32>
    %98 = arith.addf %94, %97 : vector<8x32xf32>
    %c0_74 = arith.constant 0 : index
    %c1_75 = arith.constant 1 : index
    %c1_76 = arith.constant 1 : index
    %c0_77 = arith.constant 0 : index
    %c0_78 = arith.constant 0 : index
    %99 = vector.load %arg5[%c0_74, %c1_75, %c1_76, %c0_77, %c0_78] : memref<2x3x4x32x128xbf16, #tpu.memory_space<vmem>>, vector<1x1x1x32x128xbf16>
    %100 = vector.shape_cast %99 : vector<1x1x1x32x128xbf16> to vector<32x128xbf16>
    %cst_79 = arith.constant dense<0.000000e+00> : vector<8x32xf32>
    %101 = tpu.matmul %45, %100, %cst_79 {dimension_numbers = #tpu.dot_dimension_numbers<[1], [1], [0], [0], [0, 0, 1, 0], [], []>} : vector<8x128xbf16>, vector<32x128xbf16>, vector<8x32xf32> -> vector<8x32xf32>
    %c0_80 = arith.constant 0 : index
    %c1_81 = arith.constant 1 : index
    %c1_82 = arith.constant 1 : index
    %c0_83 = arith.constant 0 : index
    %c0_84 = arith.constant 0 : index
    %102 = vector.load %arg6[%c0_80, %c1_81, %c1_82, %c0_83, %c0_84] : memref<2x3x4x1x32xf32, #tpu.memory_space<vmem>>, vector<1x1x1x1x32xf32>
    %103 = vector.shape_cast %102 : vector<1x1x1x1x32xf32> to vector<1x32xf32>
    %104 = vector.broadcast %103 : vector<1x32xf32> to vector<8x32xf32>
    %105 = arith.addf %101, %104 : vector<8x32xf32>
    %c0_85 = arith.constant 0 : index
    %c2_86 = arith.constant 2 : index
    %c1_87 = arith.constant 1 : index
    %c0_88 = arith.constant 0 : index
    %c0_89 = arith.constant 0 : index
    %106 = vector.load %arg5[%c0_85, %c2_86, %c1_87, %c0_88, %c0_89] : memref<2x3x4x32x128xbf16, #tpu.memory_space<vmem>>, vector<1x1x1x32x128xbf16>
    %107 = vector.shape_cast %106 : vector<1x1x1x32x128xbf16> to vector<32x128xbf16>
    %cst_90 = arith.constant dense<0.000000e+00> : vector<8x32xf32>
    %108 = tpu.matmul %45, %107, %cst_90 {dimension_numbers = #tpu.dot_dimension_numbers<[1], [1], [0], [0], [0, 0, 1, 0], [], []>} : vector<8x128xbf16>, vector<32x128xbf16>, vector<8x32xf32> -> vector<8x32xf32>
    %c0_91 = arith.constant 0 : index
    %c2_92 = arith.constant 2 : index
    %c1_93 = arith.constant 1 : index
    %c0_94 = arith.constant 0 : index
    %c0_95 = arith.constant 0 : index
    %109 = vector.load %arg6[%c0_91, %c2_92, %c1_93, %c0_94, %c0_95] : memref<2x3x4x1x32xf32, #tpu.memory_space<vmem>>, vector<1x1x1x1x32xf32>
    %110 = vector.shape_cast %109 : vector<1x1x1x1x32xf32> to vector<1x32xf32>
    %111 = vector.broadcast %110 : vector<1x32xf32> to vector<8x32xf32>
    %112 = arith.addf %108, %111 : vector<8x32xf32>
    %113 = arith.truncf %98 : vector<8x32xf32> to vector<8x32xbf16>
    %114 = arith.truncf %105 : vector<8x32xf32> to vector<8x32xbf16>
    %cst_96 = arith.constant dense<0.000000e+00> : vector<8x8xf32>
    %115 = tpu.matmul %113, %114, %cst_96 {dimension_numbers = #tpu.dot_dimension_numbers<[1], [1], [0], [0], [0, 0, 1, 0], [], []>} : vector<8x32xbf16>, vector<8x32xbf16>, vector<8x8xf32> -> vector<8x8xf32>
    %116 = vector.broadcast %18 : f32 to vector<8x8xf32>
    %117 = arith.mulf %115, %116 : vector<8x8xf32>
    %118 = arith.addf %117, %16 : vector<8x8xf32>
    %cst_97 = arith.constant dense<0xFF800000> : vector<8xf32>
    %119 = vector.multi_reduction <maximumf>, %118, %cst_97 [1] : vector<8x8xf32> to vector<8xf32>
    %120 = vector.shape_cast %119 : vector<8xf32> to vector<8x1xf32>
    %121 = vector.broadcast %120 : vector<8x1xf32> to vector<8x8xf32>
    %122 = arith.subf %118, %121 : vector<8x8xf32>
    %123 = math.exp %122 : vector<8x8xf32>
    %cst_98 = arith.constant dense<0.000000e+00> : vector<8xf32>
    %124 = vector.multi_reduction <add>, %123, %cst_98 [1] : vector<8x8xf32> to vector<8xf32>
    %125 = vector.shape_cast %124 : vector<8xf32> to vector<8x1xf32>
    %126 = tpu.reciprocal %125 {approx = true} : vector<8x1xf32> -> vector<8x1xf32>
    %127 = vector.broadcast %126 : vector<8x1xf32> to vector<8x8xf32>
    %128 = arith.mulf %123, %127 : vector<8x8xf32>
    %129 = arith.truncf %128 : vector<8x8xf32> to vector<8x8xbf16>
    %130 = arith.truncf %112 : vector<8x32xf32> to vector<8x32xbf16>
    %cst_99 = arith.constant dense<0.000000e+00> : vector<8x32xf32>
    %131 = tpu.matmul %129, %130, %cst_99 {dimension_numbers = #tpu.dot_dimension_numbers<[1], [0], [0], [1], [0, 0, 1, 1], [], []>} : vector<8x8xbf16>, vector<8x32xbf16>, vector<8x32xf32> -> vector<8x32xf32>
    %132 = arith.truncf %131 : vector<8x32xf32> to vector<8x32xbf16>
    %c0_100 = arith.constant 0 : index
    %c1_101 = arith.constant 1 : index
    %c0_102 = arith.constant 0 : index
    %c0_103 = arith.constant 0 : index
    %133 = vector.load %arg7[%c0_100, %c1_101, %c0_102, %c0_103] : memref<2x4x32x128xbf16, #tpu.memory_space<vmem>>, vector<1x1x32x128xbf16>
    %134 = vector.shape_cast %133 : vector<1x1x32x128xbf16> to vector<32x128xbf16>
    %cst_104 = arith.constant dense<0.000000e+00> : vector<8x128xf32>
    %135 = tpu.matmul %132, %134, %cst_104 {dimension_numbers = #tpu.dot_dimension_numbers<[1], [0], [0], [1], [0, 0, 1, 1], [], []>} : vector<8x32xbf16>, vector<32x128xbf16>, vector<8x128xf32> -> vector<8x128xf32>
    %136 = arith.addf %91, %135 : vector<8x128xf32>
    %c0_105 = arith.constant 0 : index
    %c0_106 = arith.constant 0 : index
    %c2_107 = arith.constant 2 : index
    %c0_108 = arith.constant 0 : index
    %c0_109 = arith.constant 0 : index
    %137 = vector.load %arg5[%c0_105, %c0_106, %c2_107, %c0_108, %c0_109] : memref<2x3x4x32x128xbf16, #tpu.memory_space<vmem>>, vector<1x1x1x32x128xbf16>
    %138 = vector.shape_cast %137 : vector<1x1x1x32x128xbf16> to vector<32x128xbf16>
    %cst_110 = arith.constant dense<0.000000e+00> : vector<8x32xf32>
    %139 = tpu.matmul %45, %138, %cst_110 {dimension_numbers = #tpu.dot_dimension_numbers<[1], [1], [0], [0], [0, 0, 1, 0], [], []>} : vector<8x128xbf16>, vector<32x128xbf16>, vector<8x32xf32> -> vector<8x32xf32>
    %c0_111 = arith.constant 0 : index
    %c0_112 = arith.constant 0 : index
    %c2_113 = arith.constant 2 : index
    %c0_114 = arith.constant 0 : index
    %c0_115 = arith.constant 0 : index
    %140 = vector.load %arg6[%c0_111, %c0_112, %c2_113, %c0_114, %c0_115] : memref<2x3x4x1x32xf32, #tpu.memory_space<vmem>>, vector<1x1x1x1x32xf32>
    %141 = vector.shape_cast %140 : vector<1x1x1x1x32xf32> to vector<1x32xf32>
    %142 = vector.broadcast %141 : vector<1x32xf32> to vector<8x32xf32>
    %143 = arith.addf %139, %142 : vector<8x32xf32>
    %c0_116 = arith.constant 0 : index
    %c1_117 = arith.constant 1 : index
    %c2_118 = arith.constant 2 : index
    %c0_119 = arith.constant 0 : index
    %c0_120 = arith.constant 0 : index
    %144 = vector.load %arg5[%c0_116, %c1_117, %c2_118, %c0_119, %c0_120] : memref<2x3x4x32x128xbf16, #tpu.memory_space<vmem>>, vector<1x1x1x32x128xbf16>
    %145 = vector.shape_cast %144 : vector<1x1x1x32x128xbf16> to vector<32x128xbf16>
    %cst_121 = arith.constant dense<0.000000e+00> : vector<8x32xf32>
    %146 = tpu.matmul %45, %145, %cst_121 {dimension_numbers = #tpu.dot_dimension_numbers<[1], [1], [0], [0], [0, 0, 1, 0], [], []>} : vector<8x128xbf16>, vector<32x128xbf16>, vector<8x32xf32> -> vector<8x32xf32>
    %c0_122 = arith.constant 0 : index
    %c1_123 = arith.constant 1 : index
    %c2_124 = arith.constant 2 : index
    %c0_125 = arith.constant 0 : index
    %c0_126 = arith.constant 0 : index
    %147 = vector.load %arg6[%c0_122, %c1_123, %c2_124, %c0_125, %c0_126] : memref<2x3x4x1x32xf32, #tpu.memory_space<vmem>>, vector<1x1x1x1x32xf32>
    %148 = vector.shape_cast %147 : vector<1x1x1x1x32xf32> to vector<1x32xf32>
    %149 = vector.broadcast %148 : vector<1x32xf32> to vector<8x32xf32>
    %150 = arith.addf %146, %149 : vector<8x32xf32>
    %c0_127 = arith.constant 0 : index
    %c2_128 = arith.constant 2 : index
    %c2_129 = arith.constant 2 : index
    %c0_130 = arith.constant 0 : index
    %c0_131 = arith.constant 0 : index
    %151 = vector.load %arg5[%c0_127, %c2_128, %c2_129, %c0_130, %c0_131] : memref<2x3x4x32x128xbf16, #tpu.memory_space<vmem>>, vector<1x1x1x32x128xbf16>
    %152 = vector.shape_cast %151 : vector<1x1x1x32x128xbf16> to vector<32x128xbf16>
    %cst_132 = arith.constant dense<0.000000e+00> : vector<8x32xf32>
    %153 = tpu.matmul %45, %152, %cst_132 {dimension_numbers = #tpu.dot_dimension_numbers<[1], [1], [0], [0], [0, 0, 1, 0], [], []>} : vector<8x128xbf16>, vector<32x128xbf16>, vector<8x32xf32> -> vector<8x32xf32>
    %c0_133 = arith.constant 0 : index
    %c2_134 = arith.constant 2 : index
    %c2_135 = arith.constant 2 : index
    %c0_136 = arith.constant 0 : index
    %c0_137 = arith.constant 0 : index
    %154 = vector.load %arg6[%c0_133, %c2_134, %c2_135, %c0_136, %c0_137] : memref<2x3x4x1x32xf32, #tpu.memory_space<vmem>>, vector<1x1x1x1x32xf32>
    %155 = vector.shape_cast %154 : vector<1x1x1x1x32xf32> to vector<1x32xf32>
    %156 = vector.broadcast %155 : vector<1x32xf32> to vector<8x32xf32>
    %157 = arith.addf %153, %156 : vector<8x32xf32>
    %158 = arith.truncf %143 : vector<8x32xf32> to vector<8x32xbf16>
    %159 = arith.truncf %150 : vector<8x32xf32> to vector<8x32xbf16>
    %cst_138 = arith.constant dense<0.000000e+00> : vector<8x8xf32>
    %160 = tpu.matmul %158, %159, %cst_138 {dimension_numbers = #tpu.dot_dimension_numbers<[1], [1], [0], [0], [0, 0, 1, 0], [], []>} : vector<8x32xbf16>, vector<8x32xbf16>, vector<8x8xf32> -> vector<8x8xf32>
    %161 = vector.broadcast %18 : f32 to vector<8x8xf32>
    %162 = arith.mulf %160, %161 : vector<8x8xf32>
    %163 = arith.addf %162, %16 : vector<8x8xf32>
    %cst_139 = arith.constant dense<0xFF800000> : vector<8xf32>
    %164 = vector.multi_reduction <maximumf>, %163, %cst_139 [1] : vector<8x8xf32> to vector<8xf32>
    %165 = vector.shape_cast %164 : vector<8xf32> to vector<8x1xf32>
    %166 = vector.broadcast %165 : vector<8x1xf32> to vector<8x8xf32>
    %167 = arith.subf %163, %166 : vector<8x8xf32>
    %168 = math.exp %167 : vector<8x8xf32>
    %cst_140 = arith.constant dense<0.000000e+00> : vector<8xf32>
    %169 = vector.multi_reduction <add>, %168, %cst_140 [1] : vector<8x8xf32> to vector<8xf32>
    %170 = vector.shape_cast %169 : vector<8xf32> to vector<8x1xf32>
    %171 = tpu.reciprocal %170 {approx = true} : vector<8x1xf32> -> vector<8x1xf32>
    %172 = vector.broadcast %171 : vector<8x1xf32> to vector<8x8xf32>
    %173 = arith.mulf %168, %172 : vector<8x8xf32>
    %174 = arith.truncf %173 : vector<8x8xf32> to vector<8x8xbf16>
    %175 = arith.truncf %157 : vector<8x32xf32> to vector<8x32xbf16>
    %cst_141 = arith.constant dense<0.000000e+00> : vector<8x32xf32>
    %176 = tpu.matmul %174, %175, %cst_141 {dimension_numbers = #tpu.dot_dimension_numbers<[1], [0], [0], [1], [0, 0, 1, 1], [], []>} : vector<8x8xbf16>, vector<8x32xbf16>, vector<8x32xf32> -> vector<8x32xf32>
    %177 = arith.truncf %176 : vector<8x32xf32> to vector<8x32xbf16>
    %c0_142 = arith.constant 0 : index
    %c2_143 = arith.constant 2 : index
    %c0_144 = arith.constant 0 : index
    %c0_145 = arith.constant 0 : index
    %178 = vector.load %arg7[%c0_142, %c2_143, %c0_144, %c0_145] : memref<2x4x32x128xbf16, #tpu.memory_space<vmem>>, vector<1x1x32x128xbf16>
    %179 = vector.shape_cast %178 : vector<1x1x32x128xbf16> to vector<32x128xbf16>
    %cst_146 = arith.constant dense<0.000000e+00> : vector<8x128xf32>
    %180 = tpu.matmul %177, %179, %cst_146 {dimension_numbers = #tpu.dot_dimension_numbers<[1], [0], [0], [1], [0, 0, 1, 1], [], []>} : vector<8x32xbf16>, vector<32x128xbf16>, vector<8x128xf32> -> vector<8x128xf32>
    %181 = arith.addf %136, %180 : vector<8x128xf32>
    %c0_147 = arith.constant 0 : index
    %c0_148 = arith.constant 0 : index
    %c3 = arith.constant 3 : index
    %c0_149 = arith.constant 0 : index
    %c0_150 = arith.constant 0 : index
    %182 = vector.load %arg5[%c0_147, %c0_148, %c3, %c0_149, %c0_150] : memref<2x3x4x32x128xbf16, #tpu.memory_space<vmem>>, vector<1x1x1x32x128xbf16>
    %183 = vector.shape_cast %182 : vector<1x1x1x32x128xbf16> to vector<32x128xbf16>
    %cst_151 = arith.constant dense<0.000000e+00> : vector<8x32xf32>
    %184 = tpu.matmul %45, %183, %cst_151 {dimension_numbers = #tpu.dot_dimension_numbers<[1], [1], [0], [0], [0, 0, 1, 0], [], []>} : vector<8x128xbf16>, vector<32x128xbf16>, vector<8x32xf32> -> vector<8x32xf32>
    %c0_152 = arith.constant 0 : index
    %c0_153 = arith.constant 0 : index
    %c3_154 = arith.constant 3 : index
    %c0_155 = arith.constant 0 : index
    %c0_156 = arith.constant 0 : index
    %185 = vector.load %arg6[%c0_152, %c0_153, %c3_154, %c0_155, %c0_156] : memref<2x3x4x1x32xf32, #tpu.memory_space<vmem>>, vector<1x1x1x1x32xf32>
    %186 = vector.shape_cast %185 : vector<1x1x1x1x32xf32> to vector<1x32xf32>
    %187 = vector.broadcast %186 : vector<1x32xf32> to vector<8x32xf32>
    %188 = arith.addf %184, %187 : vector<8x32xf32>
    %c0_157 = arith.constant 0 : index
    %c1_158 = arith.constant 1 : index
    %c3_159 = arith.constant 3 : index
    %c0_160 = arith.constant 0 : index
    %c0_161 = arith.constant 0 : index
    %189 = vector.load %arg5[%c0_157, %c1_158, %c3_159, %c0_160, %c0_161] : memref<2x3x4x32x128xbf16, #tpu.memory_space<vmem>>, vector<1x1x1x32x128xbf16>
    %190 = vector.shape_cast %189 : vector<1x1x1x32x128xbf16> to vector<32x128xbf16>
    %cst_162 = arith.constant dense<0.000000e+00> : vector<8x32xf32>
    %191 = tpu.matmul %45, %190, %cst_162 {dimension_numbers = #tpu.dot_dimension_numbers<[1], [1], [0], [0], [0, 0, 1, 0], [], []>} : vector<8x128xbf16>, vector<32x128xbf16>, vector<8x32xf32> -> vector<8x32xf32>
    %c0_163 = arith.constant 0 : index
    %c1_164 = arith.constant 1 : index
    %c3_165 = arith.constant 3 : index
    %c0_166 = arith.constant 0 : index
    %c0_167 = arith.constant 0 : index
    %192 = vector.load %arg6[%c0_163, %c1_164, %c3_165, %c0_166, %c0_167] : memref<2x3x4x1x32xf32, #tpu.memory_space<vmem>>, vector<1x1x1x1x32xf32>
    %193 = vector.shape_cast %192 : vector<1x1x1x1x32xf32> to vector<1x32xf32>
    %194 = vector.broadcast %193 : vector<1x32xf32> to vector<8x32xf32>
    %195 = arith.addf %191, %194 : vector<8x32xf32>
    %c0_168 = arith.constant 0 : index
    %c2_169 = arith.constant 2 : index
    %c3_170 = arith.constant 3 : index
    %c0_171 = arith.constant 0 : index
    %c0_172 = arith.constant 0 : index
    %196 = vector.load %arg5[%c0_168, %c2_169, %c3_170, %c0_171, %c0_172] : memref<2x3x4x32x128xbf16, #tpu.memory_space<vmem>>, vector<1x1x1x32x128xbf16>
    %197 = vector.shape_cast %196 : vector<1x1x1x32x128xbf16> to vector<32x128xbf16>
    %cst_173 = arith.constant dense<0.000000e+00> : vector<8x32xf32>
    %198 = tpu.matmul %45, %197, %cst_173 {dimension_numbers = #tpu.dot_dimension_numbers<[1], [1], [0], [0], [0, 0, 1, 0], [], []>} : vector<8x128xbf16>, vector<32x128xbf16>, vector<8x32xf32> -> vector<8x32xf32>
    %c0_174 = arith.constant 0 : index
    %c2_175 = arith.constant 2 : index
    %c3_176 = arith.constant 3 : index
    %c0_177 = arith.constant 0 : index
    %c0_178 = arith.constant 0 : index
    %199 = vector.load %arg6[%c0_174, %c2_175, %c3_176, %c0_177, %c0_178] : memref<2x3x4x1x32xf32, #tpu.memory_space<vmem>>, vector<1x1x1x1x32xf32>
    %200 = vector.shape_cast %199 : vector<1x1x1x1x32xf32> to vector<1x32xf32>
    %201 = vector.broadcast %200 : vector<1x32xf32> to vector<8x32xf32>
    %202 = arith.addf %198, %201 : vector<8x32xf32>
    %203 = arith.truncf %188 : vector<8x32xf32> to vector<8x32xbf16>
    %204 = arith.truncf %195 : vector<8x32xf32> to vector<8x32xbf16>
    %cst_179 = arith.constant dense<0.000000e+00> : vector<8x8xf32>
    %205 = tpu.matmul %203, %204, %cst_179 {dimension_numbers = #tpu.dot_dimension_numbers<[1], [1], [0], [0], [0, 0, 1, 0], [], []>} : vector<8x32xbf16>, vector<8x32xbf16>, vector<8x8xf32> -> vector<8x8xf32>
    %206 = vector.broadcast %18 : f32 to vector<8x8xf32>
    %207 = arith.mulf %205, %206 : vector<8x8xf32>
    %208 = arith.addf %207, %16 : vector<8x8xf32>
    %cst_180 = arith.constant dense<0xFF800000> : vector<8xf32>
    %209 = vector.multi_reduction <maximumf>, %208, %cst_180 [1] : vector<8x8xf32> to vector<8xf32>
    %210 = vector.shape_cast %209 : vector<8xf32> to vector<8x1xf32>
    %211 = vector.broadcast %210 : vector<8x1xf32> to vector<8x8xf32>
    %212 = arith.subf %208, %211 : vector<8x8xf32>
    %213 = math.exp %212 : vector<8x8xf32>
    %cst_181 = arith.constant dense<0.000000e+00> : vector<8xf32>
    %214 = vector.multi_reduction <add>, %213, %cst_181 [1] : vector<8x8xf32> to vector<8xf32>
    %215 = vector.shape_cast %214 : vector<8xf32> to vector<8x1xf32>
    %216 = tpu.reciprocal %215 {approx = true} : vector<8x1xf32> -> vector<8x1xf32>
    %217 = vector.broadcast %216 : vector<8x1xf32> to vector<8x8xf32>
    %218 = arith.mulf %213, %217 : vector<8x8xf32>
    %219 = arith.truncf %218 : vector<8x8xf32> to vector<8x8xbf16>
    %220 = arith.truncf %202 : vector<8x32xf32> to vector<8x32xbf16>
    %cst_182 = arith.constant dense<0.000000e+00> : vector<8x32xf32>
    %221 = tpu.matmul %219, %220, %cst_182 {dimension_numbers = #tpu.dot_dimension_numbers<[1], [0], [0], [1], [0, 0, 1, 1], [], []>} : vector<8x8xbf16>, vector<8x32xbf16>, vector<8x32xf32> -> vector<8x32xf32>
    %222 = arith.truncf %221 : vector<8x32xf32> to vector<8x32xbf16>
    %c0_183 = arith.constant 0 : index
    %c3_184 = arith.constant 3 : index
    %c0_185 = arith.constant 0 : index
    %c0_186 = arith.constant 0 : index
    %223 = vector.load %arg7[%c0_183, %c3_184, %c0_185, %c0_186] : memref<2x4x32x128xbf16, #tpu.memory_space<vmem>>, vector<1x1x32x128xbf16>
    %224 = vector.shape_cast %223 : vector<1x1x32x128xbf16> to vector<32x128xbf16>
    %cst_187 = arith.constant dense<0.000000e+00> : vector<8x128xf32>
    %225 = tpu.matmul %222, %224, %cst_187 {dimension_numbers = #tpu.dot_dimension_numbers<[1], [0], [0], [1], [0, 0, 1, 1], [], []>} : vector<8x32xbf16>, vector<32x128xbf16>, vector<8x128xf32> -> vector<8x128xf32>
    %226 = arith.addf %181, %225 : vector<8x128xf32>
    %c0_188 = arith.constant 0 : index
    %c0_189 = arith.constant 0 : index
    %c0_190 = arith.constant 0 : index
    %227 = vector.load %arg8[%c0_188, %c0_189, %c0_190] : memref<2x1x128xf32, #tpu.memory_space<vmem>>, vector<1x1x128xf32>
    %228 = vector.shape_cast %227 : vector<1x1x128xf32> to vector<1x128xf32>
    %229 = vector.broadcast %228 : vector<1x128xf32> to vector<8x128xf32>
    %230 = arith.addf %226, %229 : vector<8x128xf32>
    %231 = arith.addf %10, %230 : vector<8x128xf32>
    %c0_191 = arith.constant 0 : index
    %c0_192 = arith.constant 0 : index
    %c0_193 = arith.constant 0 : index
    %232 = vector.load %arg9[%c0_191, %c0_192, %c0_193] : memref<2x1x128xf32, #tpu.memory_space<vmem>>, vector<1x1x128xf32>
    %233 = vector.shape_cast %232 : vector<1x1x128xf32> to vector<1x128xf32>
    %c0_194 = arith.constant 0 : index
    %c0_195 = arith.constant 0 : index
    %c0_196 = arith.constant 0 : index
    %234 = vector.load %arg10[%c0_194, %c0_195, %c0_196] : memref<2x1x128xf32, #tpu.memory_space<vmem>>, vector<1x1x128xf32>
    %235 = vector.shape_cast %234 : vector<1x1x128xf32> to vector<1x128xf32>
    %cst_197 = arith.constant dense<0.000000e+00> : vector<8xf32>
    %236 = vector.multi_reduction <add>, %231, %cst_197 [1] : vector<8x128xf32> to vector<8xf32>
    %237 = vector.shape_cast %236 : vector<8xf32> to vector<8x1xf32>
    %cst_198 = arith.constant 1.280000e+02 : f32
    %238 = vector.broadcast %cst_198 : f32 to vector<8x1xf32>
    %239 = arith.divf %237, %238 : vector<8x1xf32>
    %240 = vector.broadcast %239 : vector<8x1xf32> to vector<8x128xf32>
    %241 = arith.subf %231, %240 : vector<8x128xf32>
    %242 = arith.mulf %241, %241 : vector<8x128xf32>
    %cst_199 = arith.constant dense<0.000000e+00> : vector<8xf32>
    %243 = vector.multi_reduction <add>, %242, %cst_199 [1] : vector<8x128xf32> to vector<8xf32>
    %244 = vector.shape_cast %243 : vector<8xf32> to vector<8x1xf32>
    %cst_200 = arith.constant 1.280000e+02 : f32
    %245 = vector.broadcast %cst_200 : f32 to vector<8x1xf32>
    %246 = arith.divf %244, %245 : vector<8x1xf32>
    %247 = vector.broadcast %239 : vector<8x1xf32> to vector<8x128xf32>
    %248 = arith.subf %231, %247 : vector<8x128xf32>
    %cst_201 = arith.constant 9.99999974E-6 : f32
    %249 = vector.broadcast %cst_201 : f32 to vector<8x1xf32>
    %250 = arith.addf %246, %249 : vector<8x1xf32>
    %251 = math.rsqrt %250 : vector<8x1xf32>
    %252 = vector.broadcast %251 : vector<8x1xf32> to vector<8x128xf32>
    %253 = arith.mulf %248, %252 : vector<8x128xf32>
    %254 = vector.broadcast %233 : vector<1x128xf32> to vector<8x128xf32>
    %255 = arith.mulf %253, %254 : vector<8x128xf32>
    %256 = vector.broadcast %235 : vector<1x128xf32> to vector<8x128xf32>
    %257 = arith.addf %255, %256 : vector<8x128xf32>
    %258 = arith.truncf %257 : vector<8x128xf32> to vector<8x128xbf16>
    %c0_202 = arith.constant 0 : index
    %c0_203 = arith.constant 0 : index
    %c0_204 = arith.constant 0 : index
    %259 = vector.load %arg11[%c0_202, %c0_203, %c0_204] : memref<2x128x512xbf16, #tpu.memory_space<vmem>>, vector<1x128x512xbf16>
    %260 = vector.shape_cast %259 : vector<1x128x512xbf16> to vector<128x512xbf16>
    %cst_205 = arith.constant dense<0.000000e+00> : vector<8x512xf32>
    %261 = tpu.matmul %258, %260, %cst_205 {dimension_numbers = #tpu.dot_dimension_numbers<[1], [0], [0], [1], [0, 0, 1, 1], [], []>} : vector<8x128xbf16>, vector<128x512xbf16>, vector<8x512xf32> -> vector<8x512xf32>
    %c0_206 = arith.constant 0 : index
    %c0_207 = arith.constant 0 : index
    %c0_208 = arith.constant 0 : index
    %262 = vector.load %arg12[%c0_206, %c0_207, %c0_208] : memref<2x1x512xf32, #tpu.memory_space<vmem>>, vector<1x1x512xf32>
    %263 = vector.shape_cast %262 : vector<1x1x512xf32> to vector<1x512xf32>
    %264 = vector.broadcast %263 : vector<1x512xf32> to vector<8x512xf32>
    %265 = arith.addf %261, %264 : vector<8x512xf32>
    %266 = arith.mulf %265, %265 : vector<8x512xf32>
    %267 = arith.mulf %265, %266 : vector<8x512xf32>
    %cst_209 = arith.constant 4.471500e-02 : f32
    %268 = vector.broadcast %cst_209 : f32 to vector<8x512xf32>
    %269 = arith.mulf %268, %267 : vector<8x512xf32>
    %270 = arith.addf %265, %269 : vector<8x512xf32>
    %cst_210 = arith.constant 0.797884583 : f32
    %271 = vector.broadcast %cst_210 : f32 to vector<8x512xf32>
    %272 = arith.mulf %271, %270 : vector<8x512xf32>
    %273 = math.tanh %272 : vector<8x512xf32>
    %cst_211 = arith.constant 1.000000e+00 : f32
    %274 = vector.broadcast %cst_211 : f32 to vector<8x512xf32>
    %275 = arith.addf %274, %273 : vector<8x512xf32>
    %cst_212 = arith.constant 5.000000e-01 : f32
    %276 = vector.broadcast %cst_212 : f32 to vector<8x512xf32>
    %277 = arith.mulf %276, %275 : vector<8x512xf32>
    %278 = arith.mulf %265, %277 : vector<8x512xf32>
    %279 = arith.truncf %278 : vector<8x512xf32> to vector<8x512xbf16>
    %c0_213 = arith.constant 0 : index
    %c0_214 = arith.constant 0 : index
    %c0_215 = arith.constant 0 : index
    %280 = vector.load %arg13[%c0_213, %c0_214, %c0_215] : memref<2x512x128xbf16, #tpu.memory_space<vmem>>, vector<1x512x128xbf16>
    %281 = vector.shape_cast %280 : vector<1x512x128xbf16> to vector<512x128xbf16>
    %cst_216 = arith.constant dense<0.000000e+00> : vector<8x128xf32>
    %282 = tpu.matmul %279, %281, %cst_216 {dimension_numbers = #tpu.dot_dimension_numbers<[1], [0], [0], [1], [0, 0, 1, 1], [], []>} : vector<8x512xbf16>, vector<512x128xbf16>, vector<8x128xf32> -> vector<8x128xf32>
    %c0_217 = arith.constant 0 : index
    %c0_218 = arith.constant 0 : index
    %c0_219 = arith.constant 0 : index
    %283 = vector.load %arg14[%c0_217, %c0_218, %c0_219] : memref<2x1x128xf32, #tpu.memory_space<vmem>>, vector<1x1x128xf32>
    %284 = vector.shape_cast %283 : vector<1x1x128xf32> to vector<1x128xf32>
    %285 = vector.broadcast %284 : vector<1x128xf32> to vector<8x128xf32>
    %286 = arith.addf %282, %285 : vector<8x128xf32>
    %287 = arith.addf %231, %286 : vector<8x128xf32>
    %c1_220 = arith.constant 1 : index
    %c0_221 = arith.constant 0 : index
    %c0_222 = arith.constant 0 : index
    %288 = vector.load %arg3[%c1_220, %c0_221, %c0_222] : memref<2x1x128xf32, #tpu.memory_space<vmem>>, vector<1x1x128xf32>
    %289 = vector.shape_cast %288 : vector<1x1x128xf32> to vector<1x128xf32>
    %c1_223 = arith.constant 1 : index
    %c0_224 = arith.constant 0 : index
    %c0_225 = arith.constant 0 : index
    %290 = vector.load %arg4[%c1_223, %c0_224, %c0_225] : memref<2x1x128xf32, #tpu.memory_space<vmem>>, vector<1x1x128xf32>
    %291 = vector.shape_cast %290 : vector<1x1x128xf32> to vector<1x128xf32>
    %cst_226 = arith.constant dense<0.000000e+00> : vector<8xf32>
    %292 = vector.multi_reduction <add>, %287, %cst_226 [1] : vector<8x128xf32> to vector<8xf32>
    %293 = vector.shape_cast %292 : vector<8xf32> to vector<8x1xf32>
    %cst_227 = arith.constant 1.280000e+02 : f32
    %294 = vector.broadcast %cst_227 : f32 to vector<8x1xf32>
    %295 = arith.divf %293, %294 : vector<8x1xf32>
    %296 = vector.broadcast %295 : vector<8x1xf32> to vector<8x128xf32>
    %297 = arith.subf %287, %296 : vector<8x128xf32>
    %298 = arith.mulf %297, %297 : vector<8x128xf32>
    %cst_228 = arith.constant dense<0.000000e+00> : vector<8xf32>
    %299 = vector.multi_reduction <add>, %298, %cst_228 [1] : vector<8x128xf32> to vector<8xf32>
    %300 = vector.shape_cast %299 : vector<8xf32> to vector<8x1xf32>
    %cst_229 = arith.constant 1.280000e+02 : f32
    %301 = vector.broadcast %cst_229 : f32 to vector<8x1xf32>
    %302 = arith.divf %300, %301 : vector<8x1xf32>
    %303 = vector.broadcast %295 : vector<8x1xf32> to vector<8x128xf32>
    %304 = arith.subf %287, %303 : vector<8x128xf32>
    %cst_230 = arith.constant 9.99999974E-6 : f32
    %305 = vector.broadcast %cst_230 : f32 to vector<8x1xf32>
    %306 = arith.addf %302, %305 : vector<8x1xf32>
    %307 = math.rsqrt %306 : vector<8x1xf32>
    %308 = vector.broadcast %307 : vector<8x1xf32> to vector<8x128xf32>
    %309 = arith.mulf %304, %308 : vector<8x128xf32>
    %310 = vector.broadcast %289 : vector<1x128xf32> to vector<8x128xf32>
    %311 = arith.mulf %309, %310 : vector<8x128xf32>
    %312 = vector.broadcast %291 : vector<1x128xf32> to vector<8x128xf32>
    %313 = arith.addf %311, %312 : vector<8x128xf32>
    %314 = arith.truncf %313 : vector<8x128xf32> to vector<8x128xbf16>
    %315 = vector.extract_strided_slice %314 {offsets = [7, 0], sizes = [1, 128], strides = [1, 1]} : vector<8x128xbf16> to vector<1x128xbf16>
    %cst_231 = arith.constant 0.000000e+00 : f32
    %316 = vector.broadcast %cst_231 : f32 to vector<1x128xf32>
    %c1_232 = arith.constant 1 : index
    %c0_233 = arith.constant 0 : index
    %c0_234 = arith.constant 0 : index
    %c0_235 = arith.constant 0 : index
    %c0_236 = arith.constant 0 : index
    %317 = vector.load %arg5[%c1_232, %c0_233, %c0_234, %c0_235, %c0_236] : memref<2x3x4x32x128xbf16, #tpu.memory_space<vmem>>, vector<1x1x1x32x128xbf16>
    %318 = vector.shape_cast %317 : vector<1x1x1x32x128xbf16> to vector<32x128xbf16>
    %cst_237 = arith.constant dense<0.000000e+00> : vector<1x32xf32>
    %319 = tpu.matmul %315, %318, %cst_237 {dimension_numbers = #tpu.dot_dimension_numbers<[1], [1], [0], [0], [0, 0, 1, 0], [], []>} : vector<1x128xbf16>, vector<32x128xbf16>, vector<1x32xf32> -> vector<1x32xf32>
    %c1_238 = arith.constant 1 : index
    %c0_239 = arith.constant 0 : index
    %c0_240 = arith.constant 0 : index
    %c0_241 = arith.constant 0 : index
    %c0_242 = arith.constant 0 : index
    %320 = vector.load %arg6[%c1_238, %c0_239, %c0_240, %c0_241, %c0_242] : memref<2x3x4x1x32xf32, #tpu.memory_space<vmem>>, vector<1x1x1x1x32xf32>
    %321 = vector.shape_cast %320 : vector<1x1x1x1x32xf32> to vector<1x32xf32>
    %322 = arith.addf %319, %321 : vector<1x32xf32>
    %c1_243 = arith.constant 1 : index
    %c1_244 = arith.constant 1 : index
    %c0_245 = arith.constant 0 : index
    %c0_246 = arith.constant 0 : index
    %c0_247 = arith.constant 0 : index
    %323 = vector.load %arg5[%c1_243, %c1_244, %c0_245, %c0_246, %c0_247] : memref<2x3x4x32x128xbf16, #tpu.memory_space<vmem>>, vector<1x1x1x32x128xbf16>
    %324 = vector.shape_cast %323 : vector<1x1x1x32x128xbf16> to vector<32x128xbf16>
    %cst_248 = arith.constant dense<0.000000e+00> : vector<8x32xf32>
    %325 = tpu.matmul %314, %324, %cst_248 {dimension_numbers = #tpu.dot_dimension_numbers<[1], [1], [0], [0], [0, 0, 1, 0], [], []>} : vector<8x128xbf16>, vector<32x128xbf16>, vector<8x32xf32> -> vector<8x32xf32>
    %c1_249 = arith.constant 1 : index
    %c1_250 = arith.constant 1 : index
    %c0_251 = arith.constant 0 : index
    %c0_252 = arith.constant 0 : index
    %c0_253 = arith.constant 0 : index
    %326 = vector.load %arg6[%c1_249, %c1_250, %c0_251, %c0_252, %c0_253] : memref<2x3x4x1x32xf32, #tpu.memory_space<vmem>>, vector<1x1x1x1x32xf32>
    %327 = vector.shape_cast %326 : vector<1x1x1x1x32xf32> to vector<1x32xf32>
    %328 = vector.broadcast %327 : vector<1x32xf32> to vector<8x32xf32>
    %329 = arith.addf %325, %328 : vector<8x32xf32>
    %c1_254 = arith.constant 1 : index
    %c2_255 = arith.constant 2 : index
    %c0_256 = arith.constant 0 : index
    %c0_257 = arith.constant 0 : index
    %c0_258 = arith.constant 0 : index
    %330 = vector.load %arg5[%c1_254, %c2_255, %c0_256, %c0_257, %c0_258] : memref<2x3x4x32x128xbf16, #tpu.memory_space<vmem>>, vector<1x1x1x32x128xbf16>
    %331 = vector.shape_cast %330 : vector<1x1x1x32x128xbf16> to vector<32x128xbf16>
    %cst_259 = arith.constant dense<0.000000e+00> : vector<8x32xf32>
    %332 = tpu.matmul %314, %331, %cst_259 {dimension_numbers = #tpu.dot_dimension_numbers<[1], [1], [0], [0], [0, 0, 1, 0], [], []>} : vector<8x128xbf16>, vector<32x128xbf16>, vector<8x32xf32> -> vector<8x32xf32>
    %c1_260 = arith.constant 1 : index
    %c2_261 = arith.constant 2 : index
    %c0_262 = arith.constant 0 : index
    %c0_263 = arith.constant 0 : index
    %c0_264 = arith.constant 0 : index
    %333 = vector.load %arg6[%c1_260, %c2_261, %c0_262, %c0_263, %c0_264] : memref<2x3x4x1x32xf32, #tpu.memory_space<vmem>>, vector<1x1x1x1x32xf32>
    %334 = vector.shape_cast %333 : vector<1x1x1x1x32xf32> to vector<1x32xf32>
    %335 = vector.broadcast %334 : vector<1x32xf32> to vector<8x32xf32>
    %336 = arith.addf %332, %335 : vector<8x32xf32>
    %337 = arith.truncf %322 : vector<1x32xf32> to vector<1x32xbf16>
    %338 = arith.truncf %329 : vector<8x32xf32> to vector<8x32xbf16>
    %cst_265 = arith.constant dense<0.000000e+00> : vector<1x8xf32>
    %339 = tpu.matmul %337, %338, %cst_265 {dimension_numbers = #tpu.dot_dimension_numbers<[1], [1], [0], [0], [0, 0, 1, 0], [], []>} : vector<1x32xbf16>, vector<8x32xbf16>, vector<1x8xf32> -> vector<1x8xf32>
    %340 = vector.broadcast %18 : f32 to vector<1x8xf32>
    %341 = arith.mulf %339, %340 : vector<1x8xf32>
    %cst_266 = arith.constant dense<0xFF800000> : vector<1xf32>
    %342 = vector.multi_reduction <maximumf>, %341, %cst_266 [1] : vector<1x8xf32> to vector<1xf32>
    %343 = vector.shape_cast %342 : vector<1xf32> to vector<1x1xf32>
    %344 = vector.broadcast %343 : vector<1x1xf32> to vector<1x8xf32>
    %345 = arith.subf %341, %344 : vector<1x8xf32>
    %346 = math.exp %345 : vector<1x8xf32>
    %cst_267 = arith.constant dense<0.000000e+00> : vector<1xf32>
    %347 = vector.multi_reduction <add>, %346, %cst_267 [1] : vector<1x8xf32> to vector<1xf32>
    %348 = vector.shape_cast %347 : vector<1xf32> to vector<1x1xf32>
    %349 = tpu.reciprocal %348 {approx = true} : vector<1x1xf32> -> vector<1x1xf32>
    %350 = vector.broadcast %349 : vector<1x1xf32> to vector<1x8xf32>
    %351 = arith.mulf %346, %350 : vector<1x8xf32>
    %352 = arith.truncf %351 : vector<1x8xf32> to vector<1x8xbf16>
    %353 = arith.truncf %336 : vector<8x32xf32> to vector<8x32xbf16>
    %cst_268 = arith.constant dense<0.000000e+00> : vector<1x32xf32>
    %354 = tpu.matmul %352, %353, %cst_268 {dimension_numbers = #tpu.dot_dimension_numbers<[1], [0], [0], [1], [0, 0, 1, 1], [], []>} : vector<1x8xbf16>, vector<8x32xbf16>, vector<1x32xf32> -> vector<1x32xf32>
    %355 = arith.truncf %354 : vector<1x32xf32> to vector<1x32xbf16>
    %c1_269 = arith.constant 1 : index
    %c0_270 = arith.constant 0 : index
    %c0_271 = arith.constant 0 : index
    %c0_272 = arith.constant 0 : index
    %356 = vector.load %arg7[%c1_269, %c0_270, %c0_271, %c0_272] : memref<2x4x32x128xbf16, #tpu.memory_space<vmem>>, vector<1x1x32x128xbf16>
    %357 = vector.shape_cast %356 : vector<1x1x32x128xbf16> to vector<32x128xbf16>
    %cst_273 = arith.constant dense<0.000000e+00> : vector<1x128xf32>
    %358 = tpu.matmul %355, %357, %cst_273 {dimension_numbers = #tpu.dot_dimension_numbers<[1], [0], [0], [1], [0, 0, 1, 1], [], []>} : vector<1x32xbf16>, vector<32x128xbf16>, vector<1x128xf32> -> vector<1x128xf32>
    %359 = arith.addf %316, %358 : vector<1x128xf32>
    %c1_274 = arith.constant 1 : index
    %c0_275 = arith.constant 0 : index
    %c1_276 = arith.constant 1 : index
    %c0_277 = arith.constant 0 : index
    %c0_278 = arith.constant 0 : index
    %360 = vector.load %arg5[%c1_274, %c0_275, %c1_276, %c0_277, %c0_278] : memref<2x3x4x32x128xbf16, #tpu.memory_space<vmem>>, vector<1x1x1x32x128xbf16>
    %361 = vector.shape_cast %360 : vector<1x1x1x32x128xbf16> to vector<32x128xbf16>
    %cst_279 = arith.constant dense<0.000000e+00> : vector<1x32xf32>
    %362 = tpu.matmul %315, %361, %cst_279 {dimension_numbers = #tpu.dot_dimension_numbers<[1], [1], [0], [0], [0, 0, 1, 0], [], []>} : vector<1x128xbf16>, vector<32x128xbf16>, vector<1x32xf32> -> vector<1x32xf32>
    %c1_280 = arith.constant 1 : index
    %c0_281 = arith.constant 0 : index
    %c1_282 = arith.constant 1 : index
    %c0_283 = arith.constant 0 : index
    %c0_284 = arith.constant 0 : index
    %363 = vector.load %arg6[%c1_280, %c0_281, %c1_282, %c0_283, %c0_284] : memref<2x3x4x1x32xf32, #tpu.memory_space<vmem>>, vector<1x1x1x1x32xf32>
    %364 = vector.shape_cast %363 : vector<1x1x1x1x32xf32> to vector<1x32xf32>
    %365 = arith.addf %362, %364 : vector<1x32xf32>
    %c1_285 = arith.constant 1 : index
    %c1_286 = arith.constant 1 : index
    %c1_287 = arith.constant 1 : index
    %c0_288 = arith.constant 0 : index
    %c0_289 = arith.constant 0 : index
    %366 = vector.load %arg5[%c1_285, %c1_286, %c1_287, %c0_288, %c0_289] : memref<2x3x4x32x128xbf16, #tpu.memory_space<vmem>>, vector<1x1x1x32x128xbf16>
    %367 = vector.shape_cast %366 : vector<1x1x1x32x128xbf16> to vector<32x128xbf16>
    %cst_290 = arith.constant dense<0.000000e+00> : vector<8x32xf32>
    %368 = tpu.matmul %314, %367, %cst_290 {dimension_numbers = #tpu.dot_dimension_numbers<[1], [1], [0], [0], [0, 0, 1, 0], [], []>} : vector<8x128xbf16>, vector<32x128xbf16>, vector<8x32xf32> -> vector<8x32xf32>
    %c1_291 = arith.constant 1 : index
    %c1_292 = arith.constant 1 : index
    %c1_293 = arith.constant 1 : index
    %c0_294 = arith.constant 0 : index
    %c0_295 = arith.constant 0 : index
    %369 = vector.load %arg6[%c1_291, %c1_292, %c1_293, %c0_294, %c0_295] : memref<2x3x4x1x32xf32, #tpu.memory_space<vmem>>, vector<1x1x1x1x32xf32>
    %370 = vector.shape_cast %369 : vector<1x1x1x1x32xf32> to vector<1x32xf32>
    %371 = vector.broadcast %370 : vector<1x32xf32> to vector<8x32xf32>
    %372 = arith.addf %368, %371 : vector<8x32xf32>
    %c1_296 = arith.constant 1 : index
    %c2_297 = arith.constant 2 : index
    %c1_298 = arith.constant 1 : index
    %c0_299 = arith.constant 0 : index
    %c0_300 = arith.constant 0 : index
    %373 = vector.load %arg5[%c1_296, %c2_297, %c1_298, %c0_299, %c0_300] : memref<2x3x4x32x128xbf16, #tpu.memory_space<vmem>>, vector<1x1x1x32x128xbf16>
    %374 = vector.shape_cast %373 : vector<1x1x1x32x128xbf16> to vector<32x128xbf16>
    %cst_301 = arith.constant dense<0.000000e+00> : vector<8x32xf32>
    %375 = tpu.matmul %314, %374, %cst_301 {dimension_numbers = #tpu.dot_dimension_numbers<[1], [1], [0], [0], [0, 0, 1, 0], [], []>} : vector<8x128xbf16>, vector<32x128xbf16>, vector<8x32xf32> -> vector<8x32xf32>
    %c1_302 = arith.constant 1 : index
    %c2_303 = arith.constant 2 : index
    %c1_304 = arith.constant 1 : index
    %c0_305 = arith.constant 0 : index
    %c0_306 = arith.constant 0 : index
    %376 = vector.load %arg6[%c1_302, %c2_303, %c1_304, %c0_305, %c0_306] : memref<2x3x4x1x32xf32, #tpu.memory_space<vmem>>, vector<1x1x1x1x32xf32>
    %377 = vector.shape_cast %376 : vector<1x1x1x1x32xf32> to vector<1x32xf32>
    %378 = vector.broadcast %377 : vector<1x32xf32> to vector<8x32xf32>
    %379 = arith.addf %375, %378 : vector<8x32xf32>
    %380 = arith.truncf %365 : vector<1x32xf32> to vector<1x32xbf16>
    %381 = arith.truncf %372 : vector<8x32xf32> to vector<8x32xbf16>
    %cst_307 = arith.constant dense<0.000000e+00> : vector<1x8xf32>
    %382 = tpu.matmul %380, %381, %cst_307 {dimension_numbers = #tpu.dot_dimension_numbers<[1], [1], [0], [0], [0, 0, 1, 0], [], []>} : vector<1x32xbf16>, vector<8x32xbf16>, vector<1x8xf32> -> vector<1x8xf32>
    %383 = vector.broadcast %18 : f32 to vector<1x8xf32>
    %384 = arith.mulf %382, %383 : vector<1x8xf32>
    %cst_308 = arith.constant dense<0xFF800000> : vector<1xf32>
    %385 = vector.multi_reduction <maximumf>, %384, %cst_308 [1] : vector<1x8xf32> to vector<1xf32>
    %386 = vector.shape_cast %385 : vector<1xf32> to vector<1x1xf32>
    %387 = vector.broadcast %386 : vector<1x1xf32> to vector<1x8xf32>
    %388 = arith.subf %384, %387 : vector<1x8xf32>
    %389 = math.exp %388 : vector<1x8xf32>
    %cst_309 = arith.constant dense<0.000000e+00> : vector<1xf32>
    %390 = vector.multi_reduction <add>, %389, %cst_309 [1] : vector<1x8xf32> to vector<1xf32>
    %391 = vector.shape_cast %390 : vector<1xf32> to vector<1x1xf32>
    %392 = tpu.reciprocal %391 {approx = true} : vector<1x1xf32> -> vector<1x1xf32>
    %393 = vector.broadcast %392 : vector<1x1xf32> to vector<1x8xf32>
    %394 = arith.mulf %389, %393 : vector<1x8xf32>
    %395 = arith.truncf %394 : vector<1x8xf32> to vector<1x8xbf16>
    %396 = arith.truncf %379 : vector<8x32xf32> to vector<8x32xbf16>
    %cst_310 = arith.constant dense<0.000000e+00> : vector<1x32xf32>
    %397 = tpu.matmul %395, %396, %cst_310 {dimension_numbers = #tpu.dot_dimension_numbers<[1], [0], [0], [1], [0, 0, 1, 1], [], []>} : vector<1x8xbf16>, vector<8x32xbf16>, vector<1x32xf32> -> vector<1x32xf32>
    %398 = arith.truncf %397 : vector<1x32xf32> to vector<1x32xbf16>
    %c1_311 = arith.constant 1 : index
    %c1_312 = arith.constant 1 : index
    %c0_313 = arith.constant 0 : index
    %c0_314 = arith.constant 0 : index
    %399 = vector.load %arg7[%c1_311, %c1_312, %c0_313, %c0_314] : memref<2x4x32x128xbf16, #tpu.memory_space<vmem>>, vector<1x1x32x128xbf16>
    %400 = vector.shape_cast %399 : vector<1x1x32x128xbf16> to vector<32x128xbf16>
    %cst_315 = arith.constant dense<0.000000e+00> : vector<1x128xf32>
    %401 = tpu.matmul %398, %400, %cst_315 {dimension_numbers = #tpu.dot_dimension_numbers<[1], [0], [0], [1], [0, 0, 1, 1], [], []>} : vector<1x32xbf16>, vector<32x128xbf16>, vector<1x128xf32> -> vector<1x128xf32>
    %402 = arith.addf %359, %401 : vector<1x128xf32>
    %c1_316 = arith.constant 1 : index
    %c0_317 = arith.constant 0 : index
    %c2_318 = arith.constant 2 : index
    %c0_319 = arith.constant 0 : index
    %c0_320 = arith.constant 0 : index
    %403 = vector.load %arg5[%c1_316, %c0_317, %c2_318, %c0_319, %c0_320] : memref<2x3x4x32x128xbf16, #tpu.memory_space<vmem>>, vector<1x1x1x32x128xbf16>
    %404 = vector.shape_cast %403 : vector<1x1x1x32x128xbf16> to vector<32x128xbf16>
    %cst_321 = arith.constant dense<0.000000e+00> : vector<1x32xf32>
    %405 = tpu.matmul %315, %404, %cst_321 {dimension_numbers = #tpu.dot_dimension_numbers<[1], [1], [0], [0], [0, 0, 1, 0], [], []>} : vector<1x128xbf16>, vector<32x128xbf16>, vector<1x32xf32> -> vector<1x32xf32>
    %c1_322 = arith.constant 1 : index
    %c0_323 = arith.constant 0 : index
    %c2_324 = arith.constant 2 : index
    %c0_325 = arith.constant 0 : index
    %c0_326 = arith.constant 0 : index
    %406 = vector.load %arg6[%c1_322, %c0_323, %c2_324, %c0_325, %c0_326] : memref<2x3x4x1x32xf32, #tpu.memory_space<vmem>>, vector<1x1x1x1x32xf32>
    %407 = vector.shape_cast %406 : vector<1x1x1x1x32xf32> to vector<1x32xf32>
    %408 = arith.addf %405, %407 : vector<1x32xf32>
    %c1_327 = arith.constant 1 : index
    %c1_328 = arith.constant 1 : index
    %c2_329 = arith.constant 2 : index
    %c0_330 = arith.constant 0 : index
    %c0_331 = arith.constant 0 : index
    %409 = vector.load %arg5[%c1_327, %c1_328, %c2_329, %c0_330, %c0_331] : memref<2x3x4x32x128xbf16, #tpu.memory_space<vmem>>, vector<1x1x1x32x128xbf16>
    %410 = vector.shape_cast %409 : vector<1x1x1x32x128xbf16> to vector<32x128xbf16>
    %cst_332 = arith.constant dense<0.000000e+00> : vector<8x32xf32>
    %411 = tpu.matmul %314, %410, %cst_332 {dimension_numbers = #tpu.dot_dimension_numbers<[1], [1], [0], [0], [0, 0, 1, 0], [], []>} : vector<8x128xbf16>, vector<32x128xbf16>, vector<8x32xf32> -> vector<8x32xf32>
    %c1_333 = arith.constant 1 : index
    %c1_334 = arith.constant 1 : index
    %c2_335 = arith.constant 2 : index
    %c0_336 = arith.constant 0 : index
    %c0_337 = arith.constant 0 : index
    %412 = vector.load %arg6[%c1_333, %c1_334, %c2_335, %c0_336, %c0_337] : memref<2x3x4x1x32xf32, #tpu.memory_space<vmem>>, vector<1x1x1x1x32xf32>
    %413 = vector.shape_cast %412 : vector<1x1x1x1x32xf32> to vector<1x32xf32>
    %414 = vector.broadcast %413 : vector<1x32xf32> to vector<8x32xf32>
    %415 = arith.addf %411, %414 : vector<8x32xf32>
    %c1_338 = arith.constant 1 : index
    %c2_339 = arith.constant 2 : index
    %c2_340 = arith.constant 2 : index
    %c0_341 = arith.constant 0 : index
    %c0_342 = arith.constant 0 : index
    %416 = vector.load %arg5[%c1_338, %c2_339, %c2_340, %c0_341, %c0_342] : memref<2x3x4x32x128xbf16, #tpu.memory_space<vmem>>, vector<1x1x1x32x128xbf16>
    %417 = vector.shape_cast %416 : vector<1x1x1x32x128xbf16> to vector<32x128xbf16>
    %cst_343 = arith.constant dense<0.000000e+00> : vector<8x32xf32>
    %418 = tpu.matmul %314, %417, %cst_343 {dimension_numbers = #tpu.dot_dimension_numbers<[1], [1], [0], [0], [0, 0, 1, 0], [], []>} : vector<8x128xbf16>, vector<32x128xbf16>, vector<8x32xf32> -> vector<8x32xf32>
    %c1_344 = arith.constant 1 : index
    %c2_345 = arith.constant 2 : index
    %c2_346 = arith.constant 2 : index
    %c0_347 = arith.constant 0 : index
    %c0_348 = arith.constant 0 : index
    %419 = vector.load %arg6[%c1_344, %c2_345, %c2_346, %c0_347, %c0_348] : memref<2x3x4x1x32xf32, #tpu.memory_space<vmem>>, vector<1x1x1x1x32xf32>
    %420 = vector.shape_cast %419 : vector<1x1x1x1x32xf32> to vector<1x32xf32>
    %421 = vector.broadcast %420 : vector<1x32xf32> to vector<8x32xf32>
    %422 = arith.addf %418, %421 : vector<8x32xf32>
    %423 = arith.truncf %408 : vector<1x32xf32> to vector<1x32xbf16>
    %424 = arith.truncf %415 : vector<8x32xf32> to vector<8x32xbf16>
    %cst_349 = arith.constant dense<0.000000e+00> : vector<1x8xf32>
    %425 = tpu.matmul %423, %424, %cst_349 {dimension_numbers = #tpu.dot_dimension_numbers<[1], [1], [0], [0], [0, 0, 1, 0], [], []>} : vector<1x32xbf16>, vector<8x32xbf16>, vector<1x8xf32> -> vector<1x8xf32>
    %426 = vector.broadcast %18 : f32 to vector<1x8xf32>
    %427 = arith.mulf %425, %426 : vector<1x8xf32>
    %cst_350 = arith.constant dense<0xFF800000> : vector<1xf32>
    %428 = vector.multi_reduction <maximumf>, %427, %cst_350 [1] : vector<1x8xf32> to vector<1xf32>
    %429 = vector.shape_cast %428 : vector<1xf32> to vector<1x1xf32>
    %430 = vector.broadcast %429 : vector<1x1xf32> to vector<1x8xf32>
    %431 = arith.subf %427, %430 : vector<1x8xf32>
    %432 = math.exp %431 : vector<1x8xf32>
    %cst_351 = arith.constant dense<0.000000e+00> : vector<1xf32>
    %433 = vector.multi_reduction <add>, %432, %cst_351 [1] : vector<1x8xf32> to vector<1xf32>
    %434 = vector.shape_cast %433 : vector<1xf32> to vector<1x1xf32>
    %435 = tpu.reciprocal %434 {approx = true} : vector<1x1xf32> -> vector<1x1xf32>
    %436 = vector.broadcast %435 : vector<1x1xf32> to vector<1x8xf32>
    %437 = arith.mulf %432, %436 : vector<1x8xf32>
    %438 = arith.truncf %437 : vector<1x8xf32> to vector<1x8xbf16>
    %439 = arith.truncf %422 : vector<8x32xf32> to vector<8x32xbf16>
    %cst_352 = arith.constant dense<0.000000e+00> : vector<1x32xf32>
    %440 = tpu.matmul %438, %439, %cst_352 {dimension_numbers = #tpu.dot_dimension_numbers<[1], [0], [0], [1], [0, 0, 1, 1], [], []>} : vector<1x8xbf16>, vector<8x32xbf16>, vector<1x32xf32> -> vector<1x32xf32>
    %441 = arith.truncf %440 : vector<1x32xf32> to vector<1x32xbf16>
    %c1_353 = arith.constant 1 : index
    %c2_354 = arith.constant 2 : index
    %c0_355 = arith.constant 0 : index
    %c0_356 = arith.constant 0 : index
    %442 = vector.load %arg7[%c1_353, %c2_354, %c0_355, %c0_356] : memref<2x4x32x128xbf16, #tpu.memory_space<vmem>>, vector<1x1x32x128xbf16>
    %443 = vector.shape_cast %442 : vector<1x1x32x128xbf16> to vector<32x128xbf16>
    %cst_357 = arith.constant dense<0.000000e+00> : vector<1x128xf32>
    %444 = tpu.matmul %441, %443, %cst_357 {dimension_numbers = #tpu.dot_dimension_numbers<[1], [0], [0], [1], [0, 0, 1, 1], [], []>} : vector<1x32xbf16>, vector<32x128xbf16>, vector<1x128xf32> -> vector<1x128xf32>
    %445 = arith.addf %402, %444 : vector<1x128xf32>
    %c1_358 = arith.constant 1 : index
    %c0_359 = arith.constant 0 : index
    %c3_360 = arith.constant 3 : index
    %c0_361 = arith.constant 0 : index
    %c0_362 = arith.constant 0 : index
    %446 = vector.load %arg5[%c1_358, %c0_359, %c3_360, %c0_361, %c0_362] : memref<2x3x4x32x128xbf16, #tpu.memory_space<vmem>>, vector<1x1x1x32x128xbf16>
    %447 = vector.shape_cast %446 : vector<1x1x1x32x128xbf16> to vector<32x128xbf16>
    %cst_363 = arith.constant dense<0.000000e+00> : vector<1x32xf32>
    %448 = tpu.matmul %315, %447, %cst_363 {dimension_numbers = #tpu.dot_dimension_numbers<[1], [1], [0], [0], [0, 0, 1, 0], [], []>} : vector<1x128xbf16>, vector<32x128xbf16>, vector<1x32xf32> -> vector<1x32xf32>
    %c1_364 = arith.constant 1 : index
    %c0_365 = arith.constant 0 : index
    %c3_366 = arith.constant 3 : index
    %c0_367 = arith.constant 0 : index
    %c0_368 = arith.constant 0 : index
    %449 = vector.load %arg6[%c1_364, %c0_365, %c3_366, %c0_367, %c0_368] : memref<2x3x4x1x32xf32, #tpu.memory_space<vmem>>, vector<1x1x1x1x32xf32>
    %450 = vector.shape_cast %449 : vector<1x1x1x1x32xf32> to vector<1x32xf32>
    %451 = arith.addf %448, %450 : vector<1x32xf32>
    %c1_369 = arith.constant 1 : index
    %c1_370 = arith.constant 1 : index
    %c3_371 = arith.constant 3 : index
    %c0_372 = arith.constant 0 : index
    %c0_373 = arith.constant 0 : index
    %452 = vector.load %arg5[%c1_369, %c1_370, %c3_371, %c0_372, %c0_373] : memref<2x3x4x32x128xbf16, #tpu.memory_space<vmem>>, vector<1x1x1x32x128xbf16>
    %453 = vector.shape_cast %452 : vector<1x1x1x32x128xbf16> to vector<32x128xbf16>
    %cst_374 = arith.constant dense<0.000000e+00> : vector<8x32xf32>
    %454 = tpu.matmul %314, %453, %cst_374 {dimension_numbers = #tpu.dot_dimension_numbers<[1], [1], [0], [0], [0, 0, 1, 0], [], []>} : vector<8x128xbf16>, vector<32x128xbf16>, vector<8x32xf32> -> vector<8x32xf32>
    %c1_375 = arith.constant 1 : index
    %c1_376 = arith.constant 1 : index
    %c3_377 = arith.constant 3 : index
    %c0_378 = arith.constant 0 : index
    %c0_379 = arith.constant 0 : index
    %455 = vector.load %arg6[%c1_375, %c1_376, %c3_377, %c0_378, %c0_379] : memref<2x3x4x1x32xf32, #tpu.memory_space<vmem>>, vector<1x1x1x1x32xf32>
    %456 = vector.shape_cast %455 : vector<1x1x1x1x32xf32> to vector<1x32xf32>
    %457 = vector.broadcast %456 : vector<1x32xf32> to vector<8x32xf32>
    %458 = arith.addf %454, %457 : vector<8x32xf32>
    %c1_380 = arith.constant 1 : index
    %c2_381 = arith.constant 2 : index
    %c3_382 = arith.constant 3 : index
    %c0_383 = arith.constant 0 : index
    %c0_384 = arith.constant 0 : index
    %459 = vector.load %arg5[%c1_380, %c2_381, %c3_382, %c0_383, %c0_384] : memref<2x3x4x32x128xbf16, #tpu.memory_space<vmem>>, vector<1x1x1x32x128xbf16>
    %460 = vector.shape_cast %459 : vector<1x1x1x32x128xbf16> to vector<32x128xbf16>
    %cst_385 = arith.constant dense<0.000000e+00> : vector<8x32xf32>
    %461 = tpu.matmul %314, %460, %cst_385 {dimension_numbers = #tpu.dot_dimension_numbers<[1], [1], [0], [0], [0, 0, 1, 0], [], []>} : vector<8x128xbf16>, vector<32x128xbf16>, vector<8x32xf32> -> vector<8x32xf32>
    %c1_386 = arith.constant 1 : index
    %c2_387 = arith.constant 2 : index
    %c3_388 = arith.constant 3 : index
    %c0_389 = arith.constant 0 : index
    %c0_390 = arith.constant 0 : index
    %462 = vector.load %arg6[%c1_386, %c2_387, %c3_388, %c0_389, %c0_390] : memref<2x3x4x1x32xf32, #tpu.memory_space<vmem>>, vector<1x1x1x1x32xf32>
    %463 = vector.shape_cast %462 : vector<1x1x1x1x32xf32> to vector<1x32xf32>
    %464 = vector.broadcast %463 : vector<1x32xf32> to vector<8x32xf32>
    %465 = arith.addf %461, %464 : vector<8x32xf32>
    %466 = arith.truncf %451 : vector<1x32xf32> to vector<1x32xbf16>
    %467 = arith.truncf %458 : vector<8x32xf32> to vector<8x32xbf16>
    %cst_391 = arith.constant dense<0.000000e+00> : vector<1x8xf32>
    %468 = tpu.matmul %466, %467, %cst_391 {dimension_numbers = #tpu.dot_dimension_numbers<[1], [1], [0], [0], [0, 0, 1, 0], [], []>} : vector<1x32xbf16>, vector<8x32xbf16>, vector<1x8xf32> -> vector<1x8xf32>
    %469 = vector.broadcast %18 : f32 to vector<1x8xf32>
    %470 = arith.mulf %468, %469 : vector<1x8xf32>
    %cst_392 = arith.constant dense<0xFF800000> : vector<1xf32>
    %471 = vector.multi_reduction <maximumf>, %470, %cst_392 [1] : vector<1x8xf32> to vector<1xf32>
    %472 = vector.shape_cast %471 : vector<1xf32> to vector<1x1xf32>
    %473 = vector.broadcast %472 : vector<1x1xf32> to vector<1x8xf32>
    %474 = arith.subf %470, %473 : vector<1x8xf32>
    %475 = math.exp %474 : vector<1x8xf32>
    %cst_393 = arith.constant dense<0.000000e+00> : vector<1xf32>
    %476 = vector.multi_reduction <add>, %475, %cst_393 [1] : vector<1x8xf32> to vector<1xf32>
    %477 = vector.shape_cast %476 : vector<1xf32> to vector<1x1xf32>
    %478 = tpu.reciprocal %477 {approx = true} : vector<1x1xf32> -> vector<1x1xf32>
    %479 = vector.broadcast %478 : vector<1x1xf32> to vector<1x8xf32>
    %480 = arith.mulf %475, %479 : vector<1x8xf32>
    %481 = arith.truncf %480 : vector<1x8xf32> to vector<1x8xbf16>
    %482 = arith.truncf %465 : vector<8x32xf32> to vector<8x32xbf16>
    %cst_394 = arith.constant dense<0.000000e+00> : vector<1x32xf32>
    %483 = tpu.matmul %481, %482, %cst_394 {dimension_numbers = #tpu.dot_dimension_numbers<[1], [0], [0], [1], [0, 0, 1, 1], [], []>} : vector<1x8xbf16>, vector<8x32xbf16>, vector<1x32xf32> -> vector<1x32xf32>
    %484 = arith.truncf %483 : vector<1x32xf32> to vector<1x32xbf16>
    %c1_395 = arith.constant 1 : index
    %c3_396 = arith.constant 3 : index
    %c0_397 = arith.constant 0 : index
    %c0_398 = arith.constant 0 : index
    %485 = vector.load %arg7[%c1_395, %c3_396, %c0_397, %c0_398] : memref<2x4x32x128xbf16, #tpu.memory_space<vmem>>, vector<1x1x32x128xbf16>
    %486 = vector.shape_cast %485 : vector<1x1x32x128xbf16> to vector<32x128xbf16>
    %cst_399 = arith.constant dense<0.000000e+00> : vector<1x128xf32>
    %487 = tpu.matmul %484, %486, %cst_399 {dimension_numbers = #tpu.dot_dimension_numbers<[1], [0], [0], [1], [0, 0, 1, 1], [], []>} : vector<1x32xbf16>, vector<32x128xbf16>, vector<1x128xf32> -> vector<1x128xf32>
    %488 = arith.addf %445, %487 : vector<1x128xf32>
    %c1_400 = arith.constant 1 : index
    %c0_401 = arith.constant 0 : index
    %c0_402 = arith.constant 0 : index
    %489 = vector.load %arg8[%c1_400, %c0_401, %c0_402] : memref<2x1x128xf32, #tpu.memory_space<vmem>>, vector<1x1x128xf32>
    %490 = vector.shape_cast %489 : vector<1x1x128xf32> to vector<1x128xf32>
    %491 = arith.addf %488, %490 : vector<1x128xf32>
    %492 = vector.extract_strided_slice %287 {offsets = [7, 0], sizes = [1, 128], strides = [1, 1]} : vector<8x128xf32> to vector<1x128xf32>
    %493 = arith.addf %492, %491 : vector<1x128xf32>
    %c1_403 = arith.constant 1 : index
    %c0_404 = arith.constant 0 : index
    %c0_405 = arith.constant 0 : index
    %494 = vector.load %arg9[%c1_403, %c0_404, %c0_405] : memref<2x1x128xf32, #tpu.memory_space<vmem>>, vector<1x1x128xf32>
    %495 = vector.shape_cast %494 : vector<1x1x128xf32> to vector<1x128xf32>
    %c1_406 = arith.constant 1 : index
    %c0_407 = arith.constant 0 : index
    %c0_408 = arith.constant 0 : index
    %496 = vector.load %arg10[%c1_406, %c0_407, %c0_408] : memref<2x1x128xf32, #tpu.memory_space<vmem>>, vector<1x1x128xf32>
    %497 = vector.shape_cast %496 : vector<1x1x128xf32> to vector<1x128xf32>
    %cst_409 = arith.constant dense<0.000000e+00> : vector<1xf32>
    %498 = vector.multi_reduction <add>, %493, %cst_409 [1] : vector<1x128xf32> to vector<1xf32>
    %499 = vector.shape_cast %498 : vector<1xf32> to vector<1x1xf32>
    %cst_410 = arith.constant 1.280000e+02 : f32
    %500 = vector.broadcast %cst_410 : f32 to vector<1x1xf32>
    %501 = arith.divf %499, %500 : vector<1x1xf32>
    %502 = vector.broadcast %501 : vector<1x1xf32> to vector<1x128xf32>
    %503 = arith.subf %493, %502 : vector<1x128xf32>
    %504 = arith.mulf %503, %503 : vector<1x128xf32>
    %cst_411 = arith.constant dense<0.000000e+00> : vector<1xf32>
    %505 = vector.multi_reduction <add>, %504, %cst_411 [1] : vector<1x128xf32> to vector<1xf32>
    %506 = vector.shape_cast %505 : vector<1xf32> to vector<1x1xf32>
    %cst_412 = arith.constant 1.280000e+02 : f32
    %507 = vector.broadcast %cst_412 : f32 to vector<1x1xf32>
    %508 = arith.divf %506, %507 : vector<1x1xf32>
    %509 = vector.broadcast %501 : vector<1x1xf32> to vector<1x128xf32>
    %510 = arith.subf %493, %509 : vector<1x128xf32>
    %cst_413 = arith.constant 9.99999974E-6 : f32
    %511 = vector.broadcast %cst_413 : f32 to vector<1x1xf32>
    %512 = arith.addf %508, %511 : vector<1x1xf32>
    %513 = math.rsqrt %512 : vector<1x1xf32>
    %514 = vector.broadcast %513 : vector<1x1xf32> to vector<1x128xf32>
    %515 = arith.mulf %510, %514 : vector<1x128xf32>
    %516 = arith.mulf %515, %495 : vector<1x128xf32>
    %517 = arith.addf %516, %497 : vector<1x128xf32>
    %518 = arith.truncf %517 : vector<1x128xf32> to vector<1x128xbf16>
    %c1_414 = arith.constant 1 : index
    %c0_415 = arith.constant 0 : index
    %c0_416 = arith.constant 0 : index
    %519 = vector.load %arg11[%c1_414, %c0_415, %c0_416] : memref<2x128x512xbf16, #tpu.memory_space<vmem>>, vector<1x128x512xbf16>
    %520 = vector.shape_cast %519 : vector<1x128x512xbf16> to vector<128x512xbf16>
    %cst_417 = arith.constant dense<0.000000e+00> : vector<1x512xf32>
    %521 = tpu.matmul %518, %520, %cst_417 {dimension_numbers = #tpu.dot_dimension_numbers<[1], [0], [0], [1], [0, 0, 1, 1], [], []>} : vector<1x128xbf16>, vector<128x512xbf16>, vector<1x512xf32> -> vector<1x512xf32>
    %c1_418 = arith.constant 1 : index
    %c0_419 = arith.constant 0 : index
    %c0_420 = arith.constant 0 : index
    %522 = vector.load %arg12[%c1_418, %c0_419, %c0_420] : memref<2x1x512xf32, #tpu.memory_space<vmem>>, vector<1x1x512xf32>
    %523 = vector.shape_cast %522 : vector<1x1x512xf32> to vector<1x512xf32>
    %524 = arith.addf %521, %523 : vector<1x512xf32>
    %525 = arith.mulf %524, %524 : vector<1x512xf32>
    %526 = arith.mulf %524, %525 : vector<1x512xf32>
    %cst_421 = arith.constant 4.471500e-02 : f32
    %527 = vector.broadcast %cst_421 : f32 to vector<1x512xf32>
    %528 = arith.mulf %527, %526 : vector<1x512xf32>
    %529 = arith.addf %524, %528 : vector<1x512xf32>
    %cst_422 = arith.constant 0.797884583 : f32
    %530 = vector.broadcast %cst_422 : f32 to vector<1x512xf32>
    %531 = arith.mulf %530, %529 : vector<1x512xf32>
    %532 = math.tanh %531 : vector<1x512xf32>
    %cst_423 = arith.constant 1.000000e+00 : f32
    %533 = vector.broadcast %cst_423 : f32 to vector<1x512xf32>
    %534 = arith.addf %533, %532 : vector<1x512xf32>
    %cst_424 = arith.constant 5.000000e-01 : f32
    %535 = vector.broadcast %cst_424 : f32 to vector<1x512xf32>
    %536 = arith.mulf %535, %534 : vector<1x512xf32>
    %537 = arith.mulf %524, %536 : vector<1x512xf32>
    %538 = arith.truncf %537 : vector<1x512xf32> to vector<1x512xbf16>
    %c1_425 = arith.constant 1 : index
    %c0_426 = arith.constant 0 : index
    %c0_427 = arith.constant 0 : index
    %539 = vector.load %arg13[%c1_425, %c0_426, %c0_427] : memref<2x512x128xbf16, #tpu.memory_space<vmem>>, vector<1x512x128xbf16>
    %540 = vector.shape_cast %539 : vector<1x512x128xbf16> to vector<512x128xbf16>
    %cst_428 = arith.constant dense<0.000000e+00> : vector<1x128xf32>
    %541 = tpu.matmul %538, %540, %cst_428 {dimension_numbers = #tpu.dot_dimension_numbers<[1], [0], [0], [1], [0, 0, 1, 1], [], []>} : vector<1x512xbf16>, vector<512x128xbf16>, vector<1x128xf32> -> vector<1x128xf32>
    %c1_429 = arith.constant 1 : index
    %c0_430 = arith.constant 0 : index
    %c0_431 = arith.constant 0 : index
    %542 = vector.load %arg14[%c1_429, %c0_430, %c0_431] : memref<2x1x128xf32, #tpu.memory_space<vmem>>, vector<1x1x128xf32>
    %543 = vector.shape_cast %542 : vector<1x1x128xf32> to vector<1x128xf32>
    %544 = arith.addf %541, %543 : vector<1x128xf32>
    %545 = arith.addf %493, %544 : vector<1x128xf32>
    %c0_432 = arith.constant 0 : index
    %c0_433 = arith.constant 0 : index
    %546 = vector.load %arg15[%c0_432, %c0_433] : memref<1x128xf32, #tpu.memory_space<vmem>>, vector<1x128xf32>
    %c0_434 = arith.constant 0 : index
    %c0_435 = arith.constant 0 : index
    %547 = vector.load %arg16[%c0_434, %c0_435] : memref<1x128xf32, #tpu.memory_space<vmem>>, vector<1x128xf32>
    %cst_436 = arith.constant dense<0.000000e+00> : vector<1xf32>
    %548 = vector.multi_reduction <add>, %545, %cst_436 [1] : vector<1x128xf32> to vector<1xf32>
    %549 = vector.shape_cast %548 : vector<1xf32> to vector<1x1xf32>
    %cst_437 = arith.constant 1.280000e+02 : f32
    %550 = vector.broadcast %cst_437 : f32 to vector<1x1xf32>
    %551 = arith.divf %549, %550 : vector<1x1xf32>
    %552 = vector.broadcast %551 : vector<1x1xf32> to vector<1x128xf32>
    %553 = arith.subf %545, %552 : vector<1x128xf32>
    %554 = arith.mulf %553, %553 : vector<1x128xf32>
    %cst_438 = arith.constant dense<0.000000e+00> : vector<1xf32>
    %555 = vector.multi_reduction <add>, %554, %cst_438 [1] : vector<1x128xf32> to vector<1xf32>
    %556 = vector.shape_cast %555 : vector<1xf32> to vector<1x1xf32>
    %cst_439 = arith.constant 1.280000e+02 : f32
    %557 = vector.broadcast %cst_439 : f32 to vector<1x1xf32>
    %558 = arith.divf %556, %557 : vector<1x1xf32>
    %559 = vector.broadcast %551 : vector<1x1xf32> to vector<1x128xf32>
    %560 = arith.subf %545, %559 : vector<1x128xf32>
    %cst_440 = arith.constant 9.99999974E-6 : f32
    %561 = vector.broadcast %cst_440 : f32 to vector<1x1xf32>
    %562 = arith.addf %558, %561 : vector<1x1xf32>
    %563 = math.rsqrt %562 : vector<1x1xf32>
    %564 = vector.broadcast %563 : vector<1x1xf32> to vector<1x128xf32>
    %565 = arith.mulf %560, %564 : vector<1x128xf32>
    %566 = arith.mulf %565, %546 : vector<1x128xf32>
    %567 = arith.addf %566, %547 : vector<1x128xf32>
    %c0_441 = arith.constant 0 : index
    %c0_442 = arith.constant 0 : index
    %568 = vector.load %arg17[%c0_441, %c0_442] : memref<1x128xf32, #tpu.memory_space<vmem>>, vector<1x128xf32>
    %569 = arith.mulf %567, %568 : vector<1x128xf32>
    %cst_443 = arith.constant dense<0.000000e+00> : vector<1xf32>
    %570 = vector.multi_reduction <add>, %569, %cst_443 [1] : vector<1x128xf32> to vector<1xf32>
    %571 = vector.shape_cast %570 : vector<1xf32> to vector<1x1xf32>
    %c0_444 = arith.constant 0 : index
    %c0_445 = arith.constant 0 : index
    %572 = vector.load %arg18[%c0_444, %c0_445] : memref<1x1xf32, #tpu.memory_space<vmem>>, vector<1x1xf32>
    %573 = arith.addf %571, %572 : vector<1x1xf32>
    %c0_446 = arith.constant 0 : index
    %c0_447 = arith.constant 0 : index
    %574 = vector.load %arg19[%c0_446, %c0_447] : memref<1x1xf32, #tpu.memory_space<vmem>>, vector<1x1xf32>
    tpu.vector_store %arg19[%c0_446, %c0_447], %573 {strides = array<i32>} : memref<1x1xf32, #tpu.memory_space<vmem>>, vector<1x1xf32>,
    return
  }
}

</mosaic_0001>

<bundles_post_ra>
// kernel: reward_model_forward.1
= control target key start
LH: loop header
LB: loop body
LE: loop exit
PB: predicated region body
PF: predicated region fallthrough
CT: control target
= control target key end

     0   :  { %s6907_s0 = inlined_call_operand.vmem [shape: s32[8,1], index: 0, kind: input, shape index: {}]   ;;  %s6908_s1 = inlined_call_operand.vmem [shape: f32[64,128], index: 1, kind: input, shape index: {}]   ;;  %s6909_s2 = inlined_call_operand.vmem [shape: f32[8,128], index: 2, kind: input, shape index: {}]   ;;  %s6910_s3 = inlined_call_operand.vmem [shape: f32[2,1,128], index: 3, kind: input, shape index: {}]   ;;  %s6911_s4 = inlined_call_operand.vmem [shape: f32[2,1,128], index: 4, kind: input, shape index: {}]   ;;  %s6912_s5 = inlined_call_operand.hbm [shape: bf16[2,3,4,32,128], index: 5, kind: input, shape index: {}]   ;;  %s6913_s6 = inlined_call_operand.hbm [shape: f32[2,3,4,1,32], index: 6, kind: input, shape index: {}]   ;;  %s6914_s7 = inlined_call_operand.hbm [shape: bf16[2,4,32,128], index: 7, kind: input, shape index: {}]   ;;  %s6915_s8 = inlined_call_operand.hbm [shape: f32[2,1,128], index: 8, kind: input, shape index: {}]   ;;  %s6916_s9 = inlined_call_operand.hbm [shape: f32[2,1,128], index: 9, kind: input, shape index: {}]   ;;  %s6917_s10 = inlined_call_operand.hbm [shape: f32[2,1,128], index: 10, kind: input, shape index: {}]   ;;  %s6918_s11 = inlined_call_operand.hbm [shape: bf16[2,128,512], index: 11, kind: input, shape index: {}]   ;;  %s6919_s12 = inlined_call_operand.vmem [shape: f32[2,1,512], index: 12, kind: input, shape index: {}]   ;;  %s6920_s13 = inlined_call_operand.hbm [shape: bf16[2,512,128], index: 13, kind: input, shape index: {}]   ;;  %s6921_s14 = inlined_call_operand.hbm [shape: f32[2,1,128], index: 14, kind: input, shape index: {}]   ;;  %s6922_s15 = inlined_call_operand.vmem [shape: f32[1,128], index: 15, kind: input, shape index: {}]   ;;  %s6923_s16 = inlined_call_operand.hbm [shape: f32[1,128], index: 16, kind: input, shape index: {}]   ;;  %s6924_s17 = inlined_call_operand.hbm [shape: f32[1,128], index: 17, kind: input, shape index: {}]   ;;  %s6925_s18 = inlined_call_operand.<no memory space> [shape: f32[1,1], index: 18, kind: input, shape index: {}]   ;;  %s6926_s19 = inlined_call_operand.hbm [shape: f32[1,1], index: 19, kind: output, shape index: {}]  }
   0x1   :  { %6929 = sst [smem:[#allocation29_spill]] %s6907_s0  ;;  %v24_v0 = vstv %s6925_s18 }
   0x2   :  { %6930 = sst [smem:[#allocation30_spill]] %s6908_s1  ;;  %25 = vst [vmem:[#allocation2] sm:$0x1] %v24_v0 }
   0x3   :  { %6931 = sst [smem:[#allocation31_spill]] %s6909_s2 }
   0x4   :  { %6932 = sst [smem:[#allocation32_spill]] %s6910_s3 }
   0x5   :  { %26 = vsyncpa [#allocation4], 0 }
   0x6   :  { %27 = vsyncpa [#allocation7], 0 }
   0x7   :  { %28 = vsyncpa [#allocation10], 0 }
   0x8   :  { %29 = vsyncpa [#allocation13], 0 }
   0x9   :  { %30 = vsyncpa [#allocation16], 0 }
   0xa   :  { %31 = vsyncpa [#allocation19], 0 }
   0xb   :  { %32 = vsyncpa [#allocation5], 0  ;;  %s6225_s20 = smov [#allocation6]   ;;  %s5947_s2 = scalar_lea.hbm %s6913_s6, 384 }
   0xc   :  { %s60_s21 = sshll.u32 %s6225_s20, 4  ;;  %p5948_p0 = scmp.ne.s32.totalorder %s6913_s6, %s5947_s2  ;;  %s61_s21 = int_to_ptr.vmem [resolvable:$true] %s60_s21 }
   0xd   :  { %p5951_p1 = scmp.lt.u32.totalorder %s5947_s2, %s6913_s6 }
   0xf   :  { %p5953_p2 = pnand %p5951_p1, %p5948_p0 }
  0x11   :  { %5956 = shalt.err (!%p5953_p2)
}
  0x12   :  { %s5957_s3 = scalar_lea.vmem %s61_s21, 384  ;;  %p5962_p4 = scmp.lt.s32.totalorder %s61_s21, %s61_s21 }
  0x13   :  { %p5958_p3 = scmp.ne.s32.totalorder %s61_s21, %s5957_s3  ;;  %p5963_p5 = scmp.lt.s32.totalorder %s5957_s3, %s5957_s3 }
  0x15   :  { %p5964_p6 = por %p5963_p5, %p5962_p4 }
  0x17   :  { %p5965_p7 = pnand %p5964_p6, %p5958_p3 }
  0x19   :  { %5968 = shalt.err (!%p5965_p7)
}
  0x1a   :  { %s6226_s26 = smov 16   ;;  %s6227_s27 = smov 1  }
  0x1b   :  { %66 = dma.hbm_to_vmem [thread:$0]  %s6913_s6, 384, %s61_s21, [#allocation7], %s6226_s26, %s6226_s26, %s6227_s27  }
  0x1c   :  { %s6228_s0 = smov [#allocation9]   ;;  %s6229_s20 = smov [#allocation12]  }
  0x1d   :  { %s84_s30 = sshll.u32 %s6228_s0, 4  ;;  %s108_s1 = sshll.u32 %s6229_s20, 4  ;;  %s85_s30 = int_to_ptr.vmem [resolvable:$true] %s84_s30  ;;  %s109_s1 = int_to_ptr.vmem [resolvable:$true] %s108_s1 }
  0x1e   :  { %s5969_s23 = scalar_lea.hbm %s6915_s8, 32 }
  0x1f   :  { %p5970_p8 = scmp.ne.s32.totalorder %s6915_s8, %s5969_s23  ;;  %p5973_p9 = scmp.lt.u32.totalorder %s5969_s23, %s6915_s8 }
  0x21   :  { %p5975_p10 = pnand %p5973_p9, %p5970_p8 }
  0x23   :  { %5978 = shalt.err (!%p5975_p10)
}
  0x24   :  { %s5979_s6 = scalar_lea.vmem %s85_s30, 32  ;;  %p5984_p12 = scmp.lt.s32.totalorder %s85_s30, %s85_s30 }
  0x25   :  { %p5980_p11 = scmp.ne.s32.totalorder %s85_s30, %s5979_s6  ;;  %p5985_p13 = scmp.lt.s32.totalorder %s5979_s6, %s5979_s6 }
  0x27   :  { %p5986_p0 = por %p5985_p13, %p5984_p12 }
  0x29   :  { %p5987_p1 = pnand %p5986_p0, %p5980_p11 }
  0x2b   :  { %5990 = shalt.err (!%p5987_p1)
}
  0x2c   :  { %90 = dma.hbm_to_vmem [thread:$0]  %s6915_s8, 32, %s85_s30, [#allocation10], %s6226_s26, %s6226_s26, %s6227_s27  }
  0x2d   :  { %s5991_s20 = scalar_lea.hbm %s6917_s10, 32 }
  0x2e   :  { %p5992_p2 = scmp.ne.s32.totalorder %s6917_s10, %s5991_s20  ;;  %p5995_p3 = scmp.lt.u32.totalorder %s5991_s20, %s6917_s10 }
  0x30   :  { %p5997_p4 = pnand %p5995_p3, %p5992_p2 }
  0x32   :  { %6000 = shalt.err (!%p5997_p4)
}
  0x33   :  { %s6001_s18 = scalar_lea.vmem %s109_s1, 32  ;;  %p6006_p6 = scmp.lt.s32.totalorder %s109_s1, %s109_s1 }
  0x34   :  { %p6002_p5 = scmp.ne.s32.totalorder %s109_s1, %s6001_s18  ;;  %p6007_p7 = scmp.lt.s32.totalorder %s6001_s18, %s6001_s18 }
  0x36   :  { %p6008_p8 = por %p6007_p7, %p6006_p6 }
  0x38   :  { %p6009_p9 = pnand %p6008_p8, %p6002_p5 }
  0x3a   :  { %6012 = shalt.err (!%p6009_p9)
}
  0x3b   :  { %114 = dma.hbm_to_vmem [thread:$0]  %s6917_s10, 32, %s109_s1, [#allocation13], %s6226_s26, %s6226_s26, %s6227_s27  }
  0x3c   :  { %s6230_s25 = smov [#allocation15]   ;;  %s6231_s6 = smov [#allocation18]  }
  0x3d   :  { %s134_s3 = sshll.u32 %s6230_s25, 4  ;;  %s161_s21 = sshll.u32 %s6231_s6, 4  ;;  %s135_s3 = int_to_ptr.vmem [resolvable:$true] %s134_s3  ;;  %s162_s21 = int_to_ptr.vmem [resolvable:$true] %s161_s21 }
  0x3e   :  { %s6013_s0 = scalar_lea.hbm %s6920_s13, 8192 }
  0x3f   :  { %p6014_p10 = scmp.ne.s32.totalorder %s6920_s13, %s6013_s0  ;;  %p6017_p11 = scmp.lt.u32.totalorder %s6013_s0, %s6920_s13 }
  0x41   :  { %p6019_p12 = pnand %p6017_p11, %p6014_p10 }
  0x43   :  { %6022 = shalt.err (!%p6019_p12)
}
  0x44   :  { %s6023_s10 = scalar_lea.vmem %s135_s3, 8192  ;;  %p6028_p0 = scmp.lt.s32.totalorder %s135_s3, %s135_s3 }
  0x45   :  { %p6024_p13 = scmp.ne.s32.totalorder %s135_s3, %s6023_s10  ;;  %p6029_p1 = scmp.lt.s32.totalorder %s6023_s10, %s6023_s10 }
  0x47   :  { %p6030_p2 = por %p6029_p1, %p6028_p0 }
  0x49   :  { %p6031_p3 = pnand %p6030_p2, %p6024_p13 }
  0x4b   :  { %6034 = shalt.err (!%p6031_p3)
}
  0x4c   :  { %s6232_s1 = smov 64   ;;  %s6233_s24 = smov 4  }
  0x4d   :  { %140 = dma.hbm_to_vmem [thread:$0]  %s6920_s13, 8192, %s135_s3, [#allocation16], %s6232_s1, %s6232_s1, %s6233_s24  }
  0x4e   :  { %s6035_s6 = scalar_lea.hbm %s6923_s16, 16 }
  0x4f   :  { %p6036_p4 = scmp.ne.s32.totalorder %s6923_s16, %s6035_s6  ;;  %p6039_p5 = scmp.lt.u32.totalorder %s6035_s6, %s6923_s16 }
  0x51   :  { %p6041_p6 = pnand %p6039_p5, %p6036_p4 }
  0x53   :  { %6044 = shalt.err (!%p6041_p6)
}
  0x54   :  { %s6045_s22 = scalar_lea.vmem %s162_s21, 16  ;;  %s6049_s2 = scalar_lea.vmem %s162_s21, 32 }
  0x55   :  { %p6046_p7 = scmp.ne.s32.totalorder %s162_s21, %s6045_s22  ;;  %p6050_p8 = scmp.lt.s32.totalorder %s162_s21, %s162_s21 }
  0x56   :  { %p6051_p9 = scmp.lt.s32.totalorder %s6049_s2, %s6045_s22 }
  0x58   :  { %p6052_p10 = por %p6051_p9, %p6050_p8 }
  0x5a   :  { %p6053_p11 = pnand %p6052_p10, %p6046_p7 }
  0x5c   :  { %6056 = shalt.err (!%p6053_p11)
}
  0x5d   :  { %164 = dma.hbm_to_vmem [thread:$0]  %s6923_s16, 16, %s162_s21, [#allocation19]  }
  0x5e   :  { %s6234_s23 = smov [#allocation3]   ;;  %s6235_s18 = smov [#allocation8]  }
  0x5f   :  { %s48_s10 = sshll.u32 %s6234_s23, 4  ;;  %s72_s8 = sshll.u32 %s6235_s18, 4  ;;  %s49_s10 = int_to_ptr.vmem [resolvable:$true] %s48_s10  ;;  %s73_s8 = int_to_ptr.vmem [resolvable:$true] %s72_s8 }
  0x60   :  { %s6057_s6 = scalar_lea.hbm %s6912_s5, 6144 }
  0x61   :  { %p6058_p12 = scmp.ne.s32.totalorder %s6912_s5, %s6057_s6  ;;  %p6061_p13 = scmp.lt.u32.totalorder %s6057_s6, %s6912_s5 }
  0x63   :  { %p6063_p0 = pnand %p6061_p13, %p6058_p12 }
  0x65   :  { %6066 = shalt.err (!%p6063_p0)
}
  0x66   :  { %s6067_s16 = scalar_lea.vmem %s49_s10, 6144  ;;  %p6072_p2 = scmp.lt.s32.totalorder %s49_s10, %s49_s10 }
  0x67   :  { %p6068_p1 = scmp.ne.s32.totalorder %s49_s10, %s6067_s16  ;;  %p6073_p3 = scmp.lt.s32.totalorder %s6067_s16, %s6067_s16 }
  0x69   :  { %p6074_p4 = por %p6073_p3, %p6072_p2 }
  0x6b   :  { %p6075_p5 = pnand %p6074_p4, %p6068_p1 }
  0x6d   :  { %6078 = shalt.err (!%p6075_p5)
}
  0x6e   :  { %54 = dma.hbm_to_vmem [thread:$0]  %s6912_s5, 6144, %s49_s10, [#allocation4], %s6232_s1, %s6232_s1, %s6233_s24  }
  0x6f   :  { %s6079_s3 = scalar_lea.hbm %s6914_s7, 2048 }
  0x70   :  { %p6080_p6 = scmp.ne.s32.totalorder %s6914_s7, %s6079_s3  ;;  %p6083_p7 = scmp.lt.u32.totalorder %s6079_s3, %s6914_s7 }
  0x72   :  { %p6085_p8 = pnand %p6083_p7, %p6080_p6 }
  0x74   :  { %6088 = shalt.err (!%p6085_p8)
}
  0x75   :  { %s6089_s6 = scalar_lea.vmem %s73_s8, 2048  ;;  %p6094_p10 = scmp.lt.s32.totalorder %s73_s8, %s73_s8 }
  0x76   :  { %p6090_p9 = scmp.ne.s32.totalorder %s73_s8, %s6089_s6  ;;  %p6095_p11 = scmp.lt.s32.totalorder %s6089_s6, %s6089_s6 }
  0x78   :  { %p6096_p12 = por %p6095_p11, %p6094_p10 }
  0x7a   :  { %p6097_p13 = pnand %p6096_p12, %p6090_p9 }
  0x7c   :  { %6100 = shalt.err (!%p6097_p13)
}
  0x7d   :  { %78 = dma.hbm_to_vmem [thread:$0]  %s6914_s7, 2048, %s73_s8, [#allocation7], %s6232_s1, %s6232_s1, %s6233_s24  }
  0x7e   :  { %s6236_s28 = smov [#allocation11]   ;;  %s6237_s0 = smov [#allocation14]  }
  0x7f   :  { %s96_s29 = sshll.u32 %s6236_s28, 4  ;;  %s120_s20 = sshll.u32 %s6237_s0, 4  ;;  %s97_s29 = int_to_ptr.vmem [resolvable:$true] %s96_s29  ;;  %s121_s20 = int_to_ptr.vmem [resolvable:$true] %s120_s20 }
  0x80   :  { %s6101_s22 = scalar_lea.hbm %s6916_s9, 32 }
  0x81   :  { %p6102_p0 = scmp.ne.s32.totalorder %s6916_s9, %s6101_s22  ;;  %p6105_p1 = scmp.lt.u32.totalorder %s6101_s22, %s6916_s9 }
  0x83   :  { %p6107_p2 = pnand %p6105_p1, %p6102_p0 }
  0x85   :  { %6110 = shalt.err (!%p6107_p2)
}
  0x86   :  { %s6111_s7 = scalar_lea.vmem %s97_s29, 32  ;;  %p6116_p4 = scmp.lt.s32.totalorder %s97_s29, %s97_s29 }
  0x87   :  { %p6112_p3 = scmp.ne.s32.totalorder %s97_s29, %s6111_s7  ;;  %p6117_p5 = scmp.lt.s32.totalorder %s6111_s7, %s6111_s7 }
  0x89   :  { %p6118_p6 = por %p6117_p5, %p6116_p4 }
  0x8b   :  { %p6119_p7 = pnand %p6118_p6, %p6112_p3 }
  0x8d   :  { %6122 = shalt.err (!%p6119_p7)
}
  0x8e   :  { %102 = dma.hbm_to_vmem [thread:$0]  %s6916_s9, 32, %s97_s29, [#allocation10], %s6226_s26, %s6226_s26, %s6227_s27  }
  0x8f   :  { %s6123_s30 = scalar_lea.hbm %s6918_s11, 8192 }
  0x90   :  { %p6124_p8 = scmp.ne.s32.totalorder %s6918_s11, %s6123_s30  ;;  %p6127_p9 = scmp.lt.u32.totalorder %s6123_s30, %s6918_s11 }
  0x92   :  { %p6129_p10 = pnand %p6127_p9, %p6124_p8 }
  0x94   :  { %6132 = shalt.err (!%p6129_p10)
}
  0x95   :  { %s6133_s28 = scalar_lea.vmem %s121_s20, 8192  ;;  %p6138_p12 = scmp.lt.s32.totalorder %s121_s20, %s121_s20 }
  0x96   :  { %p6134_p11 = scmp.ne.s32.totalorder %s121_s20, %s6133_s28  ;;  %p6139_p13 = scmp.lt.s32.totalorder %s6133_s28, %s6133_s28 }
  0x98   :  { %p6140_p0 = por %p6139_p13, %p6138_p12 }
  0x9a   :  { %p6141_p1 = pnand %p6140_p0, %p6134_p11 }
  0x9c   :  { %6144 = shalt.err (!%p6141_p1)
}
  0x9d   :  { %s6238_s9 = smov 256   ;;  %s6239_s16 = smov [#allocation17]  }
  0x9e   :  { %126 = dma.hbm_to_vmem [thread:$0]  %s6918_s11, 8192, %s121_s20, [#allocation13], %s6238_s9, %s6238_s9, %s6226_s26  }
  0x9f   :  { %s146_s21 = sshll.u32 %s6239_s16, 4  ;;  %s6240_s22 = smov [#allocation20]   ;;  %s147_s21 = int_to_ptr.vmem [resolvable:$true] %s146_s21 }
  0xa0   :  { %s171_s2 = sshll.u32 %s6240_s22, 4  ;;  %s6145_s23 = scalar_lea.hbm %s6921_s14, 32  ;;  %s172_s2 = int_to_ptr.vmem [resolvable:$true] %s171_s2 }
  0xa1   :  { %p6146_p2 = scmp.ne.s32.totalorder %s6921_s14, %s6145_s23  ;;  %p6149_p3 = scmp.lt.u32.totalorder %s6145_s23, %s6921_s14 }
  0xa3   :  { %p6151_p4 = pnand %p6149_p3, %p6146_p2 }
  0xa5   :  { %6154 = shalt.err (!%p6151_p4)
}
  0xa6   :  { %s6155_s11 = scalar_lea.vmem %s147_s21, 32  ;;  %p6160_p6 = scmp.lt.s32.totalorder %s147_s21, %s147_s21 }
  0xa7   :  { %p6156_p5 = scmp.ne.s32.totalorder %s147_s21, %s6155_s11  ;;  %p6161_p7 = scmp.lt.s32.totalorder %s6155_s11, %s6155_s11 }
  0xa9   :  { %p6162_p8 = por %p6161_p7, %p6160_p6 }
  0xab   :  { %p6163_p9 = pnand %p6162_p8, %p6156_p5 }
  0xad   :  { %6166 = shalt.err (!%p6163_p9)
}
  0xae   :  { %152 = dma.hbm_to_vmem [thread:$0]  %s6921_s14, 32, %s147_s21, [#allocation16], %s6226_s26, %s6226_s26, %s6227_s27  }
  0xaf   :  { %s6167_s6 = scalar_lea.hbm %s6924_s17, 16 }
  0xb0   :  { %p6168_p10 = scmp.ne.s32.totalorder %s6924_s17, %s6167_s6  ;;  %p6171_p11 = scmp.lt.u32.totalorder %s6167_s6, %s6924_s17 }
  0xb2   :  { %p6173_p12 = pnand %p6171_p11, %p6168_p10 }
  0xb4   :  { %6176 = shalt.err (!%p6173_p12)
}
  0xb5   :  { %s6177_s29 = scalar_lea.vmem %s172_s2, 16  ;;  %s6181_s0 = scalar_lea.vmem %s172_s2, 32 }
  0xb6   :  { %p6178_p13 = scmp.ne.s32.totalorder %s172_s2, %s6177_s29  ;;  %p6182_p0 = scmp.lt.s32.totalorder %s172_s2, %s172_s2 }
  0xb7   :  { %p6183_p1 = scmp.lt.s32.totalorder %s6181_s0, %s6177_s29 }
  0xb9   :  { %p6184_p2 = por %p6183_p1, %p6182_p0 }
  0xbb   :  { %p6185_p3 = pnand %p6184_p2, %p6178_p13 }
  0xbd   :  { %6188 = shalt.err (!%p6185_p3)
}
  0xbe   :  { %174 = dma.hbm_to_vmem [thread:$0]  %s6924_s17, 16, %s172_s2, [#allocation19]  }
  0xbf   :  { %6211 = dma.done.wait [#allocation4], 6144  }
  0xc0   :  { %6212 = vsyncadd [#allocation4], 4294961152 }
  0xc1   :  { %6213 = dma.done.wait [#allocation7], 2432  }
  0xc2   :  { %6214 = vsyncadd [#allocation7], 4294964864 }
  0xc3   :  { %6215 = dma.done.wait [#allocation10], 64  }
  0xc4   :  { %6216 = vsyncadd [#allocation10], 4294967232 }
  0xc5   :  { %6217 = dma.done.wait [#allocation13], 8224  }
  0xc6   :  { %6218 = vsyncadd [#allocation13], 4294959072 }
  0xc7   :  { %6219 = dma.done.wait [#allocation16], 8224  }
  0xc8   :  { %6220 = vsyncadd [#allocation16], 4294959072 }
  0xc9   :  { %6221 = dma.done.wait [#allocation19], 32  }
  0xca   :  { %6222 = vsyncadd [#allocation19], 4294967264  ;;  %v6241_v1 = vmov 0   ;;  %v6242_v2 = vmov 0.0|0.0   ;;  %v6243_v3 = vmov 0.0   ;;  %s6933_s16 = sld [smem:[#allocation29_spill]]  ;;  %v212_v17 = vlaneseq }
  0xcb   :  { %5664 = vset.pattern.permute.xlu0 %v6241_v1  ;;  %5630 = vmatprep.subr.bf16.mxu0 %v6242_v2  ;;  %s6934_s2 = sld [smem:[#allocation30_spill]]  ;;  %vm6244_vm0 = vmmov 0   ;;  %vm228_vm1 = vcmask 523264   ;;  %s6935_s9 = sld [smem:[#allocation31_spill]]  ;;  %v5665_v29 = vld [vmem:[#allocation3] sm:$0xff]   ;;  %v5667_v31 = vld [vmem:[#allocation3 + $0x8] sm:$0xff]  }
  0xcc   :  { %5278 = vmatprep.subr.bf16.mxu1 %v6243_v3  ;;  %5275 = vmatprep.mubr.msk.f32.mxu0 %vm6244_vm0, %v6243_v3  ;;  %v6542_v18 = vand.u32 127, %v212_v17  ;;  %v5666_v30 = vld [vmem:[#allocation3 + $0x40] sm:$0xff]   ;;  %v5668_v32 = vld [vmem:[#allocation3 + $0x48] sm:$0xff]   ;;  %s6936_s14 = sld [smem:[#allocation32_spill]]  ;;  %v4782_v39 = vld [vmem:[%s6911_s4] ss:$0 sm:$0xff] }
  0xcd   :  { %5282 = vmatprep.mubr.msk.bf16.mxu1 %vm6244_vm0, %v6243_v3  ;;  %5279 = vmatpush3.bf16.xpose.msra.mxu1 %v5665_v29  ;;  %v5669_v42 = vld [vmem:[#allocation3 + $0x80] sm:$0xff]   ;;  %v5670_v44 = vld [vmem:[#allocation3 + $0x88] sm:$0xff]   ;;  %vm530_vm3 = vcmask 261120   ;;  %v5671_v59 = vld [vmem:[#allocation3 + $0x10] sm:$0xff]   ;;  %vm596_vm4 = vcmask 1043456   ;;  %vm579_vm6 = vcmask 64512  }
  0xce   :  { %5280 = vmatprep.subr.bf16.mxu1 %v6243_v3  ;;  %v4786_v45 = vld [vmem:[#allocation6 + $0x4] ss:$0 sm:$0xff]  ;;  %v4783_v56 = vld [vmem:[#allocation6] ss:$0 sm:$0xff]  ;;  %v4789_v61 = vld [vmem:[#allocation6 + $0x8] ss:$0 sm:$0xff] }
  0xcf   :  { %vm2787_vm7 = vcmask 57344   ;;  %vm3995_vm8 = vcmask 1047559   ;;  %s6246_s7 = smov [#allocation21]   ;;  %vm4758_vm9 = vcmask 7175  }
  0xd0   :  { %v211_v4 = vld [vmem:[%s6933_s16] sm:$0xff]  ;;  %s4766_s1 = sshll.u32 %s6246_s7, 4  ;;  %s4767_s1 = int_to_ptr.vmem [resolvable:$true] %s4766_s1 }
  0xd1   :  { %v219_v5 = vld [vmem:[%s6934_s2] sm:$0xff]  ;;  %v220_v6 = vld [vmem:[%s6934_s2 + $0x8] sm:$0xff]  ;;  %215 = vperm.xlu0 %5664, %v211_v4   ;;  %v221_v8 = vld [vmem:[%s6934_s2 + $0x10] sm:$0xff]  ;;  %s6189_s24 = scalar_lea.vmem %s4767_s1, 16  ;;  %p6194_p5 = scmp.lt.s32.totalorder %s4767_s1, %s4767_s1 }
  0xd2   :  { %v5631_v7 = vpack.c.bf16 %v220_v6, %v219_v5  ;;  %v222_v9 = vld [vmem:[%s6934_s2 + $0x18] sm:$0xff]  ;;  %v223_v10 = vld [vmem:[%s6934_s2 + $0x20] sm:$0xff]  ;;  %v224_v12 = vld [vmem:[%s6934_s2 + $0x28] sm:$0xff]  ;;  %p6190_p4 = scmp.ne.s32.totalorder %s4767_s1, %s6189_s24 }
  0xd3   :  { %v5634_v11 = vpack.c.bf16 %v222_v9, %v221_v8  ;;  %v225_v13 = vld [vmem:[%s6934_s2 + $0x30] sm:$0xff]  ;;  %v226_v14 = vld [vmem:[%s6934_s2 + $0x38] sm:$0xff]  ;;  %v5637_v15 = vpack.c.bf16 %v224_v12, %v223_v10  ;;  %v227_v21 = vld [vmem:[%s6935_s9] sm:$0xff]  ;;  %v6596_v10 = vshrl.u32 %v212_v17, 7 }
  0xd4   :  { %5632 = vmatpush3.bf16.msra.mxu0 %v5631_v7  ;;  %v5640_v16 = vpack.c.bf16 %v226_v14, %v225_v13  ;;  %v4781_v37 = vld [vmem:[%s6936_s14] ss:$0 sm:$0xff]  ;;  %v5673_v8 = vld [vmem:[#allocation3 + $0x90] sm:$0xff]  }
  0xd5   :  { %5633 = vmatprep.subr.bf16.mxu0 %v6242_v2  ;;  %5281 = vmatpush3.bf16.xpose.msra.mxu1 %v5667_v31  ;;  %v5672_v4 = vld [vmem:[#allocation3 + $0x18] sm:$0xff]   ;;  %vm304_vm5 = vcmp.le.s32.totalorder %v6542_v18, %v6596_v10 }
  0xd6   :  { %5294 = vmatprep.subr.bf16.mxu1 %v6243_v3  ;;  %v5674_v9 = vld [vmem:[#allocation3 + $0x98] sm:$0xff]  }
  0xd8   :  { %5635 = vmatpush3.bf16.msra.mxu0 %v5634_v11  ;;  %v6245_v11 = vmov -1e+09  }
  0xd9   :  { %5636 = vmatprep.subr.bf16.mxu0 %v6242_v2  ;;  %v6600_v12 = vsel %vm304_vm5, 0.0, %v6245_v11  ;;  %v5681_v11 = vld [vmem:[#allocation8 + $0x10] sm:$0xff]  }
  0xdc   :  { %5638 = vmatpush3.bf16.msra.mxu0 %v5637_v15 }
  0xdd   :  { %5639 = vmatprep.subr.bf16.mxu0 %v6242_v2 }
  0xe0   :  { %5641 = vmatpush3.bf16.msra.mxu0 %v5640_v16 }
  0xe1   :  { %5286 = vmatprep.subr.bf16.mxu0 %v6243_v3 }
 0x150   :  { %v216_v19 = vpop.permute.xlu0 %215 }
 0x151   :  { %vm217_vm2 = vcmp.eq.s32.totalorder %v6542_v18, %v216_v19 }
 0x152   :  { %v218_v20 = vsel %vm217_vm2, 1.0, %v6243_v3 }
 0x153   :  { %5276 = vmatmul.mubr.msk.f32.vlgmr.msra.gmra.mrb[0].mxu0 %vm228_vm1, %v218_v20 }
 0x154   :  { %5290 = vmatprep.mubr.msk.bf16.mxu0 %vm6244_vm0, %v6243_v3  ;;  %5287 = vmatpush3.bf16.xpose.msra.mxu0 %v5666_v30 }
 0x155   :  { %5288 = vmatprep.subr.bf16.mxu0 %v6243_v3 }
 0x15c   :  { %5289 = vmatpush3.bf16.xpose.msra.mxu0 %v5668_v32 }
 0x15d   :  { %5302 = vmatprep.subr.bf16.mxu0 %v6243_v3 }
 0x226   :  { %v298_v22 = vpop.f32.mrb[0].mxu0 }
 0x227   :  { %v6551_v23 = vadd.f32 %v298_v22, %v227_v21  ;;  %v5277_v24 = vpop.f32.mrb[1].mxu0 }
 0x229   :  { %308 = vadd.xlane.f32.xlu0 %v6551_v23 }
 0x2b6   :  { %v309_v25 = vpop.xlane.xlu0 %308 }
 0x2b7   :  { %v311_v26 = vmul.f32 0.0078125, %v309_v25 }
 0x2b9   :  { %v312_v27 = vsub.f32 %v6551_v23, %v311_v26 }
 0x2bb   :  { %v313_v28 = vmul.f32 %v312_v27, %v312_v27 }
 0x2bd   :  { %314 = vadd.xlane.f32.xlu1 %v313_v28 }
 0x34a   :  { %v315_v33 = vpop.xlane.xlu1 %314 }
 0x34b   :  { %v316_v34 = vmul.f32 0.0078125, %v315_v33 }
 0x34d   :  { %v317_v35 = vadd.f32 1e-05, %v316_v34 }
 0x34f   :  { %5889 = vrsqrt.f32 %v317_v35 }
 0x359   :  { %v5890_v36 = vpop.eup %5889 }
 0x35a   :  { %v319_v38 = vmul.f32 %v5890_v36, %v312_v27 }
 0x35c   :  { %v326_v40 = vmul.f32 %v4781_v37, %v319_v38  ;;  %v5675_v37 = vld [vmem:[#allocation3 + $0x50] sm:$0xff]  }
 0x35e   :  { %v333_v41 = vadd.f32 %v4782_v39, %v326_v40  ;;  %v5676_v39 = vld [vmem:[#allocation3 + $0x58] sm:$0xff]  }
 0x360   :  { %v6565_v43 = vpack.c.bf16 %v333_v41, %v333_v41 }
 0x362   :  { %5283 = vmatmul.mubr.bf16.vlgmr.msra.gmra.mrb[0].mxu1 %v6565_v43  ;;  %5291 = vmatmul.mubr.bf16.vlgmr.msra.gmra.mrb[4].mxu0 %v6565_v43 }
 0x363   :  { %5295 = vmatpush3.bf16.xpose.msra.mxu1 %v5669_v42  ;;  %5298 = vmatprep.mubr.msk.bf16.mxu1 %vm6244_vm0, %v6243_v3 }
 0x364   :  { %5296 = vmatprep.subr.bf16.mxu1 %v6243_v3  ;;  %5304 = vmatprep.mubr.msk.bf16.mxu0 %vm6244_vm0, %v6243_v3 }
 0x36b   :  { %5297 = vmatpush3.bf16.xpose.msra.mxu1 %v5670_v44 }
 0x36c   :  { %5308 = vmatprep.subr.bf16.mxu1 %v6243_v3 }
 0x372   :  { %5299 = vmatmul.mubr.bf16.vlgmr.msra.gmra.mrb[4].mxu1 %v6565_v43 }
 0x373   :  { %5310 = vmatprep.mubr.msk.bf16.mxu1 %vm6244_vm0, %v6243_v3 }
 0x435   :  { %v392_v46 = vpop.f32.mrb[0].mxu1  ;;  %v457_v47 = vpop.f32.mrb[4].mxu0 }
 0x436   :  { %v458_v48 = vadd.f32 %v4786_v45, %v457_v47  ;;  %v5284_v49 = vpop.f32.mrb[1].mxu1  ;;  %v5292_v50 = vpop.f32.mrb[5].mxu0  ;;  %v393_v58 = vadd.f32 %v4783_v56, %v392_v46  ;;  %v4797_v45 = vld [vmem:[#allocation6 + $0x5] ss:$0 sm:$0xff] }
 0x437   :  { %v395_v51 = vpop.f32.mrb[2].mxu1  ;;  %v460_v52 = vpop.f32.mrb[6].mxu0  ;;  %v4800_v49 = vld [vmem:[#allocation6 + $0x9] ss:$0 sm:$0xff] }
 0x438   :  { %v529_v53 = vpack.c.bf16 %v458_v48, %v458_v48  ;;  %v5285_v54 = vpop.f32.mrb[3].mxu1  ;;  %v5293_v55 = vpop.f32.mrb[7].mxu0  ;;  %v528_v60 = vpack.c.bf16 %v393_v58, %v393_v58 }
 0x43a   :  { %v535_v57 = vsel %vm530_vm3, %v529_v53, 0  ;;  %v4794_v53 = vld [vmem:[#allocation6 + $0x1] ss:$0 sm:$0xff] }
 0x43b   :  { %5303 = vmatpush3.bf16.xpose.msra.mxu0 %v535_v57 }
 0x43c   :  { %5314 = vmatprep.subr.bf16.mxu0 %v6243_v3 }
 0x442   :  { %5305 = vmatmul.mubr.msk.bf16.vlgmr.msra.gmra.mrb[8].mxu0 %vm530_vm3, %v528_v60 }
 0x443   :  { %5315 = vmatpush3.bf16.xpose.msra.mxu0 %v5671_v59  ;;  %5318 = vmatprep.mubr.msk.bf16.mxu0 %vm6244_vm0, %v6243_v3 }
 0x444   :  { %5316 = vmatprep.subr.bf16.mxu0 %v6243_v3 }
 0x445   :  { %v522_v62 = vpop.f32.mrb[4].mxu1 }
 0x446   :  { %v523_v63 = vadd.f32 %v4789_v61, %v522_v62  ;;  %v5300_v0 = vpop.f32.mrb[5].mxu1 }
 0x447   :  { %v525_v2 = vpop.f32.mrb[6].mxu1 }
 0x448   :  { %v592_v5 = vpack.c.bf16 %v523_v63, %v523_v63  ;;  %v5301_v6 = vpop.f32.mrb[7].mxu1 }
 0x44a   :  { %v598_v7 = vsel %vm596_vm4, %v592_v5, 0 }
 0x44b   :  { %5309 = vmatpush3.bf16.msra.mxu1 %v598_v7  ;;  %5317 = vmatpush3.bf16.xpose.msra.mxu0 %v5672_v4 }
 0x44c   :  { %5330 = vmatprep.subr.bf16.mxu0 %v6243_v3  ;;  %5322 = vmatprep.subr.bf16.mxu1 %v6243_v3 }
 0x452   :  { %5319 = vmatmul.mubr.bf16.vlgmr.msra.gmra.mrb[12].mxu0 %v6565_v43 }
 0x453   :  { %5331 = vmatpush3.bf16.xpose.msra.mxu0 %v5673_v8  ;;  %5334 = vmatprep.mubr.msk.bf16.mxu0 %vm6244_vm0, %v6243_v3 }
 0x454   :  { %5332 = vmatprep.subr.bf16.mxu0 %v6243_v3 }
 0x45b   :  { %5333 = vmatpush3.bf16.xpose.msra.mxu0 %v5674_v9 }
 0x45c   :  { %5350 = vmatprep.subr.bf16.mxu0 %v6243_v3 }
 0x462   :  { %5335 = vmatmul.mubr.bf16.vlgmr.msra.gmra.mrb[16].mxu0 %v6565_v43 }
 0x463   :  { %5354 = vmatprep.mubr.msk.bf16.mxu0 %vm6244_vm0, %v6243_v3  ;;  %5351 = vmatpush3.bf16.msra.mxu0 %v5681_v11 }
 0x464   :  { %5352 = vmatprep.subr.bf16.mxu0 %v6243_v3 }
 0x515   :  { %v571_v13 = vpop.f32.mrb[8].mxu0 }
 0x516   :  { %v577_v14 = vmul.f32 0.17677669, %v571_v13  ;;  %v5306_v15 = vpop.f32.mrb[9].mxu0  ;;  %v5682_v13 = vld [vmem:[#allocation8 + $0x18] sm:$0xff]  }
 0x517   :  { %v574_v16 = vpop.f32.mrb[10].mxu0  ;;  %5353 = vmatpush3.bf16.msra.mxu0 %v5682_v13 }
 0x518   :  { %v5307_v19 = vpop.f32.mrb[11].mxu0  ;;  %v578_v20 = vadd.f32 %v577_v14, %v6600_v12  ;;  %5366 = vmatprep.subr.bf16.mxu0 %v6243_v3 }
 0x519   :  { %v5677_v19 = vld [vmem:[#allocation8] sm:$0xff]  }
 0x51a   :  { %v580_v21 = vsel %vm579_vm6, %v578_v20, -inf }
 0x51b   :  { %581 = vmax.xlane.f32.xlu1 %v580_v21  ;;  %v5678_v21 = vld [vmem:[#allocation8 + $0x8] sm:$0xff]  }
 0x525   :  { %v704_v22 = vpop.f32.mrb[12].mxu0 }
 0x526   :  { %v5320_v17 = vpop.f32.mrb[13].mxu0  ;;  %v705_v56 = vadd.f32 %v4794_v53, %v704_v22 }
 0x527   :  { %v707_v24 = vpop.f32.mrb[14].mxu0  ;;  %v5679_v17 = vld [vmem:[#allocation3 + $0x60] sm:$0xff]  }
 0x528   :  { %v5321_v25 = vpop.f32.mrb[15].mxu0  ;;  %v840_v58 = vpack.c.bf16 %v705_v56, %v705_v56  ;;  %v5680_v24 = vld [vmem:[#allocation3 + $0x68] sm:$0xff]  }
 0x535   :  { %v834_v26 = vpop.f32.mrb[16].mxu0 }
 0x536   :  { %v5336_v18 = vpop.f32.mrb[17].mxu0  ;;  %v835_v54 = vadd.f32 %v4800_v49, %v834_v26  ;;  %v5683_v26 = vld [vmem:[#allocation3 + $0x20] sm:$0xff]  }
 0x537   :  { %v837_v27 = vpop.f32.mrb[18].mxu0 }
 0x538   :  { %v5337_v28 = vpop.f32.mrb[19].mxu0  ;;  %v902_v57 = vpack.c.bf16 %v835_v54, %v835_v54 }
 0x53a   :  { %v907_v59 = vsel %vm596_vm4, %v902_v57, 0 }
 0x5a8   :  { %v582_v29 = vpop.xlane.xlu1 %581 }
 0x5a9   :  { %v583_v30 = vsub.f32 %v578_v20, %v582_v29 }
 0x5ab   :  { %v584_v31 = vmul.f32 1.442695, %v583_v30 }
 0x5ad   :  { %5891 = vpow2.f32 %v584_v31  ;;  %v5684_v31 = vld [vmem:[#allocation3 + $0x28] sm:$0xff]  }
 0x5b7   :  { %v5892_v32 = vpop.eup %5891 }
 0x5b8   :  { %v586_v33 = vsel %vm579_vm6, %v5892_v32, 0.0 }
 0x5b9   :  { %587 = vadd.xlane.f32.xlu1 %v586_v33 }
 0x646   :  { %v588_v34 = vpop.xlane.xlu1 %587 }
 0x647   :  { %5893 = vrcp.f32 %v588_v34 }
 0x651   :  { %v5894_v35 = vpop.eup %5893 }
 0x652   :  { %v590_v36 = vmul.f32 %v5894_v35, %v5892_v32  ;;  %v5685_v35 = vld [vmem:[#allocation3 + $0xa0] sm:$0xff]  }
 0x654   :  { %v591_v38 = vpack.c.bf16 %v590_v36, %v590_v36  ;;  %v5686_v36 = vld [vmem:[#allocation3 + $0xa8] sm:$0xff]  }
 0x656   :  { %5311 = vmatmul.mubr.msk.bf16.vlgmr.msra.gmra.mrb[8].mxu1 %vm579_vm6, %v591_v38 }
 0x657   :  { %5323 = vmatpush3.bf16.xpose.msra.mxu1 %v5675_v37  ;;  %5326 = vmatprep.mubr.msk.bf16.mxu1 %vm6244_vm0, %v6243_v3  ;;  %v4814_v37 = vld [vmem:[#allocation6 + $0x6] ss:$0 sm:$0xff] }
 0x658   :  { %5324 = vmatprep.subr.bf16.mxu1 %v6243_v3 }
 0x65f   :  { %5325 = vmatpush3.bf16.xpose.msra.mxu1 %v5676_v39 }
 0x660   :  { %5338 = vmatprep.subr.bf16.mxu1 %v6243_v3 }
 0x666   :  { %5327 = vmatmul.mubr.bf16.vlgmr.msra.gmra.mrb[12].mxu1 %v6565_v43 }
 0x667   :  { %5340 = vmatprep.mubr.msk.bf16.mxu1 %vm6244_vm0, %v6243_v3 }
 0x729   :  { %v634_v40 = vpop.f32.mrb[8].mxu1 }
 0x72a   :  { %v5312_v41 = vpop.f32.mrb[9].mxu1  ;;  %v640_v22 = vpack.c.bf16 %v634_v40, %v634_v40 }
 0x72b   :  { %v637_v42 = vpop.f32.mrb[10].mxu1 }
 0x72c   :  { %v5313_v44 = vpop.f32.mrb[11].mxu1 }
 0x739   :  { %v769_v46 = vpop.f32.mrb[12].mxu1 }
 0x73a   :  { %v770_v47 = vadd.f32 %v4797_v45, %v769_v46  ;;  %v5328_v48 = vpop.f32.mrb[13].mxu1 }
 0x73b   :  { %v772_v50 = vpop.f32.mrb[14].mxu1 }
 0x73c   :  { %v841_v51 = vpack.c.bf16 %v770_v47, %v770_v47  ;;  %v5329_v52 = vpop.f32.mrb[15].mxu1 }
 0x73e   :  { %v846_v55 = vsel %vm530_vm3, %v841_v51, 0  ;;  %v4811_v51 = vld [vmem:[#allocation6 + $0x2] ss:$0 sm:$0xff] }
 0x73f   :  { %5339 = vmatpush3.bf16.xpose.msra.mxu1 %v846_v55 }
 0x740   :  { %5344 = vmatprep.subr.bf16.mxu1 %v6243_v3 }
 0x746   :  { %5341 = vmatmul.mubr.msk.bf16.vlgmr.msra.gmra.mrb[16].mxu1 %vm530_vm3, %v840_v58  ;;  %v4817_v58 = vld [vmem:[#allocation6 + $0xa] ss:$0 sm:$0xff] }
 0x747   :  { %5345 = vmatpush3.bf16.msra.mxu1 %v907_v59  ;;  %5346 = vmatprep.mubr.msk.bf16.mxu1 %vm6244_vm0, %v6243_v3 }
 0x748   :  { %5358 = vmatprep.subr.bf16.mxu1 %v6243_v3 }
 0x819   :  { %v882_v60 = vpop.f32.mrb[16].mxu1 }
 0x81a   :  { %v888_v61 = vmul.f32 0.17677669, %v882_v60  ;;  %v5342_v62 = vpop.f32.mrb[17].mxu1 }
 0x81b   :  { %v885_v63 = vpop.f32.mrb[18].mxu1 }
 0x81c   :  { %v5343_v0 = vpop.f32.mrb[19].mxu1  ;;  %v889_v2 = vadd.f32 %v888_v61, %v6600_v12 }
 0x81e   :  { %v890_v4 = vsel %vm579_vm6, %v889_v2, -inf }
 0x81f   :  { %891 = vmax.xlane.f32.xlu1 %v890_v4 }
 0x8ac   :  { %v892_v5 = vpop.xlane.xlu1 %891 }
 0x8ad   :  { %v893_v6 = vsub.f32 %v889_v2, %v892_v5 }
 0x8af   :  { %v894_v7 = vmul.f32 1.442695, %v893_v6 }
 0x8b1   :  { %5895 = vpow2.f32 %v894_v7 }
 0x8bb   :  { %v5896_v8 = vpop.eup %5895 }
 0x8bc   :  { %v896_v9 = vsel %vm579_vm6, %v5896_v8, 0.0 }
 0x8bd   :  { %897 = vadd.xlane.f32.xlu1 %v896_v9 }
 0x94a   :  { %v898_v14 = vpop.xlane.xlu1 %897 }
 0x94b   :  { %5897 = vrcp.f32 %v898_v14 }
 0x955   :  { %v5898_v15 = vpop.eup %5897 }
 0x956   :  { %v900_v16 = vmul.f32 %v5898_v15, %v5896_v8 }
 0x958   :  { %v901_v20 = vpack.c.bf16 %v900_v16, %v900_v16 }
 0x95a   :  { %5347 = vmatmul.mubr.msk.bf16.vlgmr.msra.gmra.mrb[20].mxu1 %vm579_vm6, %v901_v20  ;;  %v5691_v20 = vld [vmem:[#allocation8 + $0x20] sm:$0xff]  }
 0x95b   :  { %5359 = vmatpush3.bf16.msra.mxu1 %v5677_v19  ;;  %5362 = vmatprep.mubr.msk.bf16.mxu1 %vm6244_vm0, %v6243_v3 }
 0x95c   :  { %5360 = vmatprep.subr.bf16.mxu1 %v6243_v3 }
 0x95f   :  { %5361 = vmatpush3.bf16.msra.mxu1 %v5678_v21  ;;  %v5692_v21 = vld [vmem:[#allocation8 + $0x28] sm:$0xff]  }
 0x960   :  { %5374 = vmatprep.subr.bf16.mxu1 %v6243_v3 }
 0x962   :  { %5363 = vmatmul.mubr.msk.bf16.vlgmr.msra.gmra.mrb[24].mxu1 %vm530_vm3, %v640_v22 }
 0x963   :  { %5378 = vmatprep.mubr.msk.bf16.mxu1 %vm6244_vm0, %v6243_v3 }
 0x968   :  { %5375 = vmatpush3.bf16.xpose.msra.mxu1 %v5679_v17 }
 0x969   :  { %5376 = vmatprep.subr.bf16.mxu1 %v6243_v3 }
 0x970   :  { %5377 = vmatpush3.bf16.xpose.msra.mxu1 %v5680_v24 }
 0x971   :  { %5390 = vmatprep.subr.bf16.mxu1 %v6243_v3 }
 0x977   :  { %5379 = vmatmul.mubr.bf16.vlgmr.msra.gmra.mrb[28].mxu1 %v6565_v43 }
 0x978   :  { %5392 = vmatprep.mubr.msk.bf16.mxu1 %vm6244_vm0, %v6243_v3 }
 0xa2d   :  { %v943_v25 = vpop.f32.mrb[20].mxu1 }
 0xa2e   :  { %v949_v18 = vpack.c.bf16 %v943_v25, %v943_v25  ;;  %v5348_v27 = vpop.f32.mrb[21].mxu1  ;;  %v5687_v25 = vld [vmem:[#allocation3 + $0x30] sm:$0xff]  }
 0xa2f   :  { %v946_v28 = vpop.f32.mrb[22].mxu1  ;;  %v5689_v27 = vld [vmem:[#allocation3 + $0xb0] sm:$0xff]  }
 0xa30   :  { %v5349_v29 = vpop.f32.mrb[23].mxu1  ;;  %5355 = vmatmul.mubr.msk.bf16.vlgmr.msra.gmra.mrb[20].mxu0 %vm530_vm3, %v949_v18  ;;  %v5688_v18 = vld [vmem:[#allocation3 + $0x38] sm:$0xff]  }
 0xa31   :  { %5367 = vmatpush3.bf16.xpose.msra.mxu0 %v5683_v26  ;;  %5370 = vmatprep.mubr.msk.bf16.mxu0 %vm6244_vm0, %v6243_v3  ;;  %v5690_v28 = vld [vmem:[#allocation3 + $0xb8] sm:$0xff]  }
 0xa32   :  { %5368 = vmatprep.subr.bf16.mxu0 %v6243_v3 }
 0xa35   :  { %v1059_v30 = vpop.f32.mrb[24].mxu1 }
 0xa36   :  { %v5364_v32 = vpop.f32.mrb[25].mxu1 }
 0xa37   :  { %v1062_v33 = vpop.f32.mrb[26].mxu1 }
 0xa38   :  { %v5365_v34 = vpop.f32.mrb[27].mxu1 }
 0xa39   :  { %5369 = vmatpush3.bf16.xpose.msra.mxu0 %v5684_v31 }
 0xa3a   :  { %5382 = vmatprep.subr.bf16.mxu0 %v6243_v3 }
 0xa40   :  { %5371 = vmatmul.mubr.bf16.vlgmr.msra.gmra.mrb[24].mxu0 %v6565_v43 }
 0xa41   :  { %5383 = vmatpush3.bf16.xpose.msra.mxu0 %v5685_v35  ;;  %5386 = vmatprep.mubr.msk.bf16.mxu0 %vm6244_vm0, %v6243_v3  ;;  %v5694_v35 = vld [vmem:[#allocation3 + $0x78] sm:$0xff]  }
 0xa42   :  { %5384 = vmatprep.subr.bf16.mxu0 %v6243_v3 }
 0xa49   :  { %5385 = vmatpush3.bf16.xpose.msra.mxu0 %v5686_v36 }
 0xa4a   :  { %v1189_v38 = vpop.f32.mrb[28].mxu1  ;;  %5402 = vmatprep.subr.bf16.mxu0 %v6243_v3 }
 0xa4b   :  { %v1190_v39 = vadd.f32 %v4814_v37, %v1189_v38  ;;  %v5380_v40 = vpop.f32.mrb[29].mxu1 }
 0xa4c   :  { %v1192_v41 = vpop.f32.mrb[30].mxu1 }
 0xa4d   :  { %v1261_v42 = vpack.c.bf16 %v1190_v39, %v1190_v39  ;;  %v5381_v44 = vpop.f32.mrb[31].mxu1 }
 0xa4f   :  { %v1266_v45 = vsel %vm530_vm3, %v1261_v42, 0 }
 0xa50   :  { %5387 = vmatmul.mubr.bf16.vlgmr.msra.gmra.mrb[28].mxu0 %v6565_v43  ;;  %5391 = vmatpush3.bf16.xpose.msra.mxu1 %v1266_v45 }
 0xa51   :  { %5396 = vmatprep.subr.bf16.mxu1 %v6243_v3  ;;  %5406 = vmatprep.mubr.msk.bf16.mxu0 %vm6244_vm0, %v6243_v3 }
 0xa52   :  { %5403 = vmatpush3.bf16.msra.mxu0 %v5691_v20 }
 0xa53   :  { %5404 = vmatprep.subr.bf16.mxu0 %v6243_v3 }
 0xa56   :  { %5405 = vmatpush3.bf16.msra.mxu0 %v5692_v21 }
 0xa57   :  { %5418 = vmatprep.subr.bf16.mxu0 %v6243_v3 }
 0xb03   :  { %v1004_v46 = vpop.f32.mrb[20].mxu0 }
 0xb04   :  { %v6653_v47 = vadd.f32 %v1059_v30, %v1004_v46  ;;  %v5356_v48 = vpop.f32.mrb[21].mxu0  ;;  %v5693_v30 = vld [vmem:[#allocation3 + $0x70] sm:$0xff]  }
 0xb05   :  { %v1007_v49 = vpop.f32.mrb[22].mxu0 }
 0xb06   :  { %v5357_v50 = vpop.f32.mrb[23].mxu0 }
 0xb13   :  { %v1124_v52 = vpop.f32.mrb[24].mxu0 }
 0xb14   :  { %v1125_v53 = vadd.f32 %v4811_v51, %v1124_v52  ;;  %v5372_v54 = vpop.f32.mrb[25].mxu0  ;;  %v4828_v51 = vld [vmem:[#allocation6 + $0x7] ss:$0 sm:$0xff] }
 0xb15   :  { %v1127_v55 = vpop.f32.mrb[26].mxu0 }
 0xb16   :  { %v1260_v56 = vpack.c.bf16 %v1125_v53, %v1125_v53  ;;  %v5373_v57 = vpop.f32.mrb[27].mxu0  ;;  %v4831_v55 = vld [vmem:[#allocation6 + $0xb] ss:$0 sm:$0xff] }
 0xb18   :  { %5393 = vmatmul.mubr.msk.bf16.vlgmr.msra.gmra.mrb[32].mxu1 %vm530_vm3, %v1260_v56 }
 0xb19   :  { %5398 = vmatprep.mubr.msk.bf16.mxu1 %vm6244_vm0, %v6243_v3 }
 0xb23   :  { %v1254_v59 = vpop.f32.mrb[28].mxu0 }
 0xb24   :  { %v1255_v60 = vadd.f32 %v4817_v58, %v1254_v59  ;;  %v5388_v61 = vpop.f32.mrb[29].mxu0  ;;  %v4825_v58 = vld [vmem:[#allocation6 + $0x3] ss:$0 sm:$0xff] }
 0xb25   :  { %v1257_v62 = vpop.f32.mrb[30].mxu0 }
 0xb26   :  { %v1322_v63 = vpack.c.bf16 %v1255_v60, %v1255_v60  ;;  %v5389_v0 = vpop.f32.mrb[31].mxu0 }
 0xb28   :  { %v1327_v2 = vsel %vm596_vm4, %v1322_v63, 0 }
 0xb29   :  { %5397 = vmatpush3.bf16.msra.mxu1 %v1327_v2 }
 0xb2a   :  { %5410 = vmatprep.subr.bf16.mxu1 %v6243_v3 }
 0xbeb   :  { %v1302_v4 = vpop.f32.mrb[32].mxu1 }
 0xbec   :  { %v1308_v5 = vmul.f32 0.17677669, %v1302_v4  ;;  %v5394_v6 = vpop.f32.mrb[33].mxu1 }
 0xbed   :  { %v1305_v7 = vpop.f32.mrb[34].mxu1 }
 0xbee   :  { %v5395_v8 = vpop.f32.mrb[35].mxu1  ;;  %v1309_v9 = vadd.f32 %v1308_v5, %v6600_v12 }
 0xbf0   :  { %v1310_v11 = vsel %vm579_vm6, %v1309_v9, -inf }
 0xbf1   :  { %1311 = vmax.xlane.f32.xlu1 %v1310_v11 }
 0xc7e   :  { %v1312_v13 = vpop.xlane.xlu1 %1311 }
 0xc7f   :  { %v1313_v14 = vsub.f32 %v1309_v9, %v1312_v13 }
 0xc81   :  { %v1314_v15 = vmul.f32 1.442695, %v1313_v14 }
 0xc83   :  { %5899 = vpow2.f32 %v1314_v15 }
 0xc8d   :  { %v5900_v16 = vpop.eup %5899 }
 0xc8e   :  { %v1316_v19 = vsel %vm579_vm6, %v5900_v16, 0.0 }
 0xc8f   :  { %1317 = vadd.xlane.f32.xlu1 %v1316_v19 }
 0xd1c   :  { %v1318_v22 = vpop.xlane.xlu1 %1317 }
 0xd1d   :  { %5901 = vrcp.f32 %v1318_v22  ;;  %v5696_v22 = vld [vmem:[#allocation8 + $0x38] sm:$0xff]  }
 0xd27   :  { %v5902_v17 = vpop.eup %5901 }
 0xd28   :  { %v1320_v24 = vmul.f32 %v5902_v17, %v5900_v16  ;;  %v5695_v16 = vld [vmem:[#allocation8 + $0x30] sm:$0xff]  }
 0xd2a   :  { %v1321_v26 = vpack.c.bf16 %v1320_v24, %v1320_v24 }
 0xd2c   :  { %5399 = vmatmul.mubr.msk.bf16.vlgmr.msra.gmra.mrb[36].mxu1 %vm579_vm6, %v1321_v26 }
 0xd2d   :  { %5411 = vmatpush3.bf16.xpose.msra.mxu1 %v5687_v25  ;;  %5414 = vmatprep.mubr.msk.bf16.mxu1 %vm6244_vm0, %v6243_v3 }
 0xd2e   :  { %5412 = vmatprep.subr.bf16.mxu1 %v6243_v3 }
 0xd35   :  { %5413 = vmatpush3.bf16.xpose.msra.mxu1 %v5688_v18 }
 0xd36   :  { %5426 = vmatprep.subr.bf16.mxu1 %v6243_v3 }
 0xd3c   :  { %5415 = vmatmul.mubr.bf16.vlgmr.msra.gmra.mrb[40].mxu1 %v6565_v43 }
 0xd3d   :  { %5427 = vmatpush3.bf16.xpose.msra.mxu1 %v5689_v27  ;;  %5430 = vmatprep.mubr.msk.bf16.mxu1 %vm6244_vm0, %v6243_v3 }
 0xd3e   :  { %5428 = vmatprep.subr.bf16.mxu1 %v6243_v3 }
 0xd45   :  { %5429 = vmatpush3.bf16.xpose.msra.mxu1 %v5690_v28  ;;  %v4839_v28 = vld [vmem:[#allocation9] ss:$0 sm:$0xff] }
 0xd46   :  { %5446 = vmatprep.subr.bf16.mxu1 %v6243_v3 }
 0xd4c   :  { %5431 = vmatmul.mubr.bf16.vlgmr.msra.gmra.mrb[44].mxu1 %v6565_v43 }
 0xd4d   :  { %5450 = vmatprep.mubr.msk.bf16.mxu1 %vm6244_vm0, %v6243_v3  ;;  %5447 = vmatpush3.bf16.msra.mxu1 %v5695_v16  ;;  %v4841_v16 = vld [vmem:[#allocation12] ss:$0 sm:$0xff] }
 0xd4e   :  { %5448 = vmatprep.subr.bf16.mxu1 %v6243_v3 }
 0xd51   :  { %5449 = vmatpush3.bf16.msra.mxu1 %v5696_v22  ;;  %v5746_v22 = vld [vmem:[#allocation15 + $0xc0] sm:$0xff]  }
 0xdff   :  { %v1363_v29 = vpop.f32.mrb[36].mxu1 }
 0xe00   :  { %v1369_v31 = vpack.c.bf16 %v1363_v29, %v1363_v29  ;;  %v5400_v32 = vpop.f32.mrb[37].mxu1 }
 0xe01   :  { %v1366_v33 = vpop.f32.mrb[38].mxu1 }
 0xe02   :  { %v5401_v34 = vpop.f32.mrb[39].mxu1  ;;  %5407 = vmatmul.mubr.msk.bf16.vlgmr.msra.gmra.mrb[32].mxu0 %vm530_vm3, %v1369_v31 }
 0xe03   :  { %5419 = vmatpush3.bf16.xpose.msra.mxu0 %v5693_v30  ;;  %5422 = vmatprep.mubr.msk.bf16.mxu0 %vm6244_vm0, %v6243_v3 }
 0xe04   :  { %5420 = vmatprep.subr.bf16.mxu0 %v6243_v3 }
 0xe0b   :  { %5421 = vmatpush3.bf16.xpose.msra.mxu0 %v5694_v35  ;;  %v5697_v35 = vld [vmem:[#allocation14] ss:$16 sps:$4 sm:$0xff]  }
 0xe0c   :  { %5434 = vmatprep.subr.bf16.mxu0 %v6243_v3 }
 0xe0f   :  { %v1490_v36 = vpop.f32.mrb[40].mxu1 }
 0xe10   :  { %v5416_v37 = vpop.f32.mrb[41].mxu1  ;;  %v1491_v61 = vadd.f32 %v4825_v58, %v1490_v36  ;;  %v5699_v36 = vld [vmem:[#allocation14 + $0x4] ss:$16 sps:$4 sm:$0xff]   ;;  %v5726_v58 = vld [vmem:[#allocation14 + $0x8c] ss:$16 sps:$4 sm:$0xff]  }
 0xe11   :  { %v1493_v38 = vpop.f32.mrb[42].mxu1  ;;  %v5700_v37 = vld [vmem:[#allocation14 + $0x8] ss:$16 sps:$4 sm:$0xff]  }
 0xe12   :  { %v5417_v39 = vpop.f32.mrb[43].mxu1  ;;  %5423 = vmatmul.mubr.bf16.vlgmr.msra.gmra.mrb[36].mxu0 %v6565_v43  ;;  %v1626_v62 = vpack.c.bf16 %v1491_v61, %v1491_v61  ;;  %v5702_v38 = vld [vmem:[#allocation14 + $0xc] ss:$16 sps:$4 sm:$0xff]   ;;  %v5727_v61 = vld [vmem:[#allocation14 + $0xa0] ss:$16 sps:$4 sm:$0xff]  }
 0xe13   :  { %5436 = vmatprep.mubr.msk.bf16.mxu0 %vm6244_vm0, %v6243_v3  ;;  %v5705_v39 = vld [vmem:[#allocation14 + $0x24] ss:$16 sps:$4 sm:$0xff]   ;;  %2089 = vmatprep.subr.bf16.mxu1 %v5702_v38 }
 0xe14   :  { %v5762_v38 = vld [vmem:[#allocation15 + $0xe0] sm:$0xff]  }
 0xe1f   :  { %v1620_v40 = vpop.f32.mrb[44].mxu1 }
 0xe20   :  { %v5432_v41 = vpop.f32.mrb[45].mxu1  ;;  %v1621_v59 = vadd.f32 %v4831_v55, %v1620_v40  ;;  %v5708_v40 = vld [vmem:[#allocation14 + $0x2c] ss:$16 sps:$4 sm:$0xff]   ;;  %v5718_v55 = vld [vmem:[#allocation14 + $0x68] ss:$16 sps:$4 sm:$0xff]  }
 0xe21   :  { %v1623_v42 = vpop.f32.mrb[46].mxu1  ;;  %v5703_v41 = vld [vmem:[#allocation14 + $0x20] ss:$16 sps:$4 sm:$0xff]  }
 0xe22   :  { %v5433_v44 = vpop.f32.mrb[47].mxu1  ;;  %v5706_v42 = vld [vmem:[#allocation14 + $0x28] ss:$16 sps:$4 sm:$0xff]  }
 0xe23   :  { %v5711_v44 = vld [vmem:[#allocation14 + $0x44] ss:$16 sps:$4 sm:$0xff]  }
 0xed5   :  { %v1424_v45 = vpop.f32.mrb[32].mxu0 }
 0xed6   :  { %v1430_v46 = vadd.f32 %v1424_v45, %v6653_v47  ;;  %v5408_v48 = vpop.f32.mrb[33].mxu0  ;;  %v1688_v47 = vpack.c.bf16 %v1621_v59, %v1621_v59  ;;  %v5714_v45 = vld [vmem:[#allocation14 + $0x4c] ss:$16 sps:$4 sm:$0xff]   ;;  %v5729_v59 = vld [vmem:[#allocation14 + $0xa4] ss:$16 sps:$4 sm:$0xff]  }
 0xed7   :  { %v1427_v49 = vpop.f32.mrb[34].mxu0 }
 0xed8   :  { %v5409_v50 = vpop.f32.mrb[35].mxu0  ;;  %v1693_v63 = vsel %vm596_vm4, %v1688_v47, 0  ;;  %v5730_v47 = vld [vmem:[#allocation14 + $0xa8] ss:$16 sps:$4 sm:$0xff]  }
 0xee5   :  { %v1555_v52 = vpop.f32.mrb[36].mxu0 }
 0xee6   :  { %v1556_v53 = vadd.f32 %v4828_v51, %v1555_v52  ;;  %v5424_v54 = vpop.f32.mrb[37].mxu0  ;;  %v5717_v52 = vld [vmem:[#allocation14 + $0x64] ss:$16 sps:$4 sm:$0xff]  }
 0xee7   :  { %v1558_v56 = vpop.f32.mrb[38].mxu0  ;;  %v5715_v54 = vld [vmem:[#allocation14 + $0x60] ss:$16 sps:$4 sm:$0xff]  }
 0xee8   :  { %v1627_v43 = vpack.c.bf16 %v1556_v53, %v1556_v53  ;;  %v5425_v57 = vpop.f32.mrb[39].mxu0  ;;  %v5720_v53 = vld [vmem:[#allocation14 + $0x6c] ss:$16 sps:$4 sm:$0xff]   ;;  %v5721_v56 = vld [vmem:[#allocation14 + $0x80] ss:$16 sps:$4 sm:$0xff]  }
 0xee9   :  { %v5724_v57 = vld [vmem:[#allocation14 + $0x88] ss:$16 sps:$4 sm:$0xff]  }
 0xeea   :  { %v1632_v60 = vsel %vm530_vm3, %v1627_v43, 0  ;;  %v5723_v43 = vld [vmem:[#allocation14 + $0x84] ss:$16 sps:$4 sm:$0xff]  }
 0xeeb   :  { %5435 = vmatpush3.bf16.xpose.msra.mxu0 %v1632_v60  ;;  %v5732_v60 = vld [vmem:[#allocation14 + $0xac] ss:$16 sps:$4 sm:$0xff]  }
 0xeec   :  { %5440 = vmatprep.subr.bf16.mxu0 %v6243_v3 }
 0xef2   :  { %5437 = vmatmul.mubr.msk.bf16.vlgmr.msra.gmra.mrb[40].mxu0 %vm530_vm3, %v1626_v62  ;;  %v5735_v62 = vld [vmem:[#allocation14 + $0xc4] ss:$16 sps:$4 sm:$0xff]  }
 0xef3   :  { %5441 = vmatpush3.bf16.msra.mxu0 %v1693_v63  ;;  %5442 = vmatprep.mubr.msk.bf16.mxu0 %vm6244_vm0, %v6243_v3  ;;  %v5738_v63 = vld [vmem:[#allocation14 + $0xcc] ss:$16 sps:$4 sm:$0xff]  }
 0xef4   :  { %2048 = vmatprep.subr.bf16.mxu0 %v5699_v36  ;;  %v5760_v36 = vld [vmem:[#allocation15 + $0x98] sm:$0xff]  }
 0xfc5   :  { %v1668_v0 = vpop.f32.mrb[40].mxu0 }
 0xfc6   :  { %v1674_v2 = vmul.f32 0.17677669, %v1668_v0  ;;  %v5438_v4 = vpop.f32.mrb[41].mxu0  ;;  %v5733_v0 = vld [vmem:[#allocation14 + $0xc0] ss:$16 sps:$4 sm:$0xff]  }
 0xfc7   :  { %v1671_v5 = vpop.f32.mrb[42].mxu0  ;;  %v5741_v4 = vld [vmem:[#allocation14 + $0xe4] ss:$16 sps:$4 sm:$0xff]  }
 0xfc8   :  { %v5439_v6 = vpop.f32.mrb[43].mxu0  ;;  %v1675_v7 = vadd.f32 %v1674_v2, %v6600_v12  ;;  %v5736_v2 = vld [vmem:[#allocation14 + $0xc8] ss:$16 sps:$4 sm:$0xff]   ;;  %v5744_v5 = vld [vmem:[#allocation14 + $0xec] ss:$16 sps:$4 sm:$0xff]  }
 0xfc9   :  { %v5739_v6 = vld [vmem:[#allocation14 + $0xe0] ss:$16 sps:$4 sm:$0xff]  }
 0xfca   :  { %v1676_v8 = vsel %vm579_vm6, %v1675_v7, -inf }
 0xfcb   :  { %1677 = vmax.xlane.f32.xlu1 %v1676_v8 }
0x1058   :  { %v1678_v9 = vpop.xlane.xlu1 %1677 }
0x1059   :  { %v1679_v11 = vsub.f32 %v1675_v7, %v1678_v9  ;;  %v5742_v7 = vld [vmem:[#allocation14 + $0xe8] ss:$16 sps:$4 sm:$0xff]  }
0x105b   :  { %v1680_v13 = vmul.f32 1.442695, %v1679_v11 }
0x105d   :  { %5903 = vpow2.f32 %v1680_v13 }
0x1067   :  { %v5904_v14 = vpop.eup %5903 }
0x1068   :  { %v1682_v15 = vsel %vm579_vm6, %v5904_v14, 0.0 }
0x1069   :  { %1683 = vadd.xlane.f32.xlu1 %v1682_v15 }
0x10f6   :  { %v1684_v19 = vpop.xlane.xlu1 %1683 }
0x10f7   :  { %5905 = vrcp.f32 %v1684_v19 }
0x1101   :  { %v5906_v20 = vpop.eup %5905 }
0x1102   :  { %v1686_v21 = vmul.f32 %v5906_v20, %v5904_v14  ;;  %v4840_v14 = vld [vmem:[#allocation11] ss:$0 sm:$0xff] }
0x1104   :  { %v1687_v12 = vpack.c.bf16 %v1686_v21, %v1686_v21 }
0x1106   :  { %5443 = vmatmul.mubr.msk.bf16.vlgmr.msra.gmra.mrb[44].mxu0 %vm579_vm6, %v1687_v12  ;;  %v5745_v12 = vld [vmem:[#allocation15 + $0x40] sm:$0xff]  }
0x1107   :  { %2080 = vmatprep.mubr.bf16.mxu0 %v6241_v1  ;;  %2049 = vmatpush1.bf16.msra.mxu0 %v5697_v35  ;;  %v5759_v35 = vld [vmem:[#allocation15 + $0x18] sm:$0xff]  }
0x1108   :  { %2050 = vmatprep.subr.bf16.mxu0 %v5705_v39  ;;  %v5763_v39 = vld [vmem:[#allocation15 + $0x20] sm:$0xff]  }
0x110b   :  { %2051 = vmatpush1.bf16.msra.mxu0 %v5703_v41  ;;  %v5765_v41 = vld [vmem:[#allocation15 + $0x68] sm:$0xff]  }
0x110c   :  { %2052 = vmatprep.subr.bf16.mxu0 %v5711_v44  ;;  %v5767_v44 = vld [vmem:[#allocation15 + $0x28] sm:$0xff]  }
0x11d9   :  { %v1729_v17 = vpop.f32.mrb[44].mxu0 }
0x11da   :  { %v1735_v24 = vpack.c.bf16 %v1729_v17, %v1729_v17  ;;  %v5444_v25 = vpop.f32.mrb[45].mxu0  ;;  %v5747_v17 = vld [vmem:[#allocation15] sm:$0xff]  }
0x11db   :  { %v1732_v26 = vpop.f32.mrb[46].mxu0  ;;  %v5749_v25 = vld [vmem:[#allocation15 + $0x48] sm:$0xff]  }
0x11dc   :  { %v5445_v18 = vpop.f32.mrb[47].mxu0  ;;  %5451 = vmatmul.mubr.msk.bf16.vlgmr.msra.gmra.mrb[48].mxu1 %vm530_vm3, %v1735_v24  ;;  %v5748_v24 = vld [vmem:[#allocation15 + $0x80] sm:$0xff]   ;;  %v5750_v26 = vld [vmem:[#allocation15 + $0xc8] sm:$0xff]  }
0x11dd   :  { %2121 = vmatprep.mubr.bf16.mxu1 %v6241_v1  ;;  %2090 = vmatpush1.bf16.msra.mxu1 %v5700_v37  ;;  %v5751_v18 = vld [vmem:[#allocation15 + $0x8] sm:$0xff]   ;;  %v5761_v37 = vld [vmem:[#allocation15 + $0x60] sm:$0xff]  }
0x11de   :  { %2091 = vmatprep.subr.bf16.mxu1 %v5708_v40  ;;  %v5764_v40 = vld [vmem:[#allocation15 + $0xa0] sm:$0xff]  }
0x11e1   :  { %2092 = vmatpush1.bf16.msra.mxu1 %v5706_v42  ;;  %v5766_v42 = vld [vmem:[#allocation15 + $0xe8] sm:$0xff]  }
0x11e2   :  { %2093 = vmatprep.subr.bf16.mxu1 %v5714_v45  ;;  %v5768_v45 = vld [vmem:[#allocation15 + $0xa8] sm:$0xff]  }
0x12af   :  { %v1790_v27 = vpop.f32.mrb[48].mxu1 }
0x12b0   :  { %v1796_v29 = vadd.f32 %v1790_v27, %v1430_v46  ;;  %v5452_v30 = vpop.f32.mrb[49].mxu1  ;;  %v5712_v46 = vld [vmem:[#allocation14 + $0x48] ss:$16 sps:$4 sm:$0xff]  }
0x12b1   :  { %v1793_v31 = vpop.f32.mrb[50].mxu1  ;;  %2094 = vmatpush1.bf16.msra.mxu1 %v5712_v46  ;;  %v5752_v27 = vld [vmem:[#allocation15 + $0x88] sm:$0xff]   ;;  %v5755_v30 = vld [vmem:[#allocation15 + $0x10] sm:$0xff]  }
0x12b2   :  { %v1804_v32 = vadd.f32 %v4839_v28, %v1796_v29  ;;  %v5453_v33 = vpop.f32.mrb[51].mxu1  ;;  %2095 = vmatprep.subr.bf16.mxu1 %v5720_v53  ;;  %v5753_v28 = vld [vmem:[#allocation15 + $0x50] sm:$0xff]   ;;  %v5776_v53 = vld [vmem:[#allocation15 + $0xb8] sm:$0xff]  }
0x12b3   :  { %v5754_v29 = vld [vmem:[#allocation15 + $0xd0] sm:$0xff]   ;;  %v5758_v33 = vld [vmem:[#allocation15 + $0xd8] sm:$0xff]  }
0x12b4   :  { %v6702_v34 = vadd.f32 %v1804_v32, %v6551_v23  ;;  %v5709_v23 = vld [vmem:[#allocation14 + $0x40] ss:$16 sps:$4 sm:$0xff]   ;;  %v5757_v32 = vld [vmem:[#allocation15 + $0x58] sm:$0xff]  }
0x12b5   :  { %2053 = vmatpush1.bf16.msra.mxu0 %v5709_v23  ;;  %2096 = vmatpush1.bf16.msra.mxu1 %v5718_v55  ;;  %v5756_v31 = vld [vmem:[#allocation15 + $0x90] sm:$0xff]   ;;  %v1878_v55 = vsub.s32 2, %v6596_v10 }
0x12b6   :  { %1808 = vadd.xlane.f32.xlu0 %v6702_v34  ;;  %2054 = vmatprep.subr.bf16.mxu0 %v5717_v52  ;;  %v5769_v23 = vld [vmem:[#allocation15 + $0x70] sm:$0xff]   ;;  %v5775_v52 = vld [vmem:[#allocation15 + $0x38] sm:$0xff]  }
0x12b7   :  { %2097 = vmatprep.subr.bf16.mxu1 %v5726_v58  ;;  %v5770_v46 = vld [vmem:[#allocation15 + $0xf0] sm:$0xff]  }
0x12b9   :  { %2055 = vmatpush1.bf16.msra.mxu0 %v5715_v54  ;;  %2098 = vmatpush1.bf16.msra.mxu1 %v5724_v57  ;;  %v1870_v54 = vsub.s32 0, %v6596_v10  ;;  %v1882_v57 = vsub.s32 3, %v6596_v10 }
0x12ba   :  { %2056 = vmatprep.subr.bf16.mxu0 %v5723_v43  ;;  %2099 = vmatprep.subr.bf16.mxu1 %v5732_v60  ;;  %v1874_v43 = vsub.s32 1, %v6596_v10 }
0x12bd   :  { %2057 = vmatpush1.bf16.msra.mxu0 %v5721_v56  ;;  %2100 = vmatpush1.bf16.msra.mxu1 %v5730_v47  ;;  %v1866_v56 = vld [vmem:[%s6919_s12] sm:$0xf] }
0x12be   :  { %2058 = vmatprep.subr.bf16.mxu0 %v5729_v59  ;;  %2101 = vmatprep.subr.bf16.mxu1 %v5738_v63  ;;  %v1871_v58 = vrot.slane %v1866_v56, %v1870_v54  ;;  %v1879_v59 = vrot.slane %v1866_v56, %v1878_v55  ;;  %v1875_v60 = vrot.slane %v1866_v56, %v1874_v43 }
0x12c1   :  { %2059 = vmatpush1.bf16.msra.mxu0 %v5727_v61  ;;  %2102 = vmatpush1.bf16.msra.mxu1 %v5736_v2  ;;  %v1883_v61 = vrot.slane %v1866_v56, %v1882_v57 }
0x12c2   :  { %2060 = vmatprep.subr.bf16.mxu0 %v5735_v62  ;;  %2103 = vmatprep.subr.bf16.mxu1 %v5744_v5 }
0x12c5   :  { %2061 = vmatpush1.bf16.msra.mxu0 %v5733_v0  ;;  %2104 = vmatpush1.bf16.msra.mxu1 %v5742_v7 }
0x12c6   :  { %2062 = vmatprep.subr.bf16.mxu0 %v5741_v4  ;;  %5129 = vmatprep.subr.bf16.mxu1 %v5746_v22 }
0x12c9   :  { %2063 = vmatpush1.bf16.msra.mxu0 %v5739_v6 }
0x12ca   :  { %5107 = vmatprep.subr.bf16.mxu0 %v5745_v12 }
0x1343   :  { %v1809_v48 = vpop.xlane.xlu0 %1808 }
0x1344   :  { %v1810_v49 = vmul.f32 0.0078125, %v1809_v48  ;;  %v5771_v48 = vld [vmem:[#allocation15 + $0x30] sm:$0xff]  }
0x1346   :  { %v1811_v50 = vsub.f32 %v6702_v34, %v1810_v49  ;;  %v5772_v49 = vld [vmem:[#allocation15 + $0xb0] sm:$0xff]  }
0x1348   :  { %v1812_v51 = vmul.f32 %v1811_v50, %v1811_v50 }
0x134a   :  { %1813 = vadd.xlane.f32.xlu1 %v1812_v51  ;;  %v5774_v51 = vld [vmem:[#allocation15 + $0xf8] sm:$0xff]  }
0x13d7   :  { %v1814_v8 = vpop.xlane.xlu1 %1813 }
0x13d8   :  { %v1815_v9 = vmul.f32 0.0078125, %v1814_v8 }
0x13da   :  { %v1816_v11 = vadd.f32 1e-05, %v1815_v9 }
0x13dc   :  { %5907 = vrsqrt.f32 %v1816_v11 }
0x13e6   :  { %v5908_v13 = vpop.eup %5907 }
0x13e7   :  { %v1818_v15 = vmul.f32 %v5908_v13, %v1811_v50  ;;  %v5773_v50 = vld [vmem:[#allocation15 + $0x78] sm:$0xff]  }
0x13e9   :  { %v1825_v19 = vmul.f32 %v4840_v14, %v1818_v15 }
0x13eb   :  { %v1832_v20 = vadd.f32 %v4841_v16, %v1825_v19 }
0x13ed   :  { %v1833_v21 = vpack.c.bf16 %v1832_v20, %v1832_v20 }
0x13ef   :  { %2081 = vmatmul.mubr.bf16.vlgmr.msra.gmra.mrb[48].mxu0 %v1833_v21  ;;  %2122 = vmatmul.mubr.bf16.vlgmr.msra.gmra.mrb[52].mxu1 %v1833_v21 }
0x13f0   :  { %5108 = vmatpush3.bf16.msra.mxu0 %v5747_v17  ;;  %5130 = vmatpush3.bf16.msra.mxu1 %v5748_v24 }
0x13f1   :  { %5109 = vmatprep.subr.bf16.mxu0 %v5749_v25  ;;  %5131 = vmatprep.subr.bf16.mxu1 %v5750_v26 }
0x13f4   :  { %5110 = vmatpush3.bf16.msra.mxu0 %v5751_v18  ;;  %5132 = vmatpush3.bf16.msra.mxu1 %v5752_v27 }
0x13f5   :  { %5111 = vmatprep.subr.bf16.mxu0 %v5753_v28  ;;  %5133 = vmatprep.subr.bf16.mxu1 %v5754_v29 }
0x13f8   :  { %5112 = vmatpush3.bf16.msra.mxu0 %v5755_v30  ;;  %5134 = vmatpush3.bf16.msra.mxu1 %v5756_v31 }
0x13f9   :  { %5113 = vmatprep.subr.bf16.mxu0 %v5757_v32  ;;  %5135 = vmatprep.subr.bf16.mxu1 %v5758_v33 }
0x13fc   :  { %5114 = vmatpush3.bf16.msra.mxu0 %v5759_v35  ;;  %5136 = vmatpush3.bf16.msra.mxu1 %v5760_v36 }
0x13fd   :  { %5115 = vmatprep.subr.bf16.mxu0 %v5761_v37  ;;  %5137 = vmatprep.subr.bf16.mxu1 %v5762_v38 }
0x1400   :  { %5116 = vmatpush3.bf16.msra.mxu0 %v5763_v39  ;;  %5138 = vmatpush3.bf16.msra.mxu1 %v5764_v40 }
0x1401   :  { %5117 = vmatprep.subr.bf16.mxu0 %v5765_v41  ;;  %5139 = vmatprep.subr.bf16.mxu1 %v5766_v42 }
0x1404   :  { %5118 = vmatpush3.bf16.msra.mxu0 %v5767_v44  ;;  %5140 = vmatpush3.bf16.msra.mxu1 %v5768_v45 }
0x1405   :  { %5119 = vmatprep.subr.bf16.mxu0 %v5769_v23  ;;  %5141 = vmatprep.subr.bf16.mxu1 %v5770_v46 }
0x1408   :  { %5120 = vmatpush3.bf16.msra.mxu0 %v5771_v48  ;;  %5142 = vmatpush3.bf16.msra.mxu1 %v5772_v49 }
0x1409   :  { %5121 = vmatprep.subr.bf16.mxu0 %v5773_v50  ;;  %5143 = vmatprep.subr.bf16.mxu1 %v5774_v51 }
0x140c   :  { %5122 = vmatpush3.bf16.msra.mxu0 %v5775_v52  ;;  %5144 = vmatpush3.bf16.msra.mxu1 %v5776_v53 }
0x140d   :  { %5462 = vmatprep.subr.bf16.mxu1 %v6243_v3  ;;  %5454 = vmatprep.subr.bf16.mxu0 %v6243_v3 }
0x14c2   :  { %v2082_v47 = vpop.f32.mrb[48].mxu0  ;;  %v2123_v62 = vpop.f32.mrb[52].mxu1 }
0x14c3   :  { %v2083_v63 = vadd.f32 %v2082_v47, %v1871_v58  ;;  %v2124_v0 = vadd.f32 %v2123_v62, %v1879_v59  ;;  %v2084_v2 = vpop.f32.mrb[49].mxu0  ;;  %v2125_v4 = vpop.f32.mrb[53].mxu1 }
0x14c4   :  { %v2085_v5 = vadd.f32 %v2084_v2, %v1875_v60  ;;  %v2126_v6 = vadd.f32 %v2125_v4, %v1883_v61  ;;  %v2086_v7 = vpop.f32.mrb[50].mxu0  ;;  %v2127_v8 = vpop.f32.mrb[54].mxu1  ;;  %v4874_v60 = vld [vmem:[#allocation17] ss:$0 sm:$0xff] }
0x14c5   :  { %v2130_v9 = vmul.f32 %v2083_v63, %v2083_v63  ;;  %v2132_v11 = vmul.f32 %v2124_v0, %v2124_v0  ;;  %v2087_v13 = vpop.f32.mrb[51].mxu0  ;;  %v2128_v14 = vpop.f32.mrb[55].mxu1 }
0x14c6   :  { %v2131_v15 = vmul.f32 %v2085_v5, %v2085_v5  ;;  %v2133_v16 = vmul.f32 %v2126_v6, %v2126_v6 }
0x14c7   :  { %v2134_v19 = vmul.f32 %v2130_v9, %v2083_v63  ;;  %v2136_v20 = vmul.f32 %v2132_v11, %v2124_v0 }
0x14c8   :  { %v2135_v21 = vmul.f32 %v2131_v15, %v2085_v5  ;;  %v2137_v12 = vmul.f32 %v2133_v16, %v2126_v6  ;;  %v5777_v15 = vld [vmem:[#allocation3 + $0x100] sm:$0xff]  }
0x14c9   :  { %v2138_v22 = vmul.f32 0.044715, %v2134_v19  ;;  %v2140_v17 = vmul.f32 0.044715, %v2136_v20  ;;  %v5778_v16 = vld [vmem:[#allocation3 + $0xc0] sm:$0xff]   ;;  %v5779_v19 = vld [vmem:[#allocation3 + $0x108] sm:$0xff]  }
0x14ca   :  { %v2139_v24 = vmul.f32 0.044715, %v2135_v21  ;;  %v2141_v25 = vmul.f32 0.044715, %v2137_v12 }
0x14cb   :  { %v2142_v26 = vadd.f32 %v2138_v22, %v2083_v63  ;;  %v2144_v18 = vadd.f32 %v2140_v17, %v2124_v0  ;;  %v4909_v17 = vld [vmem:[%s6936_s14 + $0x1] ss:$0 sm:$0xff] }
0x14cc   :  { %v2143_v27 = vadd.f32 %v2139_v24, %v2085_v5  ;;  %v2145_v28 = vadd.f32 %v2141_v25, %v2126_v6  ;;  %v4910_v25 = vld [vmem:[%s6911_s4 + $0x1] ss:$0 sm:$0xff] }
0x14cd   :  { %v2146_v29 = vmul.f32 0.7978846, %v2142_v26  ;;  %v2148_v30 = vmul.f32 0.7978846, %v2144_v18 }
0x14ce   :  { %v2147_v31 = vmul.f32 0.7978846, %v2143_v27  ;;  %v2149_v32 = vmul.f32 0.7978846, %v2145_v28 }
0x14cf   :  { %5909 = vtanh.f32 %v2146_v29  ;;  %v5781_v29 = vld [vmem:[#allocation3 + $0x140] sm:$0xff]  }
0x14d0   :  { %5911 = vtanh.f32 %v2148_v30 }
0x14d1   :  { %5913 = vtanh.f32 %v2147_v31  ;;  %v5782_v31 = vld [vmem:[#allocation3 + $0x148] sm:$0xff]  }
0x14d2   :  { %5915 = vtanh.f32 %v2149_v32  ;;  %v5783_v32 = vld [vmem:[#allocation3 + $0xd0] sm:$0xff]  }
0x14d9   :  { %v5910_v33 = vpop.eup %5909 }
0x14da   :  { %v5912_v35 = vpop.eup %5911  ;;  %v2154_v36 = vadd.f32 1.0, %v5910_v33  ;;  %v5784_v33 = vld [vmem:[#allocation3 + $0xd8] sm:$0xff]  }
0x14db   :  { %v5914_v37 = vpop.eup %5913  ;;  %v2156_v38 = vadd.f32 1.0, %v5912_v35  ;;  %v5785_v35 = vld [vmem:[#allocation3 + $0x150] sm:$0xff]  }
0x14dc   :  { %v5916_v39 = vpop.eup %5915  ;;  %v2155_v40 = vadd.f32 1.0, %v5914_v37  ;;  %v2158_v41 = vmul.f32 0.5, %v2154_v36  ;;  %v5786_v36 = vld [vmem:[#allocation3 + $0x158] sm:$0xff]   ;;  %v4913_v37 = vld [vmem:[#allocation6 + $0x10] ss:$0 sm:$0xff] }
0x14dd   :  { %v2157_v42 = vadd.f32 1.0, %v5916_v39  ;;  %v2160_v44 = vmul.f32 0.5, %v2156_v38 }
0x14de   :  { %v2159_v45 = vmul.f32 0.5, %v2155_v40  ;;  %v2162_v46 = vmul.f32 %v2158_v41, %v2083_v63 }
0x14df   :  { %v2161_v23 = vmul.f32 0.5, %v2157_v42  ;;  %v2164_v49 = vmul.f32 %v2160_v44, %v2124_v0 }
0x14e0   :  { %v2163_v48 = vmul.f32 %v2159_v45, %v2085_v5  ;;  %v2166_v53 = vpack.c.bf16 %v2162_v46, %v2162_v46  ;;  %v2550_v45 = vld [vmem:[#allocation6 + $0xc] sm:$0x1] }
0x14e1   :  { %v2165_v50 = vmul.f32 %v2161_v23, %v2126_v6  ;;  %v2168_v56 = vpack.c.bf16 %v2164_v49, %v2164_v49 }
0x14e2   :  { %v2167_v51 = vpack.c.bf16 %v2163_v48, %v2163_v48 }
0x14e3   :  { %v2169_v52 = vpack.c.bf16 %v2165_v50, %v2165_v50 }
0x14e4   :  { %2465 = vmatprep.mubr.bf16.mxu0 %v2167_v51 }
0x14e5   :  { %2505 = vmatprep.mubr.bf16.mxu1 %v2169_v52  ;;  %2466 = vmatmul.mubr.bf16.vlgmr.msra.gmra.mrb[52].mxu0 %v2166_v53  ;;  %v4916_v53 = vld [vmem:[#allocation6 + $0x14] ss:$0 sm:$0xff] }
0x14e6   :  { %2506 = vmatmul.mubr.bf16.vlgmr.msra.gmra.mrb[56].mxu1 %v2168_v56  ;;  %5458 = vmatprep.mubr.msk.bf16.mxu0 %vm6244_vm0, %v6243_v3 }
0x14e7   :  { %5466 = vmatprep.mubr.msk.bf16.mxu1 %vm6244_vm0, %v6243_v3  ;;  %5463 = vmatpush3.bf16.xpose.msra.mxu1 %v5777_v15 }
0x14e8   :  { %5464 = vmatprep.subr.bf16.mxu1 %v6243_v3  ;;  %5455 = vmatpush3.bf16.xpose.msra.mxu0 %v5778_v16 }
0x14e9   :  { %5456 = vmatprep.subr.bf16.mxu0 %v6243_v3 }
0x14ef   :  { %5465 = vmatpush3.bf16.xpose.msra.mxu1 %v5779_v19 }
0x14f0   :  { %5478 = vmatprep.subr.bf16.mxu1 %v6243_v3 }
0x15b8   :  { %v5123_v58 = vpop.f32.mrb[52].mxu0 }
0x15b9   :  { %v5145_v59 = vpop.f32.mrb[56].mxu1  ;;  %v5124_v61 = vpop.f32.mrb[53].mxu0 }
0x15ba   :  { %v5125_v47 = vadd.f32 %v5124_v61, %v5123_v58  ;;  %v5146_v62 = vpop.f32.mrb[57].mxu1  ;;  %v5126_v63 = vpop.f32.mrb[54].mxu0 }
0x15bb   :  { %v5147_v0 = vadd.f32 %v5146_v62, %v5145_v59  ;;  %v5148_v2 = vpop.f32.mrb[58].mxu1  ;;  %v5127_v4 = vpop.f32.mrb[55].mxu0 }
0x15bc   :  { %v2468_v5 = vadd.f32 %v5125_v47, %v4874_v60  ;;  %v5149_v6 = vpop.f32.mrb[59].mxu1 }
0x15be   :  { %v2508_v7 = vadd.f32 %v5147_v0, %v2468_v5 }
0x15c0   :  { %v6728_v8 = vadd.f32 %v2508_v7, %v6702_v34  ;;  %v5780_v34 = vld [vmem:[#allocation3 + $0xc8] sm:$0xff]  }
0x15c1   :  { %5457 = vmatpush3.bf16.xpose.msra.mxu0 %v5780_v34 }
0x15c2   :  { %2518 = vadd.xlane.f32.xlu0 %v6728_v8  ;;  %5470 = vmatprep.subr.bf16.mxu0 %v6243_v3 }
0x164f   :  { %v2519_v9 = vpop.xlane.xlu0 %2518 }
0x1650   :  { %v2520_v11 = vmul.f32 0.0078125, %v2519_v9 }
0x1652   :  { %v2521_v13 = vsub.f32 %v6728_v8, %v2520_v11 }
0x1654   :  { %v2522_v14 = vmul.f32 %v2521_v13, %v2521_v13 }
0x1656   :  { %2523 = vadd.xlane.f32.xlu1 %v2522_v14 }
0x16e3   :  { %v2524_v20 = vpop.xlane.xlu1 %2523 }
0x16e4   :  { %v2525_v21 = vmul.f32 0.0078125, %v2524_v20 }
0x16e6   :  { %v2526_v12 = vadd.f32 1e-05, %v2525_v21 }
0x16e8   :  { %5917 = vrsqrt.f32 %v2526_v12 }
0x16f2   :  { %v5918_v22 = vpop.eup %5917 }
0x16f3   :  { %v2528_v24 = vmul.f32 %v5918_v22, %v2521_v13 }
0x16f5   :  { %v2535_v26 = vmul.f32 %v4909_v17, %v2528_v24 }
0x16f7   :  { %v2542_v18 = vadd.f32 %v4910_v25, %v2535_v26  ;;  %v5787_v26 = vld [vmem:[#allocation3 + $0x110] sm:$0xff]  }
0x16f9   :  { %v6742_v27 = vpack.c.bf16 %v2542_v18, %v2542_v18 }
0x16fb   :  { %5467 = vmatmul.mubr.bf16.vlgmr.msra.gmra.mrb[60].mxu1 %v6742_v27  ;;  %v2552_v28 = vshrl.u32 %v6742_v27, 16 }
0x16fc   :  { %5480 = vmatprep.mubr.msk.bf16.mxu1 %vm6244_vm0, %v6243_v3 }
0x16fd   :  { %v6748_v30 = vrot.slane %v2552_v28, 3  ;;  %v5788_v28 = vld [vmem:[#allocation3 + $0x118] sm:$0xff]  }
0x16ff   :  { %5459 = vmatmul.mubr.bf16.vlgmr.msra.gmra.mrb[56].mxu0 %v6748_v30 }
0x1700   :  { %5471 = vmatpush3.bf16.xpose.msra.mxu0 %v5781_v29  ;;  %5474 = vmatprep.mubr.msk.bf16.mxu0 %vm6244_vm0, %v6243_v3 }
0x1701   :  { %5472 = vmatprep.subr.bf16.mxu0 %v6243_v3 }
0x1708   :  { %5473 = vmatpush3.bf16.xpose.msra.mxu0 %v5782_v31 }
0x1709   :  { %5490 = vmatprep.subr.bf16.mxu0 %v6243_v3 }
0x170f   :  { %5475 = vmatmul.mubr.bf16.vlgmr.msra.gmra.mrb[60].mxu0 %v6742_v27 }
0x1710   :  { %5491 = vmatpush3.bf16.xpose.msra.mxu0 %v5783_v32  ;;  %5494 = vmatprep.mubr.msk.bf16.mxu0 %vm6244_vm0, %v6243_v3 }
0x1711   :  { %5492 = vmatprep.subr.bf16.mxu0 %v6243_v3 }
0x1718   :  { %5493 = vmatpush3.bf16.xpose.msra.mxu0 %v5784_v33 }
0x1719   :  { %5506 = vmatprep.subr.bf16.mxu0 %v6243_v3 }
0x171f   :  { %5495 = vmatmul.mubr.bf16.vlgmr.msra.gmra.mrb[64].mxu0 %v6748_v30 }
0x1720   :  { %5507 = vmatpush3.bf16.xpose.msra.mxu0 %v5785_v35  ;;  %5510 = vmatprep.mubr.msk.bf16.mxu0 %vm6244_vm0, %v6243_v3  ;;  %v4923_v35 = vld [vmem:[#allocation6 + $0x11] ss:$0 sm:$0xff] }
0x1721   :  { %5508 = vmatprep.subr.bf16.mxu0 %v6243_v3 }
0x1728   :  { %5509 = vmatpush3.bf16.xpose.msra.mxu0 %v5786_v36 }
0x1729   :  { %5526 = vmatprep.subr.bf16.mxu0 %v6243_v3 }
0x172f   :  { %5511 = vmatmul.mubr.bf16.vlgmr.msra.gmra.mrb[68].mxu0 %v6742_v27 }
0x1730   :  { %5530 = vmatprep.mubr.msk.bf16.mxu0 %vm6244_vm0, %v6243_v3 }
0x17ce   :  { %v2667_v38 = vpop.f32.mrb[60].mxu1 }
0x17cf   :  { %v2668_v39 = vadd.f32 %v4913_v37, %v2667_v38  ;;  %v5468_v40 = vpop.f32.mrb[61].mxu1 }
0x17d0   :  { %v2670_v41 = vpop.f32.mrb[62].mxu1 }
0x17d1   :  { %v2739_v42 = vpack.c.bf16 %v2668_v39, %v2668_v39  ;;  %v5469_v44 = vpop.f32.mrb[63].mxu1  ;;  %v4926_v39 = vld [vmem:[#allocation6 + $0x15] ss:$0 sm:$0xff] }
0x17d2   :  { %v2602_v23 = vpop.f32.mrb[56].mxu0  ;;  %v2859_v44 = vld [vmem:[#allocation6 + $0xd] sm:$0x1] }
0x17d3   :  { %v2744_v46 = vsel %vm530_vm3, %v2739_v42, 0  ;;  %v5460_v48 = vpop.f32.mrb[57].mxu0  ;;  %v2603_v50 = vadd.f32 %v2602_v23, %v2550_v45 }
0x17d4   :  { %v2605_v49 = vpop.f32.mrb[58].mxu0  ;;  %5479 = vmatpush3.bf16.xpose.msra.mxu1 %v2744_v46 }
0x17d5   :  { %v5461_v51 = vpop.f32.mrb[59].mxu0  ;;  %5484 = vmatprep.subr.bf16.mxu1 %v6243_v3  ;;  %v2738_v52 = vpack.c.bf16 %v2603_v50, %v2603_v50 }
0x17db   :  { %5481 = vmatmul.mubr.msk.bf16.vlgmr.msra.gmra.mrb[64].mxu1 %vm530_vm3, %v2738_v52 }
0x17dc   :  { %5486 = vmatprep.mubr.msk.bf16.mxu1 %vm6244_vm0, %v6243_v3 }
0x17e2   :  { %v2732_v56 = vpop.f32.mrb[60].mxu0 }
0x17e3   :  { %v2733_v58 = vadd.f32 %v4916_v53, %v2732_v56  ;;  %v5476_v59 = vpop.f32.mrb[61].mxu0 }
0x17e4   :  { %v2735_v60 = vpop.f32.mrb[62].mxu0 }
0x17e5   :  { %v2800_v61 = vpack.c.bf16 %v2733_v58, %v2733_v58  ;;  %v5477_v47 = vpop.f32.mrb[63].mxu0 }
0x17e7   :  { %v2805_v62 = vsel %vm596_vm4, %v2800_v61, 0 }
0x17e8   :  { %5485 = vmatpush3.bf16.msra.mxu1 %v2805_v62 }
0x17e9   :  { %5498 = vmatprep.subr.bf16.mxu1 %v6243_v3 }
0x17f2   :  { %v2906_v63 = vpop.f32.mrb[64].mxu0 }
0x17f3   :  { %v5496_v0 = vpop.f32.mrb[65].mxu0  ;;  %v2907_v46 = vadd.f32 %v2906_v63, %v2859_v44 }
0x17f4   :  { %v2909_v2 = vpop.f32.mrb[66].mxu0  ;;  %v5793_v0 = vld [vmem:[#allocation8 + $0x50] sm:$0xff]  }
0x17f5   :  { %v5497_v4 = vpop.f32.mrb[67].mxu0  ;;  %v3042_v49 = vpack.c.bf16 %v2907_v46, %v2907_v46  ;;  %5527 = vmatpush3.bf16.msra.mxu0 %v5793_v0  ;;  %v5794_v2 = vld [vmem:[#allocation8 + $0x58] sm:$0xff]  }
0x17f6   :  { %5528 = vmatprep.subr.bf16.mxu0 %v6243_v3 }
0x17f9   :  { %5529 = vmatpush3.bf16.msra.mxu0 %v5794_v2 }
0x17fa   :  { %5542 = vmatprep.subr.bf16.mxu0 %v6243_v3 }
0x1802   :  { %v3036_v5 = vpop.f32.mrb[68].mxu0 }
0x1803   :  { %v5512_v6 = vpop.f32.mrb[69].mxu0  ;;  %v3037_v45 = vadd.f32 %v4926_v39, %v3036_v5 }
0x1804   :  { %v3039_v7 = vpop.f32.mrb[70].mxu0 }
0x1805   :  { %v5513_v9 = vpop.f32.mrb[71].mxu0  ;;  %v3103_v48 = vpack.c.bf16 %v3037_v45, %v3037_v45  ;;  %v5789_v7 = vld [vmem:[#allocation8 + $0x40] sm:$0xff]   ;;  %v3272_v45 = vld [vmem:[#allocation6 + $0xe] sm:$0x1] }
0x1807   :  { %v3108_v50 = vsel %vm596_vm4, %v3103_v48, 0 }
0x18ae   :  { %v2780_v11 = vpop.f32.mrb[64].mxu1 }
0x18af   :  { %v2786_v13 = vmul.f32 0.17677669, %v2780_v11  ;;  %v5482_v14 = vpop.f32.mrb[65].mxu1  ;;  %v5790_v11 = vld [vmem:[#allocation8 + $0x48] sm:$0xff]  }
0x18b0   :  { %v2783_v15 = vpop.f32.mrb[66].mxu1  ;;  %v5791_v14 = vld [vmem:[#allocation3 + $0x120] sm:$0xff]  }
0x18b1   :  { %v5483_v16 = vpop.f32.mrb[67].mxu1  ;;  %v2788_v19 = vsel %vm2787_vm7, %v2786_v13, -inf  ;;  %v5792_v15 = vld [vmem:[#allocation3 + $0x128] sm:$0xff]  }
0x18b2   :  { %2789 = vmax.xlane.f32.xlu0 %v2788_v19  ;;  %v5795_v19 = vld [vmem:[#allocation3 + $0xe0] sm:$0xff]  }
0x193f   :  { %v2790_v34 = vpop.xlane.xlu0 %2789 }
0x1940   :  { %v2791_v20 = vsub.f32 %v2786_v13, %v2790_v34 }
0x1942   :  { %v2792_v21 = vmul.f32 1.442695, %v2791_v20 }
0x1944   :  { %5919 = vpow2.f32 %v2792_v21 }
0x194e   :  { %v5920_v12 = vpop.eup %5919 }
0x194f   :  { %v2794_v22 = vsel %vm2787_vm7, %v5920_v12, 0.0 }
0x1950   :  { %2795 = vadd.xlane.f32.xlu1 %v2794_v22 }
0x19dd   :  { %v2796_v17 = vpop.xlane.xlu1 %2795 }
0x19de   :  { %5921 = vrcp.f32 %v2796_v17  ;;  %v5796_v17 = vld [vmem:[#allocation3 + $0xe8] sm:$0xff]  }
0x19e8   :  { %v5922_v24 = vpop.eup %5921 }
0x19e9   :  { %v2798_v25 = vmul.f32 %v5922_v24, %v5920_v12 }
0x19eb   :  { %v2799_v18 = vpack.c.bf16 %v2798_v25, %v2798_v25 }
0x19ed   :  { %5487 = vmatmul.mubr.msk.bf16.vlgmr.msra.gmra.mrb[68].mxu1 %vm579_vm6, %v2799_v18  ;;  %v5797_v18 = vld [vmem:[#allocation3 + $0x160] sm:$0xff]  }
0x19ee   :  { %5499 = vmatpush3.bf16.xpose.msra.mxu1 %v5787_v26  ;;  %5502 = vmatprep.mubr.msk.bf16.mxu1 %vm6244_vm0, %v6243_v3 }
0x19ef   :  { %5500 = vmatprep.subr.bf16.mxu1 %v6243_v3 }
0x19f6   :  { %5501 = vmatpush3.bf16.xpose.msra.mxu1 %v5788_v28  ;;  %v5798_v28 = vld [vmem:[#allocation3 + $0x168] sm:$0xff]  }
0x19f7   :  { %5514 = vmatprep.subr.bf16.mxu1 %v6243_v3 }
0x19fd   :  { %5503 = vmatmul.mubr.bf16.vlgmr.msra.gmra.mrb[72].mxu1 %v6742_v27 }
0x19fe   :  { %5516 = vmatprep.mubr.msk.bf16.mxu1 %vm6244_vm0, %v6243_v3 }
0x1ac0   :  { %v2841_v29 = vpop.f32.mrb[68].mxu1 }
0x1ac1   :  { %v5488_v31 = vpop.f32.mrb[69].mxu1  ;;  %v2847_v13 = vpack.c.bf16 %v2841_v29, %v2841_v29  ;;  %v4939_v29 = vld [vmem:[#allocation6 + $0x12] ss:$0 sm:$0xff] }
0x1ac2   :  { %v2844_v32 = vpop.f32.mrb[70].mxu1 }
0x1ac3   :  { %v5489_v33 = vpop.f32.mrb[71].mxu1 }
0x1ad0   :  { %v2971_v36 = vpop.f32.mrb[72].mxu1 }
0x1ad1   :  { %v2972_v37 = vadd.f32 %v4923_v35, %v2971_v36  ;;  %v5504_v38 = vpop.f32.mrb[73].mxu1 }
0x1ad2   :  { %v2974_v40 = vpop.f32.mrb[74].mxu1 }
0x1ad3   :  { %v3043_v41 = vpack.c.bf16 %v2972_v37, %v2972_v37  ;;  %v5505_v42 = vpop.f32.mrb[75].mxu1 }
0x1ad5   :  { %v3048_v23 = vsel %vm530_vm3, %v3043_v41, 0 }
0x1ad6   :  { %5515 = vmatpush3.bf16.xpose.msra.mxu1 %v3048_v23 }
0x1ad7   :  { %5520 = vmatprep.subr.bf16.mxu1 %v6243_v3 }
0x1add   :  { %5517 = vmatmul.mubr.msk.bf16.vlgmr.msra.gmra.mrb[76].mxu1 %vm530_vm3, %v3042_v49 }
0x1ade   :  { %5521 = vmatpush3.bf16.msra.mxu1 %v3108_v50  ;;  %5522 = vmatprep.mubr.msk.bf16.mxu1 %vm6244_vm0, %v6243_v3 }
0x1adf   :  { %5534 = vmatprep.subr.bf16.mxu1 %v6243_v3 }
0x1bb0   :  { %v3084_v51 = vpop.f32.mrb[76].mxu1 }
0x1bb1   :  { %v3090_v52 = vmul.f32 0.17677669, %v3084_v51  ;;  %v5518_v53 = vpop.f32.mrb[77].mxu1 }
0x1bb2   :  { %v3087_v56 = vpop.f32.mrb[78].mxu1 }
0x1bb3   :  { %v5519_v58 = vpop.f32.mrb[79].mxu1  ;;  %v3091_v59 = vsel %vm2787_vm7, %v3090_v52, -inf }
0x1bb4   :  { %3092 = vmax.xlane.f32.xlu0 %v3091_v59 }
0x1c41   :  { %v3093_v60 = vpop.xlane.xlu0 %3092 }
0x1c42   :  { %v3094_v61 = vsub.f32 %v3090_v52, %v3093_v60  ;;  %v4942_v52 = vld [vmem:[#allocation6 + $0x16] ss:$0 sm:$0xff] }
0x1c44   :  { %v3095_v47 = vmul.f32 1.442695, %v3094_v61 }
0x1c46   :  { %5923 = vpow2.f32 %v3095_v47 }
0x1c50   :  { %v5924_v62 = vpop.eup %5923 }
0x1c51   :  { %v3097_v63 = vsel %vm2787_vm7, %v5924_v62, 0.0 }
0x1c52   :  { %3098 = vadd.xlane.f32.xlu1 %v3097_v63 }
0x1cdf   :  { %v3099_v4 = vpop.xlane.xlu1 %3098 }
0x1ce0   :  { %5925 = vrcp.f32 %v3099_v4 }
0x1cea   :  { %v5926_v5 = vpop.eup %5925 }
0x1ceb   :  { %v3101_v6 = vmul.f32 %v5926_v5, %v5924_v62 }
0x1ced   :  { %v3102_v9 = vpack.c.bf16 %v3101_v6, %v3101_v6 }
0x1cef   :  { %5523 = vmatmul.mubr.msk.bf16.vlgmr.msra.gmra.mrb[80].mxu1 %vm579_vm6, %v3102_v9 }
0x1cf0   :  { %5535 = vmatpush3.bf16.msra.mxu1 %v5789_v7  ;;  %5538 = vmatprep.mubr.msk.bf16.mxu1 %vm6244_vm0, %v6243_v3 }
0x1cf1   :  { %5536 = vmatprep.subr.bf16.mxu1 %v6243_v3 }
0x1cf4   :  { %5537 = vmatpush3.bf16.msra.mxu1 %v5790_v11 }
0x1cf5   :  { %5550 = vmatprep.subr.bf16.mxu1 %v6243_v3 }
0x1cf7   :  { %5539 = vmatmul.mubr.msk.bf16.vlgmr.msra.gmra.mrb[84].mxu1 %vm530_vm3, %v2847_v13 }
0x1cf8   :  { %5554 = vmatprep.mubr.msk.bf16.mxu1 %vm6244_vm0, %v6243_v3 }
0x1cfd   :  { %5551 = vmatpush3.bf16.xpose.msra.mxu1 %v5791_v14  ;;  %v5803_v14 = vld [vmem:[#allocation8 + $0x60] sm:$0xff]  }
0x1cfe   :  { %5552 = vmatprep.subr.bf16.mxu1 %v6243_v3 }
0x1d05   :  { %5553 = vmatpush3.bf16.xpose.msra.mxu1 %v5792_v15  ;;  %v5804_v15 = vld [vmem:[#allocation8 + $0x68] sm:$0xff]  }
0x1d06   :  { %5566 = vmatprep.subr.bf16.mxu1 %v6243_v3 }
0x1d0c   :  { %5555 = vmatmul.mubr.bf16.vlgmr.msra.gmra.mrb[88].mxu1 %v6742_v27 }
0x1d0d   :  { %5568 = vmatprep.mubr.msk.bf16.mxu1 %vm6244_vm0, %v6243_v3 }
0x1dc2   :  { %v3144_v16 = vpop.f32.mrb[80].mxu1 }
0x1dc3   :  { %v3150_v34 = vpack.c.bf16 %v3144_v16, %v3144_v16  ;;  %v5524_v20 = vpop.f32.mrb[81].mxu1 }
0x1dc4   :  { %v3147_v21 = vpop.f32.mrb[82].mxu1  ;;  %v5799_v20 = vld [vmem:[#allocation3 + $0xf0] sm:$0xff]  }
0x1dc5   :  { %v5525_v12 = vpop.f32.mrb[83].mxu1  ;;  %5531 = vmatmul.mubr.msk.bf16.vlgmr.msra.gmra.mrb[72].mxu0 %vm530_vm3, %v3150_v34 }
0x1dc6   :  { %5543 = vmatpush3.bf16.xpose.msra.mxu0 %v5795_v19  ;;  %5546 = vmatprep.mubr.msk.bf16.mxu0 %vm6244_vm0, %v6243_v3  ;;  %v5800_v12 = vld [vmem:[#allocation3 + $0xf8] sm:$0xff]  }
0x1dc7   :  { %5544 = vmatprep.subr.bf16.mxu0 %v6243_v3 }
0x1dca   :  { %v3260_v22 = vpop.f32.mrb[84].mxu1 }
0x1dcb   :  { %v5540_v24 = vpop.f32.mrb[85].mxu1 }
0x1dcc   :  { %v3263_v25 = vpop.f32.mrb[86].mxu1 }
0x1dcd   :  { %v5541_v26 = vpop.f32.mrb[87].mxu1  ;;  %v5805_v25 = vld [vmem:[#allocation3 + $0x130] sm:$0xff]  }
0x1dce   :  { %5545 = vmatpush3.bf16.xpose.msra.mxu0 %v5796_v17  ;;  %v5802_v17 = vld [vmem:[#allocation3 + $0x178] sm:$0xff]  }
0x1dcf   :  { %5558 = vmatprep.subr.bf16.mxu0 %v6243_v3 }
0x1dd5   :  { %5547 = vmatmul.mubr.bf16.vlgmr.msra.gmra.mrb[76].mxu0 %v6748_v30 }
0x1dd6   :  { %5559 = vmatpush3.bf16.xpose.msra.mxu0 %v5797_v18  ;;  %5562 = vmatprep.mubr.msk.bf16.mxu0 %vm6244_vm0, %v6243_v3 }
0x1dd7   :  { %5560 = vmatprep.subr.bf16.mxu0 %v6243_v3 }
0x1dde   :  { %5561 = vmatpush3.bf16.xpose.msra.mxu0 %v5798_v28 }
0x1ddf   :  { %v3384_v31 = vpop.f32.mrb[88].mxu1  ;;  %5578 = vmatprep.subr.bf16.mxu0 %v6243_v3 }
0x1de0   :  { %v3385_v32 = vadd.f32 %v4939_v29, %v3384_v31  ;;  %v5556_v33 = vpop.f32.mrb[89].mxu1  ;;  %v5806_v29 = vld [vmem:[#allocation3 + $0x138] sm:$0xff]  }
0x1de1   :  { %v3387_v35 = vpop.f32.mrb[90].mxu1 }
0x1de2   :  { %v3456_v36 = vpack.c.bf16 %v3385_v32, %v3385_v32  ;;  %v5557_v37 = vpop.f32.mrb[91].mxu1 }
0x1de4   :  { %v3461_v38 = vsel %vm530_vm3, %v3456_v36, 0 }
0x1de5   :  { %5563 = vmatmul.mubr.bf16.vlgmr.msra.gmra.mrb[80].mxu0 %v6742_v27  ;;  %5567 = vmatpush3.bf16.xpose.msra.mxu1 %v3461_v38 }
0x1de6   :  { %5572 = vmatprep.subr.bf16.mxu1 %v6243_v3  ;;  %5582 = vmatprep.mubr.msk.bf16.mxu0 %vm6244_vm0, %v6243_v3 }
0x1de7   :  { %5579 = vmatpush3.bf16.msra.mxu0 %v5803_v14  ;;  %v5807_v14 = vld [vmem:[#allocation8 + $0x70] sm:$0xff]  }
0x1de8   :  { %5580 = vmatprep.subr.bf16.mxu0 %v6243_v3 }
0x1deb   :  { %5581 = vmatpush3.bf16.msra.mxu0 %v5804_v15 }
0x1dec   :  { %5594 = vmatprep.subr.bf16.mxu0 %v6243_v3 }
0x1e98   :  { %v3205_v39 = vpop.f32.mrb[72].mxu0 }
0x1e99   :  { %v6824_v40 = vadd.f32 %v3260_v22, %v3205_v39  ;;  %v5532_v41 = vpop.f32.mrb[73].mxu0  ;;  %v5801_v22 = vld [vmem:[#allocation3 + $0x170] sm:$0xff]  }
0x1e9a   :  { %v3208_v42 = vpop.f32.mrb[74].mxu0 }
0x1e9b   :  { %v5533_v44 = vpop.f32.mrb[75].mxu0 }
0x1ea8   :  { %v3319_v23 = vpop.f32.mrb[76].mxu0 }
0x1ea9   :  { %v3320_v46 = vadd.f32 %v3319_v23, %v3272_v45  ;;  %v5548_v48 = vpop.f32.mrb[77].mxu0 }
0x1eaa   :  { %v3322_v49 = vpop.f32.mrb[78].mxu0 }
0x1eab   :  { %v3455_v50 = vpack.c.bf16 %v3320_v46, %v3320_v46  ;;  %v5549_v51 = vpop.f32.mrb[79].mxu0  ;;  %v4952_v46 = vld [vmem:[#allocation6 + $0x13] ss:$0 sm:$0xff] }
0x1eac   :  { %v4955_v51 = vld [vmem:[#allocation6 + $0x17] ss:$0 sm:$0xff] }
0x1ead   :  { %5569 = vmatmul.mubr.msk.bf16.vlgmr.msra.gmra.mrb[92].mxu1 %vm530_vm3, %v3455_v50 }
0x1eae   :  { %5574 = vmatprep.mubr.msk.bf16.mxu1 %vm6244_vm0, %v6243_v3 }
0x1eb8   :  { %v3449_v53 = vpop.f32.mrb[80].mxu0 }
0x1eb9   :  { %v3450_v56 = vadd.f32 %v4942_v52, %v3449_v53  ;;  %v5564_v58 = vpop.f32.mrb[81].mxu0 }
0x1eba   :  { %v3452_v59 = vpop.f32.mrb[82].mxu0 }
0x1ebb   :  { %v3516_v60 = vpack.c.bf16 %v3450_v56, %v3450_v56  ;;  %v5565_v61 = vpop.f32.mrb[83].mxu0  ;;  %v3631_v56 = vld [vmem:[#allocation6 + $0xf] sm:$0x1] }
0x1ebd   :  { %v3521_v47 = vsel %vm596_vm4, %v3516_v60, 0 }
0x1ebe   :  { %5573 = vmatpush3.bf16.msra.mxu1 %v3521_v47 }
0x1ebf   :  { %5586 = vmatprep.subr.bf16.mxu1 %v6243_v3 }
0x1f80   :  { %v3497_v62 = vpop.f32.mrb[92].mxu1 }
0x1f81   :  { %v3503_v63 = vmul.f32 0.17677669, %v3497_v62  ;;  %v5570_v0 = vpop.f32.mrb[93].mxu1 }
0x1f82   :  { %v3500_v2 = vpop.f32.mrb[94].mxu1 }
0x1f83   :  { %v5571_v4 = vpop.f32.mrb[95].mxu1  ;;  %v3504_v5 = vsel %vm2787_vm7, %v3503_v63, -inf }
0x1f84   :  { %3505 = vmax.xlane.f32.xlu0 %v3504_v5 }
0x2011   :  { %v3506_v6 = vpop.xlane.xlu0 %3505 }
0x2012   :  { %v3507_v7 = vsub.f32 %v3503_v63, %v3506_v6 }
0x2014   :  { %v3508_v9 = vmul.f32 1.442695, %v3507_v7 }
0x2016   :  { %5927 = vpow2.f32 %v3508_v9 }
0x2020   :  { %v5928_v11 = vpop.eup %5927 }
0x2021   :  { %v3510_v13 = vsel %vm2787_vm7, %v5928_v11, 0.0 }
0x2022   :  { %3511 = vadd.xlane.f32.xlu1 %v3510_v13 }
0x20af   :  { %v3512_v16 = vpop.xlane.xlu1 %3511 }
0x20b0   :  { %5929 = vrcp.f32 %v3512_v16 }
0x20ba   :  { %v5930_v19 = vpop.eup %5929 }
0x20bb   :  { %v3514_v34 = vmul.f32 %v5930_v19, %v5928_v11 }
0x20bd   :  { %v3515_v21 = vpack.c.bf16 %v3514_v34, %v3514_v34 }
0x20bf   :  { %5575 = vmatmul.mubr.msk.bf16.vlgmr.msra.gmra.mrb[96].mxu1 %vm579_vm6, %v3515_v21 }
0x20c0   :  { %5587 = vmatpush3.bf16.xpose.msra.mxu1 %v5799_v20  ;;  %5590 = vmatprep.mubr.msk.bf16.mxu1 %vm6244_vm0, %v6243_v3  ;;  %v5808_v20 = vld [vmem:[#allocation8 + $0x78] sm:$0xff]  }
0x20c1   :  { %5588 = vmatprep.subr.bf16.mxu1 %v6243_v3 }
0x20c8   :  { %5589 = vmatpush3.bf16.xpose.msra.mxu1 %v5800_v12 }
0x20c9   :  { %5602 = vmatprep.subr.bf16.mxu1 %v6243_v3 }
0x20cf   :  { %5591 = vmatmul.mubr.bf16.vlgmr.msra.gmra.mrb[100].mxu1 %v6748_v30 }
0x20d0   :  { %5603 = vmatpush3.bf16.xpose.msra.mxu1 %v5801_v22  ;;  %5606 = vmatprep.mubr.msk.bf16.mxu1 %vm6244_vm0, %v6243_v3 }
0x20d1   :  { %5604 = vmatprep.subr.bf16.mxu1 %v6243_v3 }
0x20d8   :  { %5605 = vmatpush3.bf16.xpose.msra.mxu1 %v5802_v17 }
0x20d9   :  { %5622 = vmatprep.subr.bf16.mxu1 %v6243_v3 }
0x20df   :  { %5607 = vmatmul.mubr.bf16.vlgmr.msra.gmra.mrb[104].mxu1 %v6742_v27 }
0x20e0   :  { %5626 = vmatprep.mubr.msk.bf16.mxu1 %vm6244_vm0, %v6243_v3  ;;  %5623 = vmatpush3.bf16.msra.mxu1 %v5807_v14 }
0x20e1   :  { %5624 = vmatprep.subr.bf16.mxu1 %v6243_v3 }
0x20e4   :  { %5625 = vmatpush3.bf16.msra.mxu1 %v5808_v20  ;;  %v4964_v20 = vld [vmem:[#allocation12 + $0x1] ss:$0 sm:$0xff] }
0x2192   :  { %v3557_v24 = vpop.f32.mrb[96].mxu1 }
0x2193   :  { %v3563_v26 = vpack.c.bf16 %v3557_v24, %v3557_v24  ;;  %v5576_v18 = vpop.f32.mrb[97].mxu1 }
0x2194   :  { %v3560_v30 = vpop.f32.mrb[98].mxu1 }
0x2195   :  { %v5577_v28 = vpop.f32.mrb[99].mxu1  ;;  %5583 = vmatmul.mubr.msk.bf16.vlgmr.msra.gmra.mrb[84].mxu0 %vm530_vm3, %v3563_v26 }
0x2196   :  { %5595 = vmatpush3.bf16.xpose.msra.mxu0 %v5805_v25  ;;  %5598 = vmatprep.mubr.msk.bf16.mxu0 %vm6244_vm0, %v6243_v3  ;;  %v3985_v25 = vld [vmem:[#allocation9 + $0x1] sm:$0x1] }
0x2197   :  { %5596 = vmatprep.subr.bf16.mxu0 %v6243_v3 }
0x219e   :  { %5597 = vmatpush3.bf16.xpose.msra.mxu0 %v5806_v29 }
0x219f   :  { %5610 = vmatprep.subr.bf16.mxu0 %v6243_v3 }
0x21a2   :  { %v3678_v31 = vpop.f32.mrb[100].mxu1 }
0x21a3   :  { %v5592_v32 = vpop.f32.mrb[101].mxu1  ;;  %v3679_v60 = vadd.f32 %v3678_v31, %v3631_v56  ;;  %v5830_v56 = vld [vmem:[#allocation14 + $0x168] ss:$16 sps:$4 sm:$0xff]  }
0x21a4   :  { %v3681_v33 = vpop.f32.mrb[102].mxu1 }
0x21a5   :  { %v5593_v35 = vpop.f32.mrb[103].mxu1  ;;  %5599 = vmatmul.mubr.bf16.vlgmr.msra.gmra.mrb[88].mxu0 %v6742_v27  ;;  %v3814_v61 = vpack.c.bf16 %v3679_v60, %v3679_v60  ;;  %v5833_v60 = vld [vmem:[#allocation14 + $0x180] ss:$16 sps:$4 sm:$0xff]  }
0x21a6   :  { %5612 = vmatprep.mubr.msk.bf16.mxu0 %vm6244_vm0, %v6243_v3  ;;  %v5809_v35 = vld [vmem:[#allocation14 + $0x100] ss:$16 sps:$4 sm:$0xff]  }
0x21b2   :  { %v3808_v36 = vpop.f32.mrb[104].mxu1 }
0x21b3   :  { %v5608_v37 = vpop.f32.mrb[105].mxu1  ;;  %v3809_v58 = vadd.f32 %v4955_v51, %v3808_v36  ;;  %v5811_v36 = vld [vmem:[#allocation14 + $0x104] ss:$16 sps:$4 sm:$0xff]   ;;  %v5824_v51 = vld [vmem:[#allocation14 + $0x148] ss:$16 sps:$4 sm:$0xff]  }
0x21b4   :  { %v3811_v38 = vpop.f32.mrb[106].mxu1  ;;  %v5812_v37 = vld [vmem:[#allocation14 + $0x108] ss:$16 sps:$4 sm:$0xff]  }
0x21b5   :  { %v5609_v39 = vpop.f32.mrb[107].mxu1  ;;  %v5817_v38 = vld [vmem:[#allocation14 + $0x124] ss:$16 sps:$4 sm:$0xff]  }
0x21b6   :  { %v5820_v39 = vld [vmem:[#allocation14 + $0x12c] ss:$16 sps:$4 sm:$0xff]  }
0x2268   :  { %v3618_v41 = vpop.f32.mrb[84].mxu0 }
0x2269   :  { %v3624_v42 = vadd.f32 %v3618_v41, %v6824_v40  ;;  %v5584_v44 = vpop.f32.mrb[85].mxu0  ;;  %v3875_v40 = vpack.c.bf16 %v3809_v58, %v3809_v58  ;;  %v5815_v41 = vld [vmem:[#allocation14 + $0x120] ss:$16 sps:$4 sm:$0xff]   ;;  %v5835_v58 = vld [vmem:[#allocation14 + $0x184] ss:$16 sps:$4 sm:$0xff]  }
0x226a   :  { %v3621_v45 = vpop.f32.mrb[86].mxu0 }
0x226b   :  { %v5585_v23 = vpop.f32.mrb[87].mxu0  ;;  %v3880_v47 = vsel %vm596_vm4, %v3875_v40, 0  ;;  %v5836_v40 = vld [vmem:[#allocation14 + $0x188] ss:$16 sps:$4 sm:$0xff]  }
0x2278   :  { %v3743_v48 = vpop.f32.mrb[88].mxu0 }
0x2279   :  { %v3744_v49 = vadd.f32 %v4952_v46, %v3743_v48  ;;  %v5600_v50 = vpop.f32.mrb[89].mxu0  ;;  %v5823_v48 = vld [vmem:[#allocation14 + $0x144] ss:$16 sps:$4 sm:$0xff]  }
0x227a   :  { %v3746_v52 = vpop.f32.mrb[90].mxu0  ;;  %v5821_v50 = vld [vmem:[#allocation14 + $0x140] ss:$16 sps:$4 sm:$0xff]  }
0x227b   :  { %v3815_v27 = vpack.c.bf16 %v3744_v49, %v3744_v49  ;;  %v5601_v53 = vpop.f32.mrb[91].mxu0  ;;  %v5826_v49 = vld [vmem:[#allocation14 + $0x14c] ss:$16 sps:$4 sm:$0xff]   ;;  %v5829_v52 = vld [vmem:[#allocation14 + $0x164] ss:$16 sps:$4 sm:$0xff]  }
0x227c   :  { %v5827_v53 = vld [vmem:[#allocation14 + $0x160] ss:$16 sps:$4 sm:$0xff]  }
0x227d   :  { %v3820_v59 = vsel %vm530_vm3, %v3815_v27, 0  ;;  %v5832_v27 = vld [vmem:[#allocation14 + $0x16c] ss:$16 sps:$4 sm:$0xff]  }
0x227e   :  { %5611 = vmatpush3.bf16.xpose.msra.mxu0 %v3820_v59  ;;  %v5838_v59 = vld [vmem:[#allocation14 + $0x18c] ss:$16 sps:$4 sm:$0xff]  }
0x227f   :  { %5616 = vmatprep.subr.bf16.mxu0 %v6243_v3 }
0x2285   :  { %5613 = vmatmul.mubr.msk.bf16.vlgmr.msra.gmra.mrb[92].mxu0 %vm530_vm3, %v3814_v61  ;;  %v5841_v61 = vld [vmem:[#allocation14 + $0x1a4] ss:$16 sps:$4 sm:$0xff]  }
0x2286   :  { %5617 = vmatpush3.bf16.msra.mxu0 %v3880_v47  ;;  %5618 = vmatprep.mubr.msk.bf16.mxu0 %vm6244_vm0, %v6243_v3  ;;  %v5844_v47 = vld [vmem:[#allocation14 + $0x1ac] ss:$16 sps:$4 sm:$0xff]  }
0x2287   :  { %4245 = vmatprep.subr.bf16.mxu0 %v5811_v36  ;;  %v5867_v36 = vld [vmem:[#allocation15 + $0x110] sm:$0xff]  }
0x2358   :  { %v3856_v62 = vpop.f32.mrb[92].mxu0 }
0x2359   :  { %v3862_v63 = vmul.f32 0.17677669, %v3856_v62  ;;  %v5614_v0 = vpop.f32.mrb[93].mxu0  ;;  %v5839_v62 = vld [vmem:[#allocation14 + $0x1a0] ss:$16 sps:$4 sm:$0xff]  }
0x235a   :  { %v3859_v2 = vpop.f32.mrb[94].mxu0  ;;  %v5847_v0 = vld [vmem:[#allocation14 + $0x1c4] ss:$16 sps:$4 sm:$0xff]  }
0x235b   :  { %v5615_v4 = vpop.f32.mrb[95].mxu0  ;;  %v3863_v5 = vsel %vm2787_vm7, %v3862_v63, -inf  ;;  %v5845_v2 = vld [vmem:[#allocation14 + $0x1c0] ss:$16 sps:$4 sm:$0xff]  }
0x235c   :  { %3864 = vmax.xlane.f32.xlu0 %v3863_v5  ;;  %v5848_v4 = vld [vmem:[#allocation14 + $0x1c8] ss:$16 sps:$4 sm:$0xff]   ;;  %v5850_v5 = vld [vmem:[#allocation14 + $0x1cc] ss:$16 sps:$4 sm:$0xff]  }
0x23e9   :  { %v3865_v6 = vpop.xlane.xlu0 %3864 }
0x23ea   :  { %v3866_v7 = vsub.f32 %v3862_v63, %v3865_v6  ;;  %v5842_v63 = vld [vmem:[#allocation14 + $0x1a8] ss:$16 sps:$4 sm:$0xff]   ;;  %v5853_v6 = vld [vmem:[#allocation14 + $0x1e4] ss:$16 sps:$4 sm:$0xff]  }
0x23ec   :  { %v3867_v9 = vmul.f32 1.442695, %v3866_v7  ;;  %v5856_v7 = vld [vmem:[#allocation14 + $0x1ec] ss:$16 sps:$4 sm:$0xff]  }
0x23ee   :  { %5931 = vpow2.f32 %v3867_v9  ;;  %v5851_v9 = vld [vmem:[#allocation14 + $0x1e0] ss:$16 sps:$4 sm:$0xff]  }
0x23f8   :  { %v5932_v11 = vpop.eup %5931 }
0x23f9   :  { %v3869_v13 = vsel %vm2787_vm7, %v5932_v11, 0.0 }
0x23fa   :  { %3870 = vadd.xlane.f32.xlu1 %v3869_v13 }
0x2487   :  { %v3871_v15 = vpop.xlane.xlu1 %3870 }
0x2488   :  { %5933 = vrcp.f32 %v3871_v15 }
0x2492   :  { %v5934_v16 = vpop.eup %5933 }
0x2493   :  { %v3873_v19 = vmul.f32 %v5934_v16, %v5932_v11  ;;  %v5854_v11 = vld [vmem:[#allocation14 + $0x1e8] ss:$16 sps:$4 sm:$0xff]  }
0x2495   :  { %v3874_v34 = vpack.c.bf16 %v3873_v19, %v3873_v19  ;;  %v4963_v19 = vld [vmem:[#allocation11 + $0x1] ss:$0 sm:$0xff] }
0x2497   :  { %5619 = vmatmul.mubr.msk.bf16.vlgmr.msra.gmra.mrb[96].mxu0 %vm579_vm6, %v3874_v34 }
0x2498   :  { %4277 = vmatprep.mubr.bf16.mxu0 %v6241_v1  ;;  %4246 = vmatpush1.bf16.msra.mxu0 %v5809_v35  ;;  %v5866_v35 = vld [vmem:[#allocation15 + $0x1d0] sm:$0xff]  }
0x2499   :  { %4247 = vmatprep.subr.bf16.mxu0 %v5817_v38  ;;  %v5870_v38 = vld [vmem:[#allocation15 + $0x1d8] sm:$0xff]  }
0x249c   :  { %4248 = vmatpush1.bf16.msra.mxu0 %v5815_v41  ;;  %v5872_v41 = vld [vmem:[#allocation15 + $0x198] sm:$0xff]  }
0x249d   :  { %4249 = vmatprep.subr.bf16.mxu0 %v5823_v48  ;;  %v5879_v48 = vld [vmem:[#allocation15 + $0x128] sm:$0xff]  }
0x24a0   :  { %4250 = vmatpush1.bf16.msra.mxu0 %v5821_v50  ;;  %v5881_v50 = vld [vmem:[#allocation15 + $0x170] sm:$0xff]  }
0x24a1   :  { %4251 = vmatprep.subr.bf16.mxu0 %v5829_v52  ;;  %v5883_v52 = vld [vmem:[#allocation15 + $0x130] sm:$0xff]  }
0x24a4   :  { %4252 = vmatpush1.bf16.msra.mxu0 %v5827_v53  ;;  %v5885_v53 = vld [vmem:[#allocation15 + $0x178] sm:$0xff]  }
0x24a5   :  { %4253 = vmatprep.subr.bf16.mxu0 %v5835_v58  ;;  %v5887_v58 = vld [vmem:[#allocation15 + $0x138] sm:$0xff]  }
0x24a8   :  { %4254 = vmatpush1.bf16.msra.mxu0 %v5833_v60  ;;  %v4965_v60 = vld [vmem:[%s6919_s12 + $0x4] sm:$0xf] }
0x24a9   :  { %4255 = vmatprep.subr.bf16.mxu0 %v5841_v61  ;;  %v4236_v61 = vrot.slane %v4965_v60, %v1878_v55 }
0x24ac   :  { %4256 = vmatpush1.bf16.msra.mxu0 %v5839_v62  ;;  %v4240_v62 = vrot.slane %v4965_v60, %v1882_v57 }
0x24ad   :  { %4257 = vmatprep.subr.bf16.mxu0 %v5847_v0 }
0x24b0   :  { %4258 = vmatpush1.bf16.msra.mxu0 %v5845_v2 }
0x24b1   :  { %4259 = vmatprep.subr.bf16.mxu0 %v5853_v6 }
0x24b4   :  { %4260 = vmatpush1.bf16.msra.mxu0 %v5851_v9 }
0x256a   :  { %v3916_v21 = vpop.f32.mrb[96].mxu0 }
0x256b   :  { %v3922_v12 = vpack.c.bf16 %v3916_v21, %v3916_v21  ;;  %v5620_v22 = vpop.f32.mrb[97].mxu0 }
0x256c   :  { %v3919_v17 = vpop.f32.mrb[98].mxu0 }
0x256d   :  { %v5621_v24 = vpop.f32.mrb[99].mxu0  ;;  %5627 = vmatmul.mubr.msk.bf16.vlgmr.msra.gmra.mrb[108].mxu1 %vm530_vm3, %v3922_v12 }
0x256e   :  { %4318 = vmatprep.mubr.bf16.mxu1 %v6241_v1  ;;  %v5814_v1 = vld [vmem:[#allocation14 + $0x10c] ss:$16 sps:$4 sm:$0xff]  }
0x256f   :  { %4286 = vmatprep.subr.bf16.mxu1 %v5814_v1  ;;  %v5869_v1 = vld [vmem:[#allocation15 + $0x158] sm:$0xff]  }
0x2570   :  { %4287 = vmatpush1.bf16.msra.mxu1 %v5812_v37  ;;  %v5868_v37 = vld [vmem:[#allocation15 + $0x190] sm:$0xff]  }
0x2571   :  { %4288 = vmatprep.subr.bf16.mxu1 %v5820_v39  ;;  %v5871_v39 = vld [vmem:[#allocation15 + $0x118] sm:$0xff]  }
0x2640   :  { %v3977_v3 = vpop.f32.mrb[108].mxu1 }
0x2641   :  { %v3983_v26 = vadd.f32 %v3977_v3, %v3624_v42  ;;  %v5628_v18 = vpop.f32.mrb[109].mxu1  ;;  %v5818_v42 = vld [vmem:[#allocation14 + $0x128] ss:$16 sps:$4 sm:$0xff]   ;;  %v5857_v3 = vld [vmem:[#allocation15 + $0x140] sm:$0xff]  }
0x2642   :  { %v3980_v30 = vpop.f32.mrb[110].mxu1  ;;  %4289 = vmatpush1.bf16.msra.mxu1 %v5818_v42  ;;  %v5860_v18 = vld [vmem:[#allocation15 + $0x180] sm:$0xff]   ;;  %5215 = vmatprep.subr.bf16.mxu0 %v5857_v3 }
0x2643   :  { %v3986_v28 = vadd.f32 %v3985_v25, %v3983_v26  ;;  %v5629_v29 = vpop.f32.mrb[111].mxu1  ;;  %4290 = vmatprep.subr.bf16.mxu1 %v5826_v49  ;;  %v5858_v25 = vld [vmem:[#allocation15 + $0x1c0] sm:$0xff]   ;;  %v5861_v30 = vld [vmem:[#allocation15 + $0x148] sm:$0xff]  }
0x2644   :  { %v5859_v26 = vld [vmem:[#allocation15 + $0x100] sm:$0xff]   ;;  %v5863_v29 = vld [vmem:[#allocation15 + $0x108] sm:$0xff]  }
0x2645   :  { %v3988_v31 = vrot.slane %v3986_v28, 1  ;;  %v5862_v28 = vld [vmem:[#allocation15 + $0x1c8] sm:$0xff]   ;;  %v5873_v42 = vld [vmem:[#allocation15 + $0x160] sm:$0xff]  }
0x2646   :  { %4291 = vmatpush1.bf16.msra.mxu1 %v5824_v51  ;;  %v5880_v49 = vld [vmem:[#allocation15 + $0x1a8] sm:$0xff]   ;;  %v5882_v51 = vld [vmem:[#allocation15 + $0x1f0] sm:$0xff]  }
0x2647   :  { %v6871_v32 = vadd.f32 %v3988_v31, %v6728_v8  ;;  %4292 = vmatprep.subr.bf16.mxu1 %v5832_v27  ;;  %v5864_v31 = vld [vmem:[#allocation15 + $0x188] sm:$0xff]   ;;  %v5884_v27 = vld [vmem:[#allocation15 + $0x1b0] sm:$0xff]  }
0x2649   :  { %v3996_v33 = vsel %vm3995_vm8, %v6871_v32, 0.0 }
0x264a   :  { %3997 = vadd.xlane.f32.xlu0 %v3996_v33  ;;  %4293 = vmatpush1.bf16.msra.mxu1 %v5830_v56  ;;  %v5865_v33 = vld [vmem:[#allocation15 + $0x150] sm:$0xff]   ;;  %v5886_v56 = vld [vmem:[#allocation15 + $0x1f8] sm:$0xff]  }
0x264b   :  { %4294 = vmatprep.subr.bf16.mxu1 %v5838_v59  ;;  %v5888_v59 = vld [vmem:[#allocation15 + $0x1b8] sm:$0xff]  }
0x264e   :  { %4295 = vmatpush1.bf16.msra.mxu1 %v5836_v40  ;;  %v4228_v40 = vrot.slane %v4965_v60, %v1870_v54 }
0x264f   :  { %4296 = vmatprep.subr.bf16.mxu1 %v5844_v47  ;;  %v4232_v47 = vrot.slane %v4965_v60, %v1874_v43 }
0x2652   :  { %4297 = vmatpush1.bf16.msra.mxu1 %v5842_v63 }
0x2653   :  { %4298 = vmatprep.subr.bf16.mxu1 %v5850_v5 }
0x2656   :  { %4299 = vmatpush1.bf16.msra.mxu1 %v5848_v4 }
0x2657   :  { %4300 = vmatprep.subr.bf16.mxu1 %v5856_v7 }
0x265a   :  { %4301 = vmatpush1.bf16.msra.mxu1 %v5854_v11 }
0x265b   :  { %5237 = vmatprep.subr.bf16.mxu1 %v5858_v25 }
0x26d7   :  { %v3998_v8 = vpop.xlane.xlu0 %3997 }
0x26d8   :  { %v3999_v44 = vmul.f32 0.0078125, %v3998_v8  ;;  %v5874_v8 = vld [vmem:[#allocation15 + $0x1e0] sm:$0xff]  }
0x26da   :  { %v4000_v45 = vsub.f32 %v6871_v32, %v3999_v44  ;;  %v5875_v44 = vld [vmem:[#allocation15 + $0x120] sm:$0xff]  }
0x26dc   :  { %v4001_v23 = vmul.f32 %v4000_v45, %v4000_v45 }
0x26de   :  { %v4002_v46 = vsel %vm3995_vm8, %v4001_v23, 0.0  ;;  %v5877_v23 = vld [vmem:[#allocation15 + $0x168] sm:$0xff]  }
0x26df   :  { %4003 = vadd.xlane.f32.xlu1 %v4002_v46  ;;  %v5878_v46 = vld [vmem:[#allocation15 + $0x1e8] sm:$0xff]  }
0x276c   :  { %v4004_v13 = vpop.xlane.xlu1 %4003 }
0x276d   :  { %v4005_v14 = vmul.f32 0.0078125, %v4004_v13 }
0x276f   :  { %v4006_v15 = vadd.f32 1e-05, %v4005_v14 }
0x2771   :  { %5935 = vrsqrt.f32 %v4006_v15 }
0x277b   :  { %v5936_v16 = vpop.eup %5935 }
0x277c   :  { %v4008_v34 = vmul.f32 %v5936_v16, %v4000_v45  ;;  %v5876_v45 = vld [vmem:[#allocation15 + $0x1a0] sm:$0xff]  }
0x277e   :  { %v4015_v21 = vmul.f32 %v4963_v19, %v4008_v34 }
0x2780   :  { %v4022_v12 = vadd.f32 %v4964_v20, %v4015_v21 }
0x2782   :  { %v4023_v22 = vpack.c.bf16 %v4022_v12, %v4022_v12 }
0x2784   :  { %v4060_v17 = vshrl.u32 %v4023_v22, 16 }
0x2786   :  { %v4062_v24 = vrot.slane %v4060_v17, 3 }
0x2788   :  { %4278 = vmatmul.mubr.bf16.vlgmr.msra.gmra.mrb[100].mxu0 %v4062_v24  ;;  %4319 = vmatmul.mubr.bf16.vlgmr.msra.gmra.mrb[112].mxu1 %v4062_v24 }
0x2789   :  { %5216 = vmatpush3.bf16.msra.mxu0 %v5859_v26  ;;  %5238 = vmatpush3.bf16.msra.mxu1 %v5860_v18 }
0x278a   :  { %5217 = vmatprep.subr.bf16.mxu0 %v5861_v30  ;;  %5239 = vmatprep.subr.bf16.mxu1 %v5862_v28 }
0x278d   :  { %5218 = vmatpush3.bf16.msra.mxu0 %v5863_v29  ;;  %5240 = vmatpush3.bf16.msra.mxu1 %v5864_v31 }
0x278e   :  { %5219 = vmatprep.subr.bf16.mxu0 %v5865_v33  ;;  %5241 = vmatprep.subr.bf16.mxu1 %v5866_v35 }
0x2791   :  { %5220 = vmatpush3.bf16.msra.mxu0 %v5867_v36  ;;  %5242 = vmatpush3.bf16.msra.mxu1 %v5868_v37 }
0x2792   :  { %5221 = vmatprep.subr.bf16.mxu0 %v5869_v1  ;;  %5243 = vmatprep.subr.bf16.mxu1 %v5870_v38 }
0x2795   :  { %5222 = vmatpush3.bf16.msra.mxu0 %v5871_v39  ;;  %5244 = vmatpush3.bf16.msra.mxu1 %v5872_v41 }
0x2796   :  { %5223 = vmatprep.subr.bf16.mxu0 %v5873_v42  ;;  %5245 = vmatprep.subr.bf16.mxu1 %v5874_v8 }
0x2799   :  { %5224 = vmatpush3.bf16.msra.mxu0 %v5875_v44  ;;  %5246 = vmatpush3.bf16.msra.mxu1 %v5876_v45 }
0x279a   :  { %5225 = vmatprep.subr.bf16.mxu0 %v5877_v23  ;;  %5247 = vmatprep.subr.bf16.mxu1 %v5878_v46 }
0x279d   :  { %5226 = vmatpush3.bf16.msra.mxu0 %v5879_v48  ;;  %5248 = vmatpush3.bf16.msra.mxu1 %v5880_v49 }
0x279e   :  { %5227 = vmatprep.subr.bf16.mxu0 %v5881_v50  ;;  %5249 = vmatprep.subr.bf16.mxu1 %v5882_v51 }
0x27a1   :  { %5228 = vmatpush3.bf16.msra.mxu0 %v5883_v52  ;;  %5250 = vmatpush3.bf16.msra.mxu1 %v5884_v27 }
0x27a2   :  { %5229 = vmatprep.subr.bf16.mxu0 %v5885_v53  ;;  %5251 = vmatprep.subr.bf16.mxu1 %v5886_v56  ;;  %v4433_v53 = vld [vmem:[#allocation17 + $0x1] sm:$0x1] }
0x27a5   :  { %5230 = vmatpush3.bf16.msra.mxu0 %v5887_v58  ;;  %5252 = vmatpush3.bf16.msra.mxu1 %v5888_v59 }
0x285b   :  { %v4279_v63 = vpop.f32.mrb[100].mxu0  ;;  %v4320_v0 = vpop.f32.mrb[112].mxu1 }
0x285c   :  { %v4280_v2 = vadd.f32 %v4279_v63, %v4228_v40  ;;  %v4321_v4 = vadd.f32 %v4320_v0, %v4236_v61  ;;  %v4281_v5 = vpop.f32.mrb[101].mxu0  ;;  %v4322_v6 = vpop.f32.mrb[113].mxu1 }
0x285d   :  { %v4282_v7 = vadd.f32 %v4281_v5, %v4232_v47  ;;  %v4323_v9 = vadd.f32 %v4322_v6, %v4240_v62  ;;  %v4283_v11 = vpop.f32.mrb[102].mxu0  ;;  %v4324_v13 = vpop.f32.mrb[114].mxu1 }
0x285e   :  { %v4327_v54 = vmul.f32 %v4280_v2, %v4280_v2  ;;  %v4329_v14 = vmul.f32 %v4321_v4, %v4321_v4  ;;  %v4284_v15 = vpop.f32.mrb[103].mxu0  ;;  %v4325_v55 = vpop.f32.mrb[115].mxu1 }
0x285f   :  { %v4328_v16 = vmul.f32 %v4282_v7, %v4282_v7  ;;  %v4330_v19 = vmul.f32 %v4323_v9, %v4323_v9 }
0x2860   :  { %v4331_v43 = vmul.f32 %v4327_v54, %v4280_v2  ;;  %v4333_v34 = vmul.f32 %v4329_v14, %v4321_v4 }
0x2861   :  { %v4332_v10 = vmul.f32 %v4328_v16, %v4282_v7  ;;  %v4334_v57 = vmul.f32 %v4330_v19, %v4323_v9  ;;  %v5030_v16 = vld [vmem:[%s6922_s15] ss:$0 sm:$0xff]  ;;  %v5031_v19 = vld [vmem:[#allocation18] ss:$0 sm:$0xff]  ;;  %s6193_s15 = scalar_lea.vmem %s4767_s1, 32 }
0x2862   :  { %v4335_v20 = vmul.f32 0.044715, %v4331_v43  ;;  %v4337_v21 = vmul.f32 0.044715, %v4333_v34  ;;  %v5032_v34 = vld [vmem:[#allocation20] ss:$0 sm:$0xff]  ;;  %p6195_p6 = scmp.lt.s32.totalorder %s6193_s15, %s6189_s24 }
0x2863   :  { %v4336_v12 = vmul.f32 0.044715, %v4332_v10  ;;  %v4338_v22 = vmul.f32 0.044715, %v4334_v57 }
0x2864   :  { %v4339_v17 = vadd.f32 %v4335_v20, %v4280_v2  ;;  %v4341_v24 = vadd.f32 %v4337_v21, %v4321_v4  ;;  %v5033_v21 = vld [vmem:[#allocation2] ss:$0 sm:$0xff]  ;;  %p6196_p7 = por %p6195_p6, %p6194_p5 }
0x2865   :  { %v4340_v3 = vadd.f32 %v4336_v12, %v4282_v7  ;;  %v4342_v25 = vadd.f32 %v4338_v22, %v4323_v9 }
0x2866   :  { %v4343_v26 = vmul.f32 0.7978846, %v4339_v17  ;;  %v4345_v18 = vmul.f32 0.7978846, %v4341_v24  ;;  %p6197_p8 = pnand %p6196_p7, %p6190_p4 }
0x2867   :  { %v4344_v30 = vmul.f32 0.7978846, %v4340_v3  ;;  %v4346_v28 = vmul.f32 0.7978846, %v4342_v25 }
0x2868   :  { %5937 = vtanh.f32 %v4343_v26 }
0x2869   :  { %5939 = vtanh.f32 %v4345_v18 }
0x286a   :  { %5941 = vtanh.f32 %v4344_v30 }
0x286b   :  { %5943 = vtanh.f32 %v4346_v28 }
0x2872   :  { %v5938_v29 = vpop.eup %5937 }
0x2873   :  { %v5940_v31 = vpop.eup %5939  ;;  %v4351_v33 = vadd.f32 1.0, %v5938_v29 }
0x2874   :  { %v5942_v35 = vpop.eup %5941  ;;  %v4353_v36 = vadd.f32 1.0, %v5940_v31 }
0x2875   :  { %v5944_v37 = vpop.eup %5943  ;;  %v4352_v1 = vadd.f32 1.0, %v5942_v35  ;;  %v4355_v38 = vmul.f32 0.5, %v4351_v33 }
0x2876   :  { %v4354_v39 = vadd.f32 1.0, %v5944_v37  ;;  %v4357_v41 = vmul.f32 0.5, %v4353_v36 }
0x2877   :  { %v4356_v42 = vmul.f32 0.5, %v4352_v1  ;;  %v4359_v44 = vmul.f32 %v4355_v38, %v4280_v2 }
0x2878   :  { %v4358_v8 = vmul.f32 0.5, %v4354_v39  ;;  %v4361_v23 = vmul.f32 %v4357_v41, %v4321_v4 }
0x2879   :  { %v4360_v45 = vmul.f32 %v4356_v42, %v4282_v7  ;;  %v4363_v50 = vpack.c.bf16 %v4359_v44, %v4359_v44 }
0x287a   :  { %v4362_v46 = vmul.f32 %v4358_v8, %v4323_v9  ;;  %v4365_v51 = vpack.c.bf16 %v4361_v23, %v4361_v23 }
0x287b   :  { %v4364_v48 = vpack.c.bf16 %v4360_v45, %v4360_v45 }
0x287c   :  { %v4366_v49 = vpack.c.bf16 %v4362_v46, %v4362_v46 }
0x287d   :  { %4658 = vmatprep.mubr.bf16.mxu0 %v4364_v48 }
0x287e   :  { %4698 = vmatprep.mubr.bf16.mxu1 %v4366_v49  ;;  %4659 = vmatmul.mubr.bf16.vlgmr.msra.gmra.mrb[104].mxu0 %v4363_v50 }
0x287f   :  { %4699 = vmatmul.mubr.bf16.vlgmr.msra.gmra.mrb[116].mxu1 %v4365_v51 }
0x2951   :  { %v5231_v52 = vpop.f32.mrb[104].mxu0 }
0x2952   :  { %v5253_v27 = vpop.f32.mrb[116].mxu1  ;;  %v5232_v56 = vpop.f32.mrb[105].mxu0 }
0x2953   :  { %v5233_v58 = vadd.f32 %v5232_v56, %v5231_v52  ;;  %v5254_v59 = vpop.f32.mrb[117].mxu1  ;;  %v5234_v60 = vpop.f32.mrb[106].mxu0 }
0x2954   :  { %v5255_v40 = vadd.f32 %v5254_v59, %v5253_v27  ;;  %v5256_v61 = vpop.f32.mrb[118].mxu1  ;;  %v5235_v47 = vpop.f32.mrb[107].mxu0 }
0x2955   :  { %v4661_v62 = vadd.f32 %v5233_v58, %v4433_v53  ;;  %v5257_v63 = vpop.f32.mrb[119].mxu1 }
0x2957   :  { %v4701_v0 = vadd.f32 %v5255_v40, %v4661_v62 }
0x2959   :  { %v4707_v2 = vrot.slane %v4701_v0, 1 }
0x295b   :  { %v4709_v4 = vadd.f32 %v4707_v2, %v6871_v32 }
0x295d   :  { %v4712_v5 = vsel %vm3995_vm8, %v4709_v4, 0.0 }
0x295e   :  { %4713 = vadd.xlane.f32.xlu0 %v4712_v5 }
0x29eb   :  { %v4714_v6 = vpop.xlane.xlu0 %4713 }
0x29ec   :  { %v4715_v7 = vmul.f32 0.0078125, %v4714_v6 }
0x29ee   :  { %v4716_v9 = vsub.f32 %v4709_v4, %v4715_v7 }
0x29f0   :  { %v4717_v11 = vmul.f32 %v4716_v9, %v4716_v9 }
0x29f2   :  { %v4718_v13 = vsel %vm3995_vm8, %v4717_v11, 0.0 }
0x29f3   :  { %4719 = vadd.xlane.f32.xlu1 %v4718_v13 }
0x2a80   :  { %v4720_v54 = vpop.xlane.xlu1 %4719 }
0x2a81   :  { %v4721_v14 = vmul.f32 0.0078125, %v4720_v54 }
0x2a83   :  { %v4722_v15 = vadd.f32 1e-05, %v4721_v14 }
0x2a85   :  { %5945 = vrsqrt.f32 %v4722_v15 }
0x2a8f   :  { %v5946_v55 = vpop.eup %5945 }
0x2a90   :  { %v4724_v32 = vmul.f32 %v5946_v55, %v4716_v9 }
0x2a92   :  { %v4731_v43 = vmul.f32 %v5030_v16, %v4724_v32 }
0x2a94   :  { %v4738_v10 = vadd.f32 %v5031_v19, %v4731_v43 }
0x2a96   :  { %v4746_v57 = vmul.f32 %v5032_v34, %v4738_v10 }
0x2a98   :  { %v4747_v20 = vsel %vm3995_vm8, %v4746_v57, 0.0 }
0x2a99   :  { %4748 = vadd.xlane.f32.xlu0 %v4747_v20 }
0x2b26   :  { %v4749_v12 = vpop.xlane.xlu0 %4748 }
0x2b27   :  { %v4757_v22 = vadd.f32 %v5033_v21, %v4749_v12 }
0x2b29   :  { %4759 = vst.msk [vmem:[#allocation21 - $0x7] sm:$0x80] %vm4758_vm9, %v4757_v22 }
0x2b2a   :  { %6200 = shalt.err (!%p6197_p8)
}
0x2b2b   :  { %s6201_s20 = scalar_lea.hbm %s6926_s19, 16 }
0x2b2c   :  { %p6202_p9 = scmp.ne.s32.totalorder %s6926_s19, %s6201_s20  ;;  %p6205_p10 = scmp.lt.u32.totalorder %s6201_s20, %s6926_s19 }
0x2b2e   :  { %p6207_p11 = pnand %p6205_p10, %p6202_p9 }
0x2b30   :  { %6210 = shalt.err (!%p6207_p11)
}
0x2b31   :  { %4769 = dma.vmem_to_hbm [thread:$0]  %s4767_s1, 16, %s6926_s19, [#allocation5]  }
0x2b32   :  { %6223 = dma.done.wait [#allocation5], 16  }
0x2b33   :  { %6224 = vsyncadd [#allocation5], 4294967280 }
0x2b34   :  { %4773 = vsyncpa [#allocation4], 1 }
0x2b35   :  { %4774 = vsyncpa [#allocation7], 1 }
0x2b36   :  { %4775 = vsyncpa [#allocation10], 1 }
0x2b37   :  { %4776 = vsyncpa [#allocation13], 1 }
0x2b38   :  { %4777 = vsyncpa [#allocation16], 1 }
0x2b39   :  { %4778 = vsyncpa [#allocation19], 1 }
0x2b3a   :  { %4779 = vsyncpa [#allocation5], 1 }

</bundles_post_ra>
